<compile_context>
chip_gen: v7x
topology: tpu7x:2x2x1
jax: 0.10.0
libtpu: 0.0.40
codegen_flags: <defaults>
</compile_context>

<pallas_src>
import numpy as np
import jax
import jax.numpy as jnp
from jax import lax
from jax.experimental import pallas as pl
from jax.experimental.pallas import tpu as pltpu


def _round_up(x, m):
    return (x + m - 1) // m * m


# ----------------------- kernel 1: merged conv + masked GN stats ----------------------- #

def _make_conv_stats_kernel(offsets, ct_p, tile_m):
    T = len(offsets)

    def kernel(w_ref, xc_ref, xn_ref, mk_ref, y_ref, st_ref, xcat_ref):
        m = pl.program_id(1)
        # Assemble current tile + halo (next tile) once in VMEM; taps become lane shifts.
        xcat_ref[:, :tile_m] = xc_ref[...]
        xcat_ref[:, tile_m:] = xn_ref[...]

        acc = jnp.zeros((ct_p, tile_m), jnp.float32)
        for t in range(T):                                   # static, unrolled (27 taps)
            off = offsets[t]
            win = xcat_ref[:, off:off + tile_m]              # (Cin_p, tile_m) bf16
            acc = acc + jnp.dot(w_ref[t], win, preferred_element_type=jnp.float32)
        y_ref[...] = acc.astype(y_ref.dtype)                 # bf16 intermediate (no bias)

        # Masked per-channel sum / sumsq for the two-pass GroupNorm (mask kills the
        # padded-coordinate junk columns and the lane-padding tail).
        msk = mk_ref[...]                                    # (1, tile_m) f32, 1 = valid voxel
        am = acc * msk
        s1 = jnp.sum(am, axis=1, keepdims=True)              # (Ct_p, 1)
        s2 = jnp.sum(am * acc, axis=1, keepdims=True)        # (Ct_p, 1)
        st = jnp.concatenate([s1, s2], axis=1)[None]         # (1, Ct_p, 2)

        @pl.when(m == 0)
        def _():
            st_ref[...] = jnp.zeros_like(st_ref)
        st_ref[...] = st_ref[...] + st

    return kernel


# ------------- kernel 2: per-channel affine (GN+bias) + PReLU + slice add/concat ------------- #

def _epilogue_kernel(y_ref, sc_ref, sh_ref, al_ref, sel_ref, o_ref):
    y = y_ref[...].astype(jnp.float32)                       # (Ct_p, tile_m)
    z = y * sc_ref[0] + sh_ref[0]                            # GN + conv-bias folded per channel
    act = jnp.where(z >= 0, z, al_ref[...] * z)              # per-channel PReLU alpha
    # XY+YZ+XZ sum and [3D | slice] concat as ONE full-width selection matmul (no
    # unaligned channel slicing, single unmasked lane-dense store).
    o_ref[...] = jnp.dot(sel_ref[...], act, preferred_element_type=jnp.float32)


# --------------------------------- module forward --------------------------------- #

def slice_context_block_cm(x_cm, p, kernel_size, groups=4, eps=1e-5):
    """One SliceContextBlock on channel-major input (Cin, N, D, H, W) -> (Cout, N, D, H, W)."""
    Cin, N, D, H, W = x_cm.shape
    kd, kh, kw = kernel_size
    pd, ph, pw = (kd - 1) // 2, (kh - 1) // 2, (kw - 1) // 2
    Dp, Hp, Wp = D + 2 * pd, H + 2 * ph, W + 2 * pw
    Sp, S = Dp * Hp * Wp, D * H * W

    # Flat-index conv: output voxel (d,h,w) lives at p = d*Hp*Wp + h*Wp + w and tap (i,j,k)
    # reads padded-input lane p + off(i,j,k).  Columns with h>=H or w>=W are junk that is
    # masked out of the GN stats and cropped at the end.
    m_out = (D - 1) * Hp * Wp + (H - 1) * Wp + W
    max_off = (kd - 1) * Hp * Wp + (kh - 1) * Wp + (kw - 1)
    T = kd * kh * kw
    offsets = tuple(i * Hp * Wp + j * Wp + k
                    for i in range(kd) for j in range(kh) for k in range(kw))

    c3d = p['b3d']['w'].shape[0]
    cq = p['bxy']['w'].shape[0]
    assert c3d % groups == 0 and cq % groups == 0
    Ct, Cout = c3d + 3 * cq, c3d + cq
    cin_p = _round_up(Cin, 8)
    ct_p = _round_up(Ct, 16)                                  # bf16 intermediate rows
    cout_p = _round_up(Cout, 8)

    # Tile the flat spatial axis; the halo (max_off) must fit inside one tile.
    tile_m = max(512, _round_up(max_off, 128))
    num_mt = -(-m_out // tile_m)
    l_out = num_mt * tile_m
    l_in = (num_mt + 1) * tile_m                              # >= Sp (= m_out + max_off)

    # ---- host prep: flat zero-padded input (input read ~once + halo; no 27x im2col) ----
    xp = jnp.pad(x_cm.astype(jnp.float32),
                 ((0, cin_p - Cin), (0, 0), (pd, pd), (ph, ph), (pw, pw)))
    xp = xp.reshape(cin_p, N, Sp)
    xp = jnp.pad(xp, ((0, 0), (0, 0), (0, l_in - Sp)))
    xp2 = xp.reshape(cin_p, N * l_in).astype(jnp.bfloat16)

    # ---- merge the 4 branch convs into per-tap (Ct_p, Cin_p) weights via zero-embedding ----
    w3d = p['b3d']['w']
    wxy = jnp.pad(p['bxy']['w'], ((0, 0), (0, 0), (0, 0), (0, 0), (pw, kw - 1 - pw)))
    wyz = jnp.pad(p['byz']['w'], ((0, 0), (0, 0), (pd, kd - 1 - pd), (0, 0), (0, 0)))
    wxz = jnp.pad(p['bxz']['w'], ((0, 0), (0, 0), (0, 0), (ph, kh - 1 - ph), (0, 0)))
    w_all = jnp.concatenate([w3d, wxy, wyz, wxz], axis=0)     # (Ct, Cin, kd, kh, kw)
    w_taps = jnp.transpose(w_all, (2, 3, 4, 0, 1)).reshape(T, Ct, Cin)
    w_taps = jnp.pad(w_taps, ((0, 0), (0, ct_p - Ct), (0, cin_p - Cin))).astype(jnp.bfloat16)

    bias = jnp.pad(jnp.concatenate([p['b3d']['b'], p['bxy']['b'],
                                    p['byz']['b'], p['bxz']['b']]), (0, ct_p - Ct)).astype(jnp.float32)
    gamma = jnp.pad(jnp.concatenate([p['b3d']['gamma'], p['bxy']['gamma'],
                                     p['byz']['gamma'], p['bxz']['gamma']]), (0, ct_p - Ct)).astype(jnp.float32)
    beta = jnp.pad(jnp.concatenate([p['b3d']['beta'], p['bxy']['beta'],
                                    p['byz']['beta'], p['bxz']['beta']]), (0, ct_p - Ct)).astype(jnp.float32)
    alpha = jnp.concatenate([
        jnp.ones((c3d,), jnp.float32) * jnp.asarray(p['b3d']['alpha'], jnp.float32),
        jnp.ones((cq,), jnp.float32) * jnp.asarray(p['bxy']['alpha'], jnp.float32),
        jnp.ones((cq,), jnp.float32) * jnp.asarray(p['byz']['alpha'], jnp.float32),
        jnp.ones((cq,), jnp.float32) * jnp.asarray(p['bxz']['alpha'], jnp.float32)])
    alpha = jnp.pad(alpha, (0, ct_p - Ct)).reshape(ct_p, 1)

    # Valid-voxel lane mask (identical for every n).
    pidx = np.arange(l_out)
    valid_np = (pidx < m_out) & (pidx % Wp < W) & ((pidx // Wp) % Hp < H)
    mask = jnp.asarray(valid_np.astype(np.float32)).reshape(1, l_out)

    # Static channel -> (branch, group) one-hot and the branch-combine selection matrix.
    cpg3, cpgq = c3d // groups, cq // groups
    gid = np.full((ct_p,), -1, np.int64)
    gid[:c3d] = np.arange(c3d) // cpg3
    for b in range(3):
        gid[c3d + b * cq: c3d + (b + 1) * cq] = groups * (1 + b) + np.arange(cq) // cpgq
    g_onehot = jnp.asarray((gid[None, :] == np.arange(4 * groups)[:, None]).astype(np.float32))
    cnt = jnp.asarray(np.array([cpg3] * groups + [cpgq] * (3 * groups), np.float32) * float(S))
    sel_np = np.zeros((cout_p, ct_p), np.float32)
    sel_np[:c3d, :c3d] = np.eye(c3d)
    for b in range(3):
        sel_np[c3d:c3d + cq, c3d + b * cq: c3d + (b + 1) * cq] = np.eye(cq)
    sel = jnp.asarray(sel_np)

    # ---- kernel 1: merged 4-branch conv (in-kernel im2col) + masked per-channel stats ----
    k1 = _make_conv_stats_kernel(offsets, ct_p, tile_m)
    cost1 = pl.CostEstimate(
        flops=2 * T * ct_p * cin_p * N * l_out,
        transcendentals=0,
        bytes_accessed=4 * cin_p * N * l_in + 2 * ct_p * N * l_out + 2 * T * ct_p * cin_p)
    y, stats = pl.pallas_call(
        k1,
        out_shape=(jax.ShapeDtypeStruct((ct_p, N * l_out), jnp.bfloat16),
                   jax.ShapeDtypeStruct((N, ct_p, 2), jnp.float32)),
        grid=(N, num_mt),
        in_specs=[
            pl.BlockSpec((T, ct_p, cin_p), lambda n, m: (0, 0, 0)),              # taps: resident
            pl.BlockSpec((cin_p, tile_m), lambda n, m: (0, n * (num_mt + 1) + m)),      # tile
            pl.BlockSpec((cin_p, tile_m), lambda n, m: (0, n * (num_mt + 1) + m + 1)),  # halo
            pl.BlockSpec((1, tile_m), lambda n, m: (0, m)),                      # valid mask
        ],
        out_specs=(
            pl.BlockSpec((ct_p, tile_m), lambda n, m: (0, n * num_mt + m)),      # bf16 conv out
            pl.BlockSpec((1, ct_p, 2), lambda n, m: (n, 0, 0)),                  # per-n stats acc
        ),
        scratch_shapes=[pltpu.VMEM((cin_p, 2 * tile_m), jnp.bfloat16)],
        compiler_params=pltpu.CompilerParams(
            dimension_semantics=("parallel", "arbitrary"),
            vmem_limit_bytes=32 * 1024 * 1024),
        cost_estimate=cost1,
    )(w_taps, xp2, xp2, mask)

    # ---- tiny host-side math: fold bias into stats, reduce to groups, expand to channels ----
    sv = float(S)
    raw_sum, raw_ss = stats[:, :, 0], stats[:, :, 1]
    sum_b = raw_sum + bias[None, :] * sv
    ss_b = raw_ss + 2.0 * bias[None, :] * raw_sum + (bias * bias)[None, :] * sv
    gsum = sum_b @ g_onehot.T                                 # (N, 4*groups)
    gss = ss_b @ g_onehot.T
    mean_g = gsum / cnt[None, :]
    var_g = jnp.maximum(gss / cnt[None, :] - mean_g * mean_g, 0.0)
    inv_g = lax.rsqrt(var_g + eps)
    mean_c = mean_g @ g_onehot                                # (N, Ct_p)
    inv_c = inv_g @ g_onehot
    scale = (gamma[None, :] * inv_c).reshape(N, ct_p, 1)
    shift = (gamma[None, :] * inv_c * (bias[None, :] - mean_c) + beta[None, :]).reshape(N, ct_p, 1)

    # ---- kernel 2: affine + PReLU + slice-add/concat (fully parallel grid) ----
    cost2 = pl.CostEstimate(
        flops=(2 * cout_p * ct_p + 6 * ct_p) * N * l_out,
        transcendentals=0,
        bytes_accessed=2 * ct_p * N * l_out + 4 * cout_p * N * l_out)
    out2 = pl.pallas_call(
        _epilogue_kernel,
        out_shape=jax.ShapeDtypeStruct((cout_p, N * l_out), jnp.float32),
        grid=(N, num_mt),
        in_specs=[
            pl.BlockSpec((ct_p, tile_m), lambda n, m: (0, n * num_mt + m)),
            pl.BlockSpec((1, ct_p, 1), lambda n, m: (n, 0, 0)),                  # per-n scale
            pl.BlockSpec((1, ct_p, 1), lambda n, m: (n, 0, 0)),                  # per-n shift
            pl.BlockSpec((ct_p, 1), lambda n, m: (0, 0)),                        # PReLU alpha
            pl.BlockSpec((cout_p, ct_p), lambda n, m: (0, 0)),                   # selection mat
        ],
        out_specs=pl.BlockSpec((cout_p, tile_m), lambda n, m: (0, n * num_mt + m)),
        compiler_params=pltpu.CompilerParams(
            dimension_semantics=("parallel", "parallel"),
            vmem_limit_bytes=32 * 1024 * 1024),
        cost_estimate=cost2,
    )(y, scale, shift, alpha, sel)

    # ---- crop padded-coordinate junk + padded channels (cheap O(activation) reshape) ----
    need = D * Hp * Wp
    out3 = out2.reshape(cout_p, N, l_out)
    if l_out >= need:
        out3 = out3[:, :, :need]
    else:
        out3 = jnp.pad(out3, ((0, 0), (0, 0), (0, need - l_out)))
    out3 = out3.reshape(cout_p, N, D, Hp, Wp)[:Cout, :, :, :H, :W]
    return out3


def block_forward(x, params, kernel_size):
    # NCDHW -> channel-major once; back to NCDHW once at the end.
    x_cm = jnp.transpose(x, (1, 0, 2, 3, 4))
    x_cm = slice_context_block_cm(x_cm, params['conv0'], kernel_size)
    # Mirrors Block.forward's try/except: layers are only applied if they were created.
    if 'conv1' in params:
        x_cm = slice_context_block_cm(x_cm, params['conv1'], kernel_size)
    if 'conv2' in params:
        x_cm = slice_context_block_cm(x_cm, params['conv2'], kernel_size)
    return jnp.transpose(x_cm, (1, 0, 2, 3, 4))


# --------------------------------- parameter init --------------------------------- #

def init_scb_params(key, inp_ch, intra_ch, kernel_size):
    kd, kh, kw = kernel_size
    c3d = int(3 * intra_ch / 4)
    cq = int(intra_ch / 4)
    specs = {
        'b3d': (c3d, (kd, kh, kw)),
        'bxy': (cq, (kd, kh, 1)),
        'byz': (cq, (1, kh, kw)),
        'bxz': (cq, (kd, 1, kw)),
    }
    p = {}
    for name, (cout, ks) in specs.items():
        key, k1, k2 = jax.random.split(key, 3)
        fan_in = inp_ch * ks[0] * ks[1] * ks[2]
        p[name] = dict(
            w=jax.random.normal(k1, (cout, inp_ch) + ks, jnp.float32) / jnp.sqrt(float(fan_in)),
            b=0.01 * jax.random.normal(k2, (cout,), jnp.float32),
            gamma=jnp.ones((cout,), jnp.float32),    # GroupNorm affine defaults
            beta=jnp.zeros((cout,), jnp.float32),
            alpha=jnp.float32(0.25),                 # PReLU default (single shared param)
        )
    return p, key


def init_block_params(key, cfg):
    ks = cfg['kernel_size']
    params = {}
    params['conv0'], key = init_scb_params(key, cfg['in_channels'], cfg['out_channels'], ks)
    if cfg['create_layer_1']:
        params['conv1'], key = init_scb_params(key, cfg['out_channels'], cfg['out_channels'], ks)
    if cfg['create_layer_2']:
        params['conv2'], key = init_scb_params(key, cfg['out_channels'], cfg['out_channels'], ks)
    return params


# --------------------------------------- main --------------------------------------- #

if __name__ == "__main__":
    cfg = dict(in_channels=4, out_channels=16, kernel_size=(3, 3, 3),
               create_layer_1=True, create_layer_2=False)

    key = jax.random.PRNGKey(0)
    key, xk = jax.random.split(key)
    x = jax.random.normal(xk, (2, 4, 8, 8, 8), jnp.float32)   # (N, C, D, H, W)
    params = init_block_params(key, cfg)

    fwd = jax.jit(lambda xx, pp: block_forward(xx, pp, cfg['kernel_size']))
    out = fwd(x, params)
    jax.block_until_ready(out)

    assert out.shape == (2, cfg['out_channels'], 8, 8, 8), out.shape
    assert out.dtype == jnp.float32
    assert bool(jnp.all(jnp.isfinite(out)))
    print("KERNEL_OK")
</pallas_src>

<mosaic_0001>
module attributes {stable_mosaic.version = 11 : i64} {
  func.func @kernel(%arg0: i32, %arg1: i32, %arg2: memref<27x32x8xbf16, #tpu.memory_space<vmem>>, %arg3: memref<8x512xbf16, #tpu.memory_space<vmem>>, %arg4: memref<8x512xbf16, #tpu.memory_space<vmem>>, %arg5: memref<1x512xf32, #tpu.memory_space<vmem>>, %arg6: memref<32x512xbf16, #tpu.memory_space<vmem>>, %arg7: memref<1x32x2xf32, #tpu.memory_space<vmem>>, %arg8: memref<8x1024xbf16, #tpu.memory_space<vmem>>) attributes {dimension_semantics = [#tpu.dimension_semantics<parallel>, #tpu.dimension_semantics<arbitrary>], iteration_bounds = array<i64: 2, 2>, scalar_prefetch = 0 : i64, scratch_operands = 1 : i64, tpu.core_type = #tpu.core_type<tc>, window_params = [{pipeline_mode = #tpu.pipeline_mode<synchronous>, transform_indices = @transform_0, window_bounds = array<i64: 27, 32, 8>}, {transform_indices = @transform_1, window_bounds = array<i64: 8, 512>}, {transform_indices = @transform_2, window_bounds = array<i64: 8, 512>}, {transform_indices = @transform_3, window_bounds = array<i64: 1, 512>}, {transform_indices = @transform_4, window_bounds = array<i64: 32, 512>}, {transform_indices = @transform_5, window_bounds = array<i64: 1, 32, 2>}]} {
    %c0 = arith.constant 0 : index
    %c0_0 = arith.constant 0 : index
    %0 = vector.load %arg3[%c0, %c0_0] : memref<8x512xbf16, #tpu.memory_space<vmem>>, vector<8x512xbf16>
    %c0_1 = arith.constant 0 : index
    %c0_2 = arith.constant 0 : index
    %1 = vector.load %arg8[%c0_1, %c0_2] : memref<8x1024xbf16, #tpu.memory_space<vmem>>, vector<8x512xbf16>
    tpu.vector_store %arg8[%c0_1, %c0_2], %0 {strides = array<i32>} : memref<8x1024xbf16, #tpu.memory_space<vmem>>, vector<8x512xbf16>,
    %c0_3 = arith.constant 0 : index
    %c0_4 = arith.constant 0 : index
    %2 = vector.load %arg4[%c0_3, %c0_4] : memref<8x512xbf16, #tpu.memory_space<vmem>>, vector<8x512xbf16>
    %c0_5 = arith.constant 0 : index
    %c512 = arith.constant 512 : index
    %3 = vector.load %arg8[%c0_5, %c512] : memref<8x1024xbf16, #tpu.memory_space<vmem>>, vector<8x512xbf16>
    tpu.vector_store %arg8[%c0_5, %c512], %2 {strides = array<i32>} : memref<8x1024xbf16, #tpu.memory_space<vmem>>, vector<8x512xbf16>,
    %cst = arith.constant 0.000000e+00 : f32
    %4 = vector.broadcast %cst : f32 to vector<32x512xf32>
    %c0_6 = arith.constant 0 : index
    %c0_7 = arith.constant 0 : index
    %5 = vector.load %arg8[%c0_6, %c0_7] : memref<8x1024xbf16, #tpu.memory_space<vmem>>, vector<8x512xbf16>
    %c0_8 = arith.constant 0 : index
    %c0_9 = arith.constant 0 : index
    %c0_10 = arith.constant 0 : index
    %6 = vector.load %arg2[%c0_8, %c0_9, %c0_10] : memref<27x32x8xbf16, #tpu.memory_space<vmem>>, vector<1x32x8xbf16>
    %7 = vector.shape_cast %6 : vector<1x32x8xbf16> to vector<32x8xbf16>
    %cst_11 = arith.constant dense<0.000000e+00> : vector<32x512xf32>
    %8 = tpu.matmul %7, %5, %cst_11 {dimension_numbers = #tpu.dot_dimension_numbers<[1], [0], [0], [1], [0, 0, 1, 1], [], []>} : vector<32x8xbf16>, vector<8x512xbf16>, vector<32x512xf32> -> vector<32x512xf32>
    %9 = arith.addf %4, %8 : vector<32x512xf32>
    %c0_12 = arith.constant 0 : index
    %c1 = arith.constant 1 : index
    %10 = vector.load %arg8[%c0_12, %c1] : memref<8x1024xbf16, #tpu.memory_space<vmem>>, vector<8x512xbf16>
    %c1_13 = arith.constant 1 : index
    %c0_14 = arith.constant 0 : index
    %c0_15 = arith.constant 0 : index
    %11 = vector.load %arg2[%c1_13, %c0_14, %c0_15] : memref<27x32x8xbf16, #tpu.memory_space<vmem>>, vector<1x32x8xbf16>
    %12 = vector.shape_cast %11 : vector<1x32x8xbf16> to vector<32x8xbf16>
    %cst_16 = arith.constant dense<0.000000e+00> : vector<32x512xf32>
    %13 = tpu.matmul %12, %10, %cst_16 {dimension_numbers = #tpu.dot_dimension_numbers<[1], [0], [0], [1], [0, 0, 1, 1], [], []>} : vector<32x8xbf16>, vector<8x512xbf16>, vector<32x512xf32> -> vector<32x512xf32>
    %14 = arith.addf %9, %13 : vector<32x512xf32>
    %c0_17 = arith.constant 0 : index
    %c2 = arith.constant 2 : index
    %15 = vector.load %arg8[%c0_17, %c2] : memref<8x1024xbf16, #tpu.memory_space<vmem>>, vector<8x512xbf16>
    %c2_18 = arith.constant 2 : index
    %c0_19 = arith.constant 0 : index
    %c0_20 = arith.constant 0 : index
    %16 = vector.load %arg2[%c2_18, %c0_19, %c0_20] : memref<27x32x8xbf16, #tpu.memory_space<vmem>>, vector<1x32x8xbf16>
    %17 = vector.shape_cast %16 : vector<1x32x8xbf16> to vector<32x8xbf16>
    %cst_21 = arith.constant dense<0.000000e+00> : vector<32x512xf32>
    %18 = tpu.matmul %17, %15, %cst_21 {dimension_numbers = #tpu.dot_dimension_numbers<[1], [0], [0], [1], [0, 0, 1, 1], [], []>} : vector<32x8xbf16>, vector<8x512xbf16>, vector<32x512xf32> -> vector<32x512xf32>
    %19 = arith.addf %14, %18 : vector<32x512xf32>
    %c0_22 = arith.constant 0 : index
    %c10 = arith.constant 10 : index
    %20 = vector.load %arg8[%c0_22, %c10] : memref<8x1024xbf16, #tpu.memory_space<vmem>>, vector<8x512xbf16>
    %c3 = arith.constant 3 : index
    %c0_23 = arith.constant 0 : index
    %c0_24 = arith.constant 0 : index
    %21 = vector.load %arg2[%c3, %c0_23, %c0_24] : memref<27x32x8xbf16, #tpu.memory_space<vmem>>, vector<1x32x8xbf16>
    %22 = vector.shape_cast %21 : vector<1x32x8xbf16> to vector<32x8xbf16>
    %cst_25 = arith.constant dense<0.000000e+00> : vector<32x512xf32>
    %23 = tpu.matmul %22, %20, %cst_25 {dimension_numbers = #tpu.dot_dimension_numbers<[1], [0], [0], [1], [0, 0, 1, 1], [], []>} : vector<32x8xbf16>, vector<8x512xbf16>, vector<32x512xf32> -> vector<32x512xf32>
    %24 = arith.addf %19, %23 : vector<32x512xf32>
    %c0_26 = arith.constant 0 : index
    %c11 = arith.constant 11 : index
    %25 = vector.load %arg8[%c0_26, %c11] : memref<8x1024xbf16, #tpu.memory_space<vmem>>, vector<8x512xbf16>
    %c4 = arith.constant 4 : index
    %c0_27 = arith.constant 0 : index
    %c0_28 = arith.constant 0 : index
    %26 = vector.load %arg2[%c4, %c0_27, %c0_28] : memref<27x32x8xbf16, #tpu.memory_space<vmem>>, vector<1x32x8xbf16>
    %27 = vector.shape_cast %26 : vector<1x32x8xbf16> to vector<32x8xbf16>
    %cst_29 = arith.constant dense<0.000000e+00> : vector<32x512xf32>
    %28 = tpu.matmul %27, %25, %cst_29 {dimension_numbers = #tpu.dot_dimension_numbers<[1], [0], [0], [1], [0, 0, 1, 1], [], []>} : vector<32x8xbf16>, vector<8x512xbf16>, vector<32x512xf32> -> vector<32x512xf32>
    %29 = arith.addf %24, %28 : vector<32x512xf32>
    %c0_30 = arith.constant 0 : index
    %c12 = arith.constant 12 : index
    %30 = vector.load %arg8[%c0_30, %c12] : memref<8x1024xbf16, #tpu.memory_space<vmem>>, vector<8x512xbf16>
    %c5 = arith.constant 5 : index
    %c0_31 = arith.constant 0 : index
    %c0_32 = arith.constant 0 : index
    %31 = vector.load %arg2[%c5, %c0_31, %c0_32] : memref<27x32x8xbf16, #tpu.memory_space<vmem>>, vector<1x32x8xbf16>
    %32 = vector.shape_cast %31 : vector<1x32x8xbf16> to vector<32x8xbf16>
    %cst_33 = arith.constant dense<0.000000e+00> : vector<32x512xf32>
    %33 = tpu.matmul %32, %30, %cst_33 {dimension_numbers = #tpu.dot_dimension_numbers<[1], [0], [0], [1], [0, 0, 1, 1], [], []>} : vector<32x8xbf16>, vector<8x512xbf16>, vector<32x512xf32> -> vector<32x512xf32>
    %34 = arith.addf %29, %33 : vector<32x512xf32>
    %c0_34 = arith.constant 0 : index
    %c20 = arith.constant 20 : index
    %35 = vector.load %arg8[%c0_34, %c20] : memref<8x1024xbf16, #tpu.memory_space<vmem>>, vector<8x512xbf16>
    %c6 = arith.constant 6 : index
    %c0_35 = arith.constant 0 : index
    %c0_36 = arith.constant 0 : index
    %36 = vector.load %arg2[%c6, %c0_35, %c0_36] : memref<27x32x8xbf16, #tpu.memory_space<vmem>>, vector<1x32x8xbf16>
    %37 = vector.shape_cast %36 : vector<1x32x8xbf16> to vector<32x8xbf16>
    %cst_37 = arith.constant dense<0.000000e+00> : vector<32x512xf32>
    %38 = tpu.matmul %37, %35, %cst_37 {dimension_numbers = #tpu.dot_dimension_numbers<[1], [0], [0], [1], [0, 0, 1, 1], [], []>} : vector<32x8xbf16>, vector<8x512xbf16>, vector<32x512xf32> -> vector<32x512xf32>
    %39 = arith.addf %34, %38 : vector<32x512xf32>
    %c0_38 = arith.constant 0 : index
    %c21 = arith.constant 21 : index
    %40 = vector.load %arg8[%c0_38, %c21] : memref<8x1024xbf16, #tpu.memory_space<vmem>>, vector<8x512xbf16>
    %c7 = arith.constant 7 : index
    %c0_39 = arith.constant 0 : index
    %c0_40 = arith.constant 0 : index
    %41 = vector.load %arg2[%c7, %c0_39, %c0_40] : memref<27x32x8xbf16, #tpu.memory_space<vmem>>, vector<1x32x8xbf16>
    %42 = vector.shape_cast %41 : vector<1x32x8xbf16> to vector<32x8xbf16>
    %cst_41 = arith.constant dense<0.000000e+00> : vector<32x512xf32>
    %43 = tpu.matmul %42, %40, %cst_41 {dimension_numbers = #tpu.dot_dimension_numbers<[1], [0], [0], [1], [0, 0, 1, 1], [], []>} : vector<32x8xbf16>, vector<8x512xbf16>, vector<32x512xf32> -> vector<32x512xf32>
    %44 = arith.addf %39, %43 : vector<32x512xf32>
    %c0_42 = arith.constant 0 : index
    %c22 = arith.constant 22 : index
    %45 = vector.load %arg8[%c0_42, %c22] : memref<8x1024xbf16, #tpu.memory_space<vmem>>, vector<8x512xbf16>
    %c8 = arith.constant 8 : index
    %c0_43 = arith.constant 0 : index
    %c0_44 = arith.constant 0 : index
    %46 = vector.load %arg2[%c8, %c0_43, %c0_44] : memref<27x32x8xbf16, #tpu.memory_space<vmem>>, vector<1x32x8xbf16>
    %47 = vector.shape_cast %46 : vector<1x32x8xbf16> to vector<32x8xbf16>
    %cst_45 = arith.constant dense<0.000000e+00> : vector<32x512xf32>
    %48 = tpu.matmul %47, %45, %cst_45 {dimension_numbers = #tpu.dot_dimension_numbers<[1], [0], [0], [1], [0, 0, 1, 1], [], []>} : vector<32x8xbf16>, vector<8x512xbf16>, vector<32x512xf32> -> vector<32x512xf32>
    %49 = arith.addf %44, %48 : vector<32x512xf32>
    %c0_46 = arith.constant 0 : index
    %c100 = arith.constant 100 : index
    %50 = vector.load %arg8[%c0_46, %c100] : memref<8x1024xbf16, #tpu.memory_space<vmem>>, vector<8x512xbf16>
    %c9 = arith.constant 9 : index
    %c0_47 = arith.constant 0 : index
    %c0_48 = arith.constant 0 : index
    %51 = vector.load %arg2[%c9, %c0_47, %c0_48] : memref<27x32x8xbf16, #tpu.memory_space<vmem>>, vector<1x32x8xbf16>
    %52 = vector.shape_cast %51 : vector<1x32x8xbf16> to vector<32x8xbf16>
    %cst_49 = arith.constant dense<0.000000e+00> : vector<32x512xf32>
    %53 = tpu.matmul %52, %50, %cst_49 {dimension_numbers = #tpu.dot_dimension_numbers<[1], [0], [0], [1], [0, 0, 1, 1], [], []>} : vector<32x8xbf16>, vector<8x512xbf16>, vector<32x512xf32> -> vector<32x512xf32>
    %54 = arith.addf %49, %53 : vector<32x512xf32>
    %c0_50 = arith.constant 0 : index
    %c101 = arith.constant 101 : index
    %55 = vector.load %arg8[%c0_50, %c101] : memref<8x1024xbf16, #tpu.memory_space<vmem>>, vector<8x512xbf16>
    %c10_51 = arith.constant 10 : index
    %c0_52 = arith.constant 0 : index
    %c0_53 = arith.constant 0 : index
    %56 = vector.load %arg2[%c10_51, %c0_52, %c0_53] : memref<27x32x8xbf16, #tpu.memory_space<vmem>>, vector<1x32x8xbf16>
    %57 = vector.shape_cast %56 : vector<1x32x8xbf16> to vector<32x8xbf16>
    %cst_54 = arith.constant dense<0.000000e+00> : vector<32x512xf32>
    %58 = tpu.matmul %57, %55, %cst_54 {dimension_numbers = #tpu.dot_dimension_numbers<[1], [0], [0], [1], [0, 0, 1, 1], [], []>} : vector<32x8xbf16>, vector<8x512xbf16>, vector<32x512xf32> -> vector<32x512xf32>
    %59 = arith.addf %54, %58 : vector<32x512xf32>
    %c0_55 = arith.constant 0 : index
    %c102 = arith.constant 102 : index
    %60 = vector.load %arg8[%c0_55, %c102] : memref<8x1024xbf16, #tpu.memory_space<vmem>>, vector<8x512xbf16>
    %c11_56 = arith.constant 11 : index
    %c0_57 = arith.constant 0 : index
    %c0_58 = arith.constant 0 : index
    %61 = vector.load %arg2[%c11_56, %c0_57, %c0_58] : memref<27x32x8xbf16, #tpu.memory_space<vmem>>, vector<1x32x8xbf16>
    %62 = vector.shape_cast %61 : vector<1x32x8xbf16> to vector<32x8xbf16>
    %cst_59 = arith.constant dense<0.000000e+00> : vector<32x512xf32>
    %63 = tpu.matmul %62, %60, %cst_59 {dimension_numbers = #tpu.dot_dimension_numbers<[1], [0], [0], [1], [0, 0, 1, 1], [], []>} : vector<32x8xbf16>, vector<8x512xbf16>, vector<32x512xf32> -> vector<32x512xf32>
    %64 = arith.addf %59, %63 : vector<32x512xf32>
    %c0_60 = arith.constant 0 : index
    %c110 = arith.constant 110 : index
    %65 = vector.load %arg8[%c0_60, %c110] : memref<8x1024xbf16, #tpu.memory_space<vmem>>, vector<8x512xbf16>
    %c12_61 = arith.constant 12 : index
    %c0_62 = arith.constant 0 : index
    %c0_63 = arith.constant 0 : index
    %66 = vector.load %arg2[%c12_61, %c0_62, %c0_63] : memref<27x32x8xbf16, #tpu.memory_space<vmem>>, vector<1x32x8xbf16>
    %67 = vector.shape_cast %66 : vector<1x32x8xbf16> to vector<32x8xbf16>
    %cst_64 = arith.constant dense<0.000000e+00> : vector<32x512xf32>
    %68 = tpu.matmul %67, %65, %cst_64 {dimension_numbers = #tpu.dot_dimension_numbers<[1], [0], [0], [1], [0, 0, 1, 1], [], []>} : vector<32x8xbf16>, vector<8x512xbf16>, vector<32x512xf32> -> vector<32x512xf32>
    %69 = arith.addf %64, %68 : vector<32x512xf32>
    %c0_65 = arith.constant 0 : index
    %c111 = arith.constant 111 : index
    %70 = vector.load %arg8[%c0_65, %c111] : memref<8x1024xbf16, #tpu.memory_space<vmem>>, vector<8x512xbf16>
    %c13 = arith.constant 13 : index
    %c0_66 = arith.constant 0 : index
    %c0_67 = arith.constant 0 : index
    %71 = vector.load %arg2[%c13, %c0_66, %c0_67] : memref<27x32x8xbf16, #tpu.memory_space<vmem>>, vector<1x32x8xbf16>
    %72 = vector.shape_cast %71 : vector<1x32x8xbf16> to vector<32x8xbf16>
    %cst_68 = arith.constant dense<0.000000e+00> : vector<32x512xf32>
    %73 = tpu.matmul %72, %70, %cst_68 {dimension_numbers = #tpu.dot_dimension_numbers<[1], [0], [0], [1], [0, 0, 1, 1], [], []>} : vector<32x8xbf16>, vector<8x512xbf16>, vector<32x512xf32> -> vector<32x512xf32>
    %74 = arith.addf %69, %73 : vector<32x512xf32>
    %c0_69 = arith.constant 0 : index
    %c112 = arith.constant 112 : index
    %75 = vector.load %arg8[%c0_69, %c112] : memref<8x1024xbf16, #tpu.memory_space<vmem>>, vector<8x512xbf16>
    %c14 = arith.constant 14 : index
    %c0_70 = arith.constant 0 : index
    %c0_71 = arith.constant 0 : index
    %76 = vector.load %arg2[%c14, %c0_70, %c0_71] : memref<27x32x8xbf16, #tpu.memory_space<vmem>>, vector<1x32x8xbf16>
    %77 = vector.shape_cast %76 : vector<1x32x8xbf16> to vector<32x8xbf16>
    %cst_72 = arith.constant dense<0.000000e+00> : vector<32x512xf32>
    %78 = tpu.matmul %77, %75, %cst_72 {dimension_numbers = #tpu.dot_dimension_numbers<[1], [0], [0], [1], [0, 0, 1, 1], [], []>} : vector<32x8xbf16>, vector<8x512xbf16>, vector<32x512xf32> -> vector<32x512xf32>
    %79 = arith.addf %74, %78 : vector<32x512xf32>
    %c0_73 = arith.constant 0 : index
    %c120 = arith.constant 120 : index
    %80 = vector.load %arg8[%c0_73, %c120] : memref<8x1024xbf16, #tpu.memory_space<vmem>>, vector<8x512xbf16>
    %c15 = arith.constant 15 : index
    %c0_74 = arith.constant 0 : index
    %c0_75 = arith.constant 0 : index
    %81 = vector.load %arg2[%c15, %c0_74, %c0_75] : memref<27x32x8xbf16, #tpu.memory_space<vmem>>, vector<1x32x8xbf16>
    %82 = vector.shape_cast %81 : vector<1x32x8xbf16> to vector<32x8xbf16>
    %cst_76 = arith.constant dense<0.000000e+00> : vector<32x512xf32>
    %83 = tpu.matmul %82, %80, %cst_76 {dimension_numbers = #tpu.dot_dimension_numbers<[1], [0], [0], [1], [0, 0, 1, 1], [], []>} : vector<32x8xbf16>, vector<8x512xbf16>, vector<32x512xf32> -> vector<32x512xf32>
    %84 = arith.addf %79, %83 : vector<32x512xf32>
    %c0_77 = arith.constant 0 : index
    %c121 = arith.constant 121 : index
    %85 = vector.load %arg8[%c0_77, %c121] : memref<8x1024xbf16, #tpu.memory_space<vmem>>, vector<8x512xbf16>
    %c16 = arith.constant 16 : index
    %c0_78 = arith.constant 0 : index
    %c0_79 = arith.constant 0 : index
    %86 = vector.load %arg2[%c16, %c0_78, %c0_79] : memref<27x32x8xbf16, #tpu.memory_space<vmem>>, vector<1x32x8xbf16>
    %87 = vector.shape_cast %86 : vector<1x32x8xbf16> to vector<32x8xbf16>
    %cst_80 = arith.constant dense<0.000000e+00> : vector<32x512xf32>
    %88 = tpu.matmul %87, %85, %cst_80 {dimension_numbers = #tpu.dot_dimension_numbers<[1], [0], [0], [1], [0, 0, 1, 1], [], []>} : vector<32x8xbf16>, vector<8x512xbf16>, vector<32x512xf32> -> vector<32x512xf32>
    %89 = arith.addf %84, %88 : vector<32x512xf32>
    %c0_81 = arith.constant 0 : index
    %c122 = arith.constant 122 : index
    %90 = vector.load %arg8[%c0_81, %c122] : memref<8x1024xbf16, #tpu.memory_space<vmem>>, vector<8x512xbf16>
    %c17 = arith.constant 17 : index
    %c0_82 = arith.constant 0 : index
    %c0_83 = arith.constant 0 : index
    %91 = vector.load %arg2[%c17, %c0_82, %c0_83] : memref<27x32x8xbf16, #tpu.memory_space<vmem>>, vector<1x32x8xbf16>
    %92 = vector.shape_cast %91 : vector<1x32x8xbf16> to vector<32x8xbf16>
    %cst_84 = arith.constant dense<0.000000e+00> : vector<32x512xf32>
    %93 = tpu.matmul %92, %90, %cst_84 {dimension_numbers = #tpu.dot_dimension_numbers<[1], [0], [0], [1], [0, 0, 1, 1], [], []>} : vector<32x8xbf16>, vector<8x512xbf16>, vector<32x512xf32> -> vector<32x512xf32>
    %94 = arith.addf %89, %93 : vector<32x512xf32>
    %c0_85 = arith.constant 0 : index
    %c200 = arith.constant 200 : index
    %95 = vector.load %arg8[%c0_85, %c200] : memref<8x1024xbf16, #tpu.memory_space<vmem>>, vector<8x512xbf16>
    %c18 = arith.constant 18 : index
    %c0_86 = arith.constant 0 : index
    %c0_87 = arith.constant 0 : index
    %96 = vector.load %arg2[%c18, %c0_86, %c0_87] : memref<27x32x8xbf16, #tpu.memory_space<vmem>>, vector<1x32x8xbf16>
    %97 = vector.shape_cast %96 : vector<1x32x8xbf16> to vector<32x8xbf16>
    %cst_88 = arith.constant dense<0.000000e+00> : vector<32x512xf32>
    %98 = tpu.matmul %97, %95, %cst_88 {dimension_numbers = #tpu.dot_dimension_numbers<[1], [0], [0], [1], [0, 0, 1, 1], [], []>} : vector<32x8xbf16>, vector<8x512xbf16>, vector<32x512xf32> -> vector<32x512xf32>
    %99 = arith.addf %94, %98 : vector<32x512xf32>
    %c0_89 = arith.constant 0 : index
    %c201 = arith.constant 201 : index
    %100 = vector.load %arg8[%c0_89, %c201] : memref<8x1024xbf16, #tpu.memory_space<vmem>>, vector<8x512xbf16>
    %c19 = arith.constant 19 : index
    %c0_90 = arith.constant 0 : index
    %c0_91 = arith.constant 0 : index
    %101 = vector.load %arg2[%c19, %c0_90, %c0_91] : memref<27x32x8xbf16, #tpu.memory_space<vmem>>, vector<1x32x8xbf16>
    %102 = vector.shape_cast %101 : vector<1x32x8xbf16> to vector<32x8xbf16>
    %cst_92 = arith.constant dense<0.000000e+00> : vector<32x512xf32>
    %103 = tpu.matmul %102, %100, %cst_92 {dimension_numbers = #tpu.dot_dimension_numbers<[1], [0], [0], [1], [0, 0, 1, 1], [], []>} : vector<32x8xbf16>, vector<8x512xbf16>, vector<32x512xf32> -> vector<32x512xf32>
    %104 = arith.addf %99, %103 : vector<32x512xf32>
    %c0_93 = arith.constant 0 : index
    %c202 = arith.constant 202 : index
    %105 = vector.load %arg8[%c0_93, %c202] : memref<8x1024xbf16, #tpu.memory_space<vmem>>, vector<8x512xbf16>
    %c20_94 = arith.constant 20 : index
    %c0_95 = arith.constant 0 : index
    %c0_96 = arith.constant 0 : index
    %106 = vector.load %arg2[%c20_94, %c0_95, %c0_96] : memref<27x32x8xbf16, #tpu.memory_space<vmem>>, vector<1x32x8xbf16>
    %107 = vector.shape_cast %106 : vector<1x32x8xbf16> to vector<32x8xbf16>
    %cst_97 = arith.constant dense<0.000000e+00> : vector<32x512xf32>
    %108 = tpu.matmul %107, %105, %cst_97 {dimension_numbers = #tpu.dot_dimension_numbers<[1], [0], [0], [1], [0, 0, 1, 1], [], []>} : vector<32x8xbf16>, vector<8x512xbf16>, vector<32x512xf32> -> vector<32x512xf32>
    %109 = arith.addf %104, %108 : vector<32x512xf32>
    %c0_98 = arith.constant 0 : index
    %c210 = arith.constant 210 : index
    %110 = vector.load %arg8[%c0_98, %c210] : memref<8x1024xbf16, #tpu.memory_space<vmem>>, vector<8x512xbf16>
    %c21_99 = arith.constant 21 : index
    %c0_100 = arith.constant 0 : index
    %c0_101 = arith.constant 0 : index
    %111 = vector.load %arg2[%c21_99, %c0_100, %c0_101] : memref<27x32x8xbf16, #tpu.memory_space<vmem>>, vector<1x32x8xbf16>
    %112 = vector.shape_cast %111 : vector<1x32x8xbf16> to vector<32x8xbf16>
    %cst_102 = arith.constant dense<0.000000e+00> : vector<32x512xf32>
    %113 = tpu.matmul %112, %110, %cst_102 {dimension_numbers = #tpu.dot_dimension_numbers<[1], [0], [0], [1], [0, 0, 1, 1], [], []>} : vector<32x8xbf16>, vector<8x512xbf16>, vector<32x512xf32> -> vector<32x512xf32>
    %114 = arith.addf %109, %113 : vector<32x512xf32>
    %c0_103 = arith.constant 0 : index
    %c211 = arith.constant 211 : index
    %115 = vector.load %arg8[%c0_103, %c211] : memref<8x1024xbf16, #tpu.memory_space<vmem>>, vector<8x512xbf16>
    %c22_104 = arith.constant 22 : index
    %c0_105 = arith.constant 0 : index
    %c0_106 = arith.constant 0 : index
    %116 = vector.load %arg2[%c22_104, %c0_105, %c0_106] : memref<27x32x8xbf16, #tpu.memory_space<vmem>>, vector<1x32x8xbf16>
    %117 = vector.shape_cast %116 : vector<1x32x8xbf16> to vector<32x8xbf16>
    %cst_107 = arith.constant dense<0.000000e+00> : vector<32x512xf32>
    %118 = tpu.matmul %117, %115, %cst_107 {dimension_numbers = #tpu.dot_dimension_numbers<[1], [0], [0], [1], [0, 0, 1, 1], [], []>} : vector<32x8xbf16>, vector<8x512xbf16>, vector<32x512xf32> -> vector<32x512xf32>
    %119 = arith.addf %114, %118 : vector<32x512xf32>
    %c0_108 = arith.constant 0 : index
    %c212 = arith.constant 212 : index
    %120 = vector.load %arg8[%c0_108, %c212] : memref<8x1024xbf16, #tpu.memory_space<vmem>>, vector<8x512xbf16>
    %c23 = arith.constant 23 : index
    %c0_109 = arith.constant 0 : index
    %c0_110 = arith.constant 0 : index
    %121 = vector.load %arg2[%c23, %c0_109, %c0_110] : memref<27x32x8xbf16, #tpu.memory_space<vmem>>, vector<1x32x8xbf16>
    %122 = vector.shape_cast %121 : vector<1x32x8xbf16> to vector<32x8xbf16>
    %cst_111 = arith.constant dense<0.000000e+00> : vector<32x512xf32>
    %123 = tpu.matmul %122, %120, %cst_111 {dimension_numbers = #tpu.dot_dimension_numbers<[1], [0], [0], [1], [0, 0, 1, 1], [], []>} : vector<32x8xbf16>, vector<8x512xbf16>, vector<32x512xf32> -> vector<32x512xf32>
    %124 = arith.addf %119, %123 : vector<32x512xf32>
    %c0_112 = arith.constant 0 : index
    %c220 = arith.constant 220 : index
    %125 = vector.load %arg8[%c0_112, %c220] : memref<8x1024xbf16, #tpu.memory_space<vmem>>, vector<8x512xbf16>
    %c24 = arith.constant 24 : index
    %c0_113 = arith.constant 0 : index
    %c0_114 = arith.constant 0 : index
    %126 = vector.load %arg2[%c24, %c0_113, %c0_114] : memref<27x32x8xbf16, #tpu.memory_space<vmem>>, vector<1x32x8xbf16>
    %127 = vector.shape_cast %126 : vector<1x32x8xbf16> to vector<32x8xbf16>
    %cst_115 = arith.constant dense<0.000000e+00> : vector<32x512xf32>
    %128 = tpu.matmul %127, %125, %cst_115 {dimension_numbers = #tpu.dot_dimension_numbers<[1], [0], [0], [1], [0, 0, 1, 1], [], []>} : vector<32x8xbf16>, vector<8x512xbf16>, vector<32x512xf32> -> vector<32x512xf32>
    %129 = arith.addf %124, %128 : vector<32x512xf32>
    %c0_116 = arith.constant 0 : index
    %c221 = arith.constant 221 : index
    %130 = vector.load %arg8[%c0_116, %c221] : memref<8x1024xbf16, #tpu.memory_space<vmem>>, vector<8x512xbf16>
    %c25 = arith.constant 25 : index
    %c0_117 = arith.constant 0 : index
    %c0_118 = arith.constant 0 : index
    %131 = vector.load %arg2[%c25, %c0_117, %c0_118] : memref<27x32x8xbf16, #tpu.memory_space<vmem>>, vector<1x32x8xbf16>
    %132 = vector.shape_cast %131 : vector<1x32x8xbf16> to vector<32x8xbf16>
    %cst_119 = arith.constant dense<0.000000e+00> : vector<32x512xf32>
    %133 = tpu.matmul %132, %130, %cst_119 {dimension_numbers = #tpu.dot_dimension_numbers<[1], [0], [0], [1], [0, 0, 1, 1], [], []>} : vector<32x8xbf16>, vector<8x512xbf16>, vector<32x512xf32> -> vector<32x512xf32>
    %134 = arith.addf %129, %133 : vector<32x512xf32>
    %c0_120 = arith.constant 0 : index
    %c222 = arith.constant 222 : index
    %135 = vector.load %arg8[%c0_120, %c222] : memref<8x1024xbf16, #tpu.memory_space<vmem>>, vector<8x512xbf16>
    %c26 = arith.constant 26 : index
    %c0_121 = arith.constant 0 : index
    %c0_122 = arith.constant 0 : index
    %136 = vector.load %arg2[%c26, %c0_121, %c0_122] : memref<27x32x8xbf16, #tpu.memory_space<vmem>>, vector<1x32x8xbf16>
    %137 = vector.shape_cast %136 : vector<1x32x8xbf16> to vector<32x8xbf16>
    %cst_123 = arith.constant dense<0.000000e+00> : vector<32x512xf32>
    %138 = tpu.matmul %137, %135, %cst_123 {dimension_numbers = #tpu.dot_dimension_numbers<[1], [0], [0], [1], [0, 0, 1, 1], [], []>} : vector<32x8xbf16>, vector<8x512xbf16>, vector<32x512xf32> -> vector<32x512xf32>
    %139 = arith.addf %134, %138 : vector<32x512xf32>
    %140 = arith.truncf %139 : vector<32x512xf32> to vector<32x512xbf16>
    %c0_124 = arith.constant 0 : index
    %c0_125 = arith.constant 0 : index
    %141 = vector.load %arg6[%c0_124, %c0_125] : memref<32x512xbf16, #tpu.memory_space<vmem>>, vector<32x512xbf16>
    tpu.vector_store %arg6[%c0_124, %c0_125], %140 {strides = array<i32>} : memref<32x512xbf16, #tpu.memory_space<vmem>>, vector<32x512xbf16>,
    %c0_126 = arith.constant 0 : index
    %c0_127 = arith.constant 0 : index
    %142 = vector.load %arg5[%c0_126, %c0_127] : memref<1x512xf32, #tpu.memory_space<vmem>>, vector<1x512xf32>
    %143 = vector.broadcast %142 : vector<1x512xf32> to vector<32x512xf32>
    %144 = arith.mulf %139, %143 : vector<32x512xf32>
    %cst_128 = arith.constant dense<0.000000e+00> : vector<32xf32>
    %145 = vector.multi_reduction <add>, %144, %cst_128 [1] : vector<32x512xf32> to vector<32xf32>
    %146 = vector.shape_cast %145 : vector<32xf32> to vector<32x1xf32>
    %147 = arith.mulf %144, %139 : vector<32x512xf32>
    %cst_129 = arith.constant dense<0.000000e+00> : vector<32xf32>
    %148 = vector.multi_reduction <add>, %147, %cst_129 [1] : vector<32x512xf32> to vector<32xf32>
    %149 = vector.shape_cast %148 : vector<32xf32> to vector<32x1xf32>
    %150 = tpu.concatenate %146, %149 in 1 : vector<32x1xf32>, vector<32x1xf32> -> vector<32x2xf32>
    %151 = vector.shape_cast %150 : vector<32x2xf32> to vector<1x32x2xf32>
    %c0_i32 = arith.constant 0 : i32
    %152 = arith.cmpi eq, %arg1, %c0_i32 : i32
    %153 = arith.extui %152 : i1 to i32
    %c0_i32_130 = arith.constant 0 : i32
    %154 = arith.cmpi ne, %153, %c0_i32_130 : i32
    scf.if %154 {
      %cst_137 = arith.constant 0.000000e+00 : f32
      %158 = vector.broadcast %cst_137 : f32 to vector<1x32x2xf32>
      %c0_138 = arith.constant 0 : index
      %c0_139 = arith.constant 0 : index
      %c0_140 = arith.constant 0 : index
      %159 = vector.load %arg7[%c0_138, %c0_139, %c0_140] : memref<1x32x2xf32, #tpu.memory_space<vmem>>, vector<1x32x2xf32>
      tpu.vector_store %arg7[%c0_138, %c0_139, %c0_140], %158 {strides = array<i32>} : memref<1x32x2xf32, #tpu.memory_space<vmem>>, vector<1x32x2xf32>,
    } else {
    }
    %c0_131 = arith.constant 0 : index
    %c0_132 = arith.constant 0 : index
    %c0_133 = arith.constant 0 : index
    %155 = vector.load %arg7[%c0_131, %c0_132, %c0_133] : memref<1x32x2xf32, #tpu.memory_space<vmem>>, vector<1x32x2xf32>
    %156 = arith.addf %155, %151 : vector<1x32x2xf32>
    %c0_134 = arith.constant 0 : index
    %c0_135 = arith.constant 0 : index
    %c0_136 = arith.constant 0 : index
    %157 = vector.load %arg7[%c0_134, %c0_135, %c0_136] : memref<1x32x2xf32, #tpu.memory_space<vmem>>, vector<1x32x2xf32>
    tpu.vector_store %arg7[%c0_134, %c0_135, %c0_136], %156 {strides = array<i32>} : memref<1x32x2xf32, #tpu.memory_space<vmem>>, vector<1x32x2xf32>,
    return
  }
  func.func @transform_0(%arg0: i32, %arg1: i32) -> (i32, i32, i32) {
    %c0_i32 = arith.constant 0 : i32
    %c0_i32_0 = arith.constant 0 : i32
    %c0_i32_1 = arith.constant 0 : i32
    %c0_i32_2 = arith.constant 0 : i32
    return %c0_i32, %c0_i32_0, %c0_i32_1 : i32, i32, i32
  }
  func.func @transform_1(%arg0: i32, %arg1: i32) -> (i32, i32) {
    %c3_i32 = arith.constant 3 : i32
    %0 = arith.muli %arg0, %c3_i32 : i32
    %1 = arith.addi %0, %arg1 : i32
    %c0_i32 = arith.constant 0 : i32
    %c0_i32_0 = arith.constant 0 : i32
    return %c0_i32, %1 : i32, i32
  }
  func.func @transform_2(%arg0: i32, %arg1: i32) -> (i32, i32) {
    %c3_i32 = arith.constant 3 : i32
    %0 = arith.muli %arg0, %c3_i32 : i32
    %1 = arith.addi %0, %arg1 : i32
    %c1_i32 = arith.constant 1 : i32
    %2 = arith.addi %1, %c1_i32 : i32
    %c0_i32 = arith.constant 0 : i32
    %c0_i32_0 = arith.constant 0 : i32
    return %c0_i32, %2 : i32, i32
  }
  func.func @transform_3(%arg0: i32, %arg1: i32) -> (i32, i32) {
    %c0_i32 = arith.constant 0 : i32
    %c0_i32_0 = arith.constant 0 : i32
    return %c0_i32, %arg1 : i32, i32
  }
  func.func @transform_4(%arg0: i32, %arg1: i32) -> (i32, i32) {
    %c2_i32 = arith.constant 2 : i32
    %0 = arith.muli %arg0, %c2_i32 : i32
    %1 = arith.addi %0, %arg1 : i32
    %c0_i32 = arith.constant 0 : i32
    %c0_i32_0 = arith.constant 0 : i32
    return %c0_i32, %1 : i32, i32
  }
  func.func @transform_5(%arg0: i32, %arg1: i32) -> (i32, i32, i32) {
    %c0_i32 = arith.constant 0 : i32
    %c0_i32_0 = arith.constant 0 : i32
    %c0_i32_1 = arith.constant 0 : i32
    return %arg0, %c0_i32, %c0_i32_0 : i32, i32, i32
  }
}

module attributes {stable_mosaic.version = 11 : i64} {
  func.func @_epilogue_kernel(%arg0: i32, %arg1: i32, %arg2: memref<32x512xbf16, #tpu.memory_space<vmem>>, %arg3: memref<1x32x1xf32, #tpu.memory_space<vmem>>, %arg4: memref<1x32x1xf32, #tpu.memory_space<vmem>>, %arg5: memref<32x1xf32, #tpu.memory_space<vmem>>, %arg6: memref<16x32xf32, #tpu.memory_space<vmem>>, %arg7: memref<16x512xf32, #tpu.memory_space<vmem>>) attributes {dimension_semantics = [#tpu.dimension_semantics<parallel>, #tpu.dimension_semantics<parallel>], iteration_bounds = array<i64: 2, 2>, scalar_prefetch = 0 : i64, scratch_operands = 0 : i64, tpu.core_type = #tpu.core_type<tc>, window_params = [{transform_indices = @transform_0, window_bounds = array<i64: 32, 512>}, {transform_indices = @transform_1, window_bounds = array<i64: 1, 32, 1>}, {transform_indices = @transform_2, window_bounds = array<i64: 1, 32, 1>}, {pipeline_mode = #tpu.pipeline_mode<synchronous>, transform_indices = @transform_3, window_bounds = array<i64: 32, 1>}, {pipeline_mode = #tpu.pipeline_mode<synchronous>, transform_indices = @transform_4, window_bounds = array<i64: 16, 32>}, {transform_indices = @transform_5, window_bounds = array<i64: 16, 512>}]} {
    %c0 = arith.constant 0 : index
    %c0_0 = arith.constant 0 : index
    %0 = vector.load %arg2[%c0, %c0_0] : memref<32x512xbf16, #tpu.memory_space<vmem>>, vector<32x512xbf16>
    %1 = arith.extf %0 : vector<32x512xbf16> to vector<32x512xf32>
    %c0_1 = arith.constant 0 : index
    %c0_2 = arith.constant 0 : index
    %c0_3 = arith.constant 0 : index
    %2 = vector.load %arg3[%c0_1, %c0_2, %c0_3] : memref<1x32x1xf32, #tpu.memory_space<vmem>>, vector<1x32x1xf32>
    %3 = vector.shape_cast %2 : vector<1x32x1xf32> to vector<32x1xf32>
    %4 = vector.broadcast %3 : vector<32x1xf32> to vector<32x512xf32>
    %5 = arith.mulf %1, %4 : vector<32x512xf32>
    %c0_4 = arith.constant 0 : index
    %c0_5 = arith.constant 0 : index
    %c0_6 = arith.constant 0 : index
    %6 = vector.load %arg4[%c0_4, %c0_5, %c0_6] : memref<1x32x1xf32, #tpu.memory_space<vmem>>, vector<1x32x1xf32>
    %7 = vector.shape_cast %6 : vector<1x32x1xf32> to vector<32x1xf32>
    %8 = vector.broadcast %7 : vector<32x1xf32> to vector<32x512xf32>
    %9 = arith.addf %5, %8 : vector<32x512xf32>
    %cst = arith.constant 0.000000e+00 : f32
    %10 = vector.broadcast %cst : f32 to vector<32x512xf32>
    %11 = arith.cmpf oge, %9, %10 : vector<32x512xf32>
    %c0_7 = arith.constant 0 : index
    %c0_8 = arith.constant 0 : index
    %12 = vector.load %arg5[%c0_7, %c0_8] : memref<32x1xf32, #tpu.memory_space<vmem>>, vector<32x1xf32>
    %13 = vector.broadcast %12 : vector<32x1xf32> to vector<32x512xf32>
    %14 = arith.mulf %13, %9 : vector<32x512xf32>
    %15 = arith.select %11, %9, %14 : vector<32x512xi1>, vector<32x512xf32>
    %c0_9 = arith.constant 0 : index
    %c0_10 = arith.constant 0 : index
    %16 = vector.load %arg6[%c0_9, %c0_10] : memref<16x32xf32, #tpu.memory_space<vmem>>, vector<16x32xf32>
    %cst_11 = arith.constant dense<0.000000e+00> : vector<16x512xf32>
    %17 = tpu.matmul %16, %15, %cst_11 {dimension_numbers = #tpu.dot_dimension_numbers<[1], [0], [0], [1], [0, 0, 1, 1], [], []>} : vector<16x32xf32>, vector<32x512xf32>, vector<16x512xf32> -> vector<16x512xf32>
    %c0_12 = arith.constant 0 : index
    %c0_13 = arith.constant 0 : index
    %18 = vector.load %arg7[%c0_12, %c0_13] : memref<16x512xf32, #tpu.memory_space<vmem>>, vector<16x512xf32>
    tpu.vector_store %arg7[%c0_12, %c0_13], %17 {strides = array<i32>} : memref<16x512xf32, #tpu.memory_space<vmem>>, vector<16x512xf32>,
    return
  }
  func.func @transform_0(%arg0: i32, %arg1: i32) -> (i32, i32) {
    %c2_i32 = arith.constant 2 : i32
    %0 = arith.muli %arg0, %c2_i32 : i32
    %1 = arith.addi %0, %arg1 : i32
    %c0_i32 = arith.constant 0 : i32
    %c0_i32_0 = arith.constant 0 : i32
    return %c0_i32, %1 : i32, i32
  }
  func.func @transform_1(%arg0: i32, %arg1: i32) -> (i32, i32, i32) {
    %c0_i32 = arith.constant 0 : i32
    %c0_i32_0 = arith.constant 0 : i32
    %c0_i32_1 = arith.constant 0 : i32
    return %arg0, %c0_i32, %c0_i32_0 : i32, i32, i32
  }
  func.func @transform_2(%arg0: i32, %arg1: i32) -> (i32, i32, i32) {
    %c0_i32 = arith.constant 0 : i32
    %c0_i32_0 = arith.constant 0 : i32
    %c0_i32_1 = arith.constant 0 : i32
    return %arg0, %c0_i32, %c0_i32_0 : i32, i32, i32
  }
  func.func @transform_3(%arg0: i32, %arg1: i32) -> (i32, i32) {
    %c0_i32 = arith.constant 0 : i32
    %c0_i32_0 = arith.constant 0 : i32
    %c0_i32_1 = arith.constant 0 : i32
    return %c0_i32, %c0_i32_0 : i32, i32
  }
  func.func @transform_4(%arg0: i32, %arg1: i32) -> (i32, i32) {
    %c0_i32 = arith.constant 0 : i32
    %c0_i32_0 = arith.constant 0 : i32
    %c0_i32_1 = arith.constant 0 : i32
    return %c0_i32, %c0_i32_0 : i32, i32
  }
  func.func @transform_5(%arg0: i32, %arg1: i32) -> (i32, i32) {
    %c2_i32 = arith.constant 2 : i32
    %0 = arith.muli %arg0, %c2_i32 : i32
    %1 = arith.addi %0, %arg1 : i32
    %c0_i32 = arith.constant 0 : i32
    %c0_i32_0 = arith.constant 0 : i32
    return %c0_i32, %1 : i32, i32
  }
}

module attributes {stable_mosaic.version = 11 : i64} {
  func.func @kernel(%arg0: i32, %arg1: i32, %arg2: memref<27x32x16xbf16, #tpu.memory_space<vmem>>, %arg3: memref<16x512xbf16, #tpu.memory_space<vmem>>, %arg4: memref<16x512xbf16, #tpu.memory_space<vmem>>, %arg5: memref<1x512xf32, #tpu.memory_space<vmem>>, %arg6: memref<32x512xbf16, #tpu.memory_space<vmem>>, %arg7: memref<1x32x2xf32, #tpu.memory_space<vmem>>, %arg8: memref<16x1024xbf16, #tpu.memory_space<vmem>>) attributes {dimension_semantics = [#tpu.dimension_semantics<parallel>, #tpu.dimension_semantics<arbitrary>], iteration_bounds = array<i64: 2, 2>, scalar_prefetch = 0 : i64, scratch_operands = 1 : i64, tpu.core_type = #tpu.core_type<tc>, window_params = [{pipeline_mode = #tpu.pipeline_mode<synchronous>, transform_indices = @transform_0, window_bounds = array<i64: 27, 32, 16>}, {transform_indices = @transform_1, window_bounds = array<i64: 16, 512>}, {transform_indices = @transform_2, window_bounds = array<i64: 16, 512>}, {transform_indices = @transform_3, window_bounds = array<i64: 1, 512>}, {transform_indices = @transform_4, window_bounds = array<i64: 32, 512>}, {transform_indices = @transform_5, window_bounds = array<i64: 1, 32, 2>}]} {
    %c0 = arith.constant 0 : index
    %c0_0 = arith.constant 0 : index
    %0 = vector.load %arg3[%c0, %c0_0] : memref<16x512xbf16, #tpu.memory_space<vmem>>, vector<16x512xbf16>
    %c0_1 = arith.constant 0 : index
    %c0_2 = arith.constant 0 : index
    %1 = vector.load %arg8[%c0_1, %c0_2] : memref<16x1024xbf16, #tpu.memory_space<vmem>>, vector<16x512xbf16>
    tpu.vector_store %arg8[%c0_1, %c0_2], %0 {strides = array<i32>} : memref<16x1024xbf16, #tpu.memory_space<vmem>>, vector<16x512xbf16>,
    %c0_3 = arith.constant 0 : index
    %c0_4 = arith.constant 0 : index
    %2 = vector.load %arg4[%c0_3, %c0_4] : memref<16x512xbf16, #tpu.memory_space<vmem>>, vector<16x512xbf16>
    %c0_5 = arith.constant 0 : index
    %c512 = arith.constant 512 : index
    %3 = vector.load %arg8[%c0_5, %c512] : memref<16x1024xbf16, #tpu.memory_space<vmem>>, vector<16x512xbf16>
    tpu.vector_store %arg8[%c0_5, %c512], %2 {strides = array<i32>} : memref<16x1024xbf16, #tpu.memory_space<vmem>>, vector<16x512xbf16>,
    %cst = arith.constant 0.000000e+00 : f32
    %4 = vector.broadcast %cst : f32 to vector<32x512xf32>
    %c0_6 = arith.constant 0 : index
    %c0_7 = arith.constant 0 : index
    %5 = vector.load %arg8[%c0_6, %c0_7] : memref<16x1024xbf16, #tpu.memory_space<vmem>>, vector<16x512xbf16>
    %c0_8 = arith.constant 0 : index
    %c0_9 = arith.constant 0 : index
    %c0_10 = arith.constant 0 : index
    %6 = vector.load %arg2[%c0_8, %c0_9, %c0_10] : memref<27x32x16xbf16, #tpu.memory_space<vmem>>, vector<1x32x16xbf16>
    %7 = vector.shape_cast %6 : vector<1x32x16xbf16> to vector<32x16xbf16>
    %cst_11 = arith.constant dense<0.000000e+00> : vector<32x512xf32>
    %8 = tpu.matmul %7, %5, %cst_11 {dimension_numbers = #tpu.dot_dimension_numbers<[1], [0], [0], [1], [0, 0, 1, 1], [], []>} : vector<32x16xbf16>, vector<16x512xbf16>, vector<32x512xf32> -> vector<32x512xf32>
    %9 = arith.addf %4, %8 : vector<32x512xf32>
    %c0_12 = arith.constant 0 : index
    %c1 = arith.constant 1 : index
    %10 = vector.load %arg8[%c0_12, %c1] : memref<16x1024xbf16, #tpu.memory_space<vmem>>, vector<16x512xbf16>
    %c1_13 = arith.constant 1 : index
    %c0_14 = arith.constant 0 : index
    %c0_15 = arith.constant 0 : index
    %11 = vector.load %arg2[%c1_13, %c0_14, %c0_15] : memref<27x32x16xbf16, #tpu.memory_space<vmem>>, vector<1x32x16xbf16>
    %12 = vector.shape_cast %11 : vector<1x32x16xbf16> to vector<32x16xbf16>
    %cst_16 = arith.constant dense<0.000000e+00> : vector<32x512xf32>
    %13 = tpu.matmul %12, %10, %cst_16 {dimension_numbers = #tpu.dot_dimension_numbers<[1], [0], [0], [1], [0, 0, 1, 1], [], []>} : vector<32x16xbf16>, vector<16x512xbf16>, vector<32x512xf32> -> vector<32x512xf32>
    %14 = arith.addf %9, %13 : vector<32x512xf32>
    %c0_17 = arith.constant 0 : index
    %c2 = arith.constant 2 : index
    %15 = vector.load %arg8[%c0_17, %c2] : memref<16x1024xbf16, #tpu.memory_space<vmem>>, vector<16x512xbf16>
    %c2_18 = arith.constant 2 : index
    %c0_19 = arith.constant 0 : index
    %c0_20 = arith.constant 0 : index
    %16 = vector.load %arg2[%c2_18, %c0_19, %c0_20] : memref<27x32x16xbf16, #tpu.memory_space<vmem>>, vector<1x32x16xbf16>
    %17 = vector.shape_cast %16 : vector<1x32x16xbf16> to vector<32x16xbf16>
    %cst_21 = arith.constant dense<0.000000e+00> : vector<32x512xf32>
    %18 = tpu.matmul %17, %15, %cst_21 {dimension_numbers = #tpu.dot_dimension_numbers<[1], [0], [0], [1], [0, 0, 1, 1], [], []>} : vector<32x16xbf16>, vector<16x512xbf16>, vector<32x512xf32> -> vector<32x512xf32>
    %19 = arith.addf %14, %18 : vector<32x512xf32>
    %c0_22 = arith.constant 0 : index
    %c10 = arith.constant 10 : index
    %20 = vector.load %arg8[%c0_22, %c10] : memref<16x1024xbf16, #tpu.memory_space<vmem>>, vector<16x512xbf16>
    %c3 = arith.constant 3 : index
    %c0_23 = arith.constant 0 : index
    %c0_24 = arith.constant 0 : index
    %21 = vector.load %arg2[%c3, %c0_23, %c0_24] : memref<27x32x16xbf16, #tpu.memory_space<vmem>>, vector<1x32x16xbf16>
    %22 = vector.shape_cast %21 : vector<1x32x16xbf16> to vector<32x16xbf16>
    %cst_25 = arith.constant dense<0.000000e+00> : vector<32x512xf32>
    %23 = tpu.matmul %22, %20, %cst_25 {dimension_numbers = #tpu.dot_dimension_numbers<[1], [0], [0], [1], [0, 0, 1, 1], [], []>} : vector<32x16xbf16>, vector<16x512xbf16>, vector<32x512xf32> -> vector<32x512xf32>
    %24 = arith.addf %19, %23 : vector<32x512xf32>
    %c0_26 = arith.constant 0 : index
    %c11 = arith.constant 11 : index
    %25 = vector.load %arg8[%c0_26, %c11] : memref<16x1024xbf16, #tpu.memory_space<vmem>>, vector<16x512xbf16>
    %c4 = arith.constant 4 : index
    %c0_27 = arith.constant 0 : index
    %c0_28 = arith.constant 0 : index
    %26 = vector.load %arg2[%c4, %c0_27, %c0_28] : memref<27x32x16xbf16, #tpu.memory_space<vmem>>, vector<1x32x16xbf16>
    %27 = vector.shape_cast %26 : vector<1x32x16xbf16> to vector<32x16xbf16>
    %cst_29 = arith.constant dense<0.000000e+00> : vector<32x512xf32>
    %28 = tpu.matmul %27, %25, %cst_29 {dimension_numbers = #tpu.dot_dimension_numbers<[1], [0], [0], [1], [0, 0, 1, 1], [], []>} : vector<32x16xbf16>, vector<16x512xbf16>, vector<32x512xf32> -> vector<32x512xf32>
    %29 = arith.addf %24, %28 : vector<32x512xf32>
    %c0_30 = arith.constant 0 : index
    %c12 = arith.constant 12 : index
    %30 = vector.load %arg8[%c0_30, %c12] : memref<16x1024xbf16, #tpu.memory_space<vmem>>, vector<16x512xbf16>
    %c5 = arith.constant 5 : index
    %c0_31 = arith.constant 0 : index
    %c0_32 = arith.constant 0 : index
    %31 = vector.load %arg2[%c5, %c0_31, %c0_32] : memref<27x32x16xbf16, #tpu.memory_space<vmem>>, vector<1x32x16xbf16>
    %32 = vector.shape_cast %31 : vector<1x32x16xbf16> to vector<32x16xbf16>
    %cst_33 = arith.constant dense<0.000000e+00> : vector<32x512xf32>
    %33 = tpu.matmul %32, %30, %cst_33 {dimension_numbers = #tpu.dot_dimension_numbers<[1], [0], [0], [1], [0, 0, 1, 1], [], []>} : vector<32x16xbf16>, vector<16x512xbf16>, vector<32x512xf32> -> vector<32x512xf32>
    %34 = arith.addf %29, %33 : vector<32x512xf32>
    %c0_34 = arith.constant 0 : index
    %c20 = arith.constant 20 : index
    %35 = vector.load %arg8[%c0_34, %c20] : memref<16x1024xbf16, #tpu.memory_space<vmem>>, vector<16x512xbf16>
    %c6 = arith.constant 6 : index
    %c0_35 = arith.constant 0 : index
    %c0_36 = arith.constant 0 : index
    %36 = vector.load %arg2[%c6, %c0_35, %c0_36] : memref<27x32x16xbf16, #tpu.memory_space<vmem>>, vector<1x32x16xbf16>
    %37 = vector.shape_cast %36 : vector<1x32x16xbf16> to vector<32x16xbf16>
    %cst_37 = arith.constant dense<0.000000e+00> : vector<32x512xf32>
    %38 = tpu.matmul %37, %35, %cst_37 {dimension_numbers = #tpu.dot_dimension_numbers<[1], [0], [0], [1], [0, 0, 1, 1], [], []>} : vector<32x16xbf16>, vector<16x512xbf16>, vector<32x512xf32> -> vector<32x512xf32>
    %39 = arith.addf %34, %38 : vector<32x512xf32>
    %c0_38 = arith.constant 0 : index
    %c21 = arith.constant 21 : index
    %40 = vector.load %arg8[%c0_38, %c21] : memref<16x1024xbf16, #tpu.memory_space<vmem>>, vector<16x512xbf16>
    %c7 = arith.constant 7 : index
    %c0_39 = arith.constant 0 : index
    %c0_40 = arith.constant 0 : index
    %41 = vector.load %arg2[%c7, %c0_39, %c0_40] : memref<27x32x16xbf16, #tpu.memory_space<vmem>>, vector<1x32x16xbf16>
    %42 = vector.shape_cast %41 : vector<1x32x16xbf16> to vector<32x16xbf16>
    %cst_41 = arith.constant dense<0.000000e+00> : vector<32x512xf32>
    %43 = tpu.matmul %42, %40, %cst_41 {dimension_numbers = #tpu.dot_dimension_numbers<[1], [0], [0], [1], [0, 0, 1, 1], [], []>} : vector<32x16xbf16>, vector<16x512xbf16>, vector<32x512xf32> -> vector<32x512xf32>
    %44 = arith.addf %39, %43 : vector<32x512xf32>
    %c0_42 = arith.constant 0 : index
    %c22 = arith.constant 22 : index
    %45 = vector.load %arg8[%c0_42, %c22] : memref<16x1024xbf16, #tpu.memory_space<vmem>>, vector<16x512xbf16>
    %c8 = arith.constant 8 : index
    %c0_43 = arith.constant 0 : index
    %c0_44 = arith.constant 0 : index
    %46 = vector.load %arg2[%c8, %c0_43, %c0_44] : memref<27x32x16xbf16, #tpu.memory_space<vmem>>, vector<1x32x16xbf16>
    %47 = vector.shape_cast %46 : vector<1x32x16xbf16> to vector<32x16xbf16>
    %cst_45 = arith.constant dense<0.000000e+00> : vector<32x512xf32>
    %48 = tpu.matmul %47, %45, %cst_45 {dimension_numbers = #tpu.dot_dimension_numbers<[1], [0], [0], [1], [0, 0, 1, 1], [], []>} : vector<32x16xbf16>, vector<16x512xbf16>, vector<32x512xf32> -> vector<32x512xf32>
    %49 = arith.addf %44, %48 : vector<32x512xf32>
    %c0_46 = arith.constant 0 : index
    %c100 = arith.constant 100 : index
    %50 = vector.load %arg8[%c0_46, %c100] : memref<16x1024xbf16, #tpu.memory_space<vmem>>, vector<16x512xbf16>
    %c9 = arith.constant 9 : index
    %c0_47 = arith.constant 0 : index
    %c0_48 = arith.constant 0 : index
    %51 = vector.load %arg2[%c9, %c0_47, %c0_48] : memref<27x32x16xbf16, #tpu.memory_space<vmem>>, vector<1x32x16xbf16>
    %52 = vector.shape_cast %51 : vector<1x32x16xbf16> to vector<32x16xbf16>
    %cst_49 = arith.constant dense<0.000000e+00> : vector<32x512xf32>
    %53 = tpu.matmul %52, %50, %cst_49 {dimension_numbers = #tpu.dot_dimension_numbers<[1], [0], [0], [1], [0, 0, 1, 1], [], []>} : vector<32x16xbf16>, vector<16x512xbf16>, vector<32x512xf32> -> vector<32x512xf32>
    %54 = arith.addf %49, %53 : vector<32x512xf32>
    %c0_50 = arith.constant 0 : index
    %c101 = arith.constant 101 : index
    %55 = vector.load %arg8[%c0_50, %c101] : memref<16x1024xbf16, #tpu.memory_space<vmem>>, vector<16x512xbf16>
    %c10_51 = arith.constant 10 : index
    %c0_52 = arith.constant 0 : index
    %c0_53 = arith.constant 0 : index
    %56 = vector.load %arg2[%c10_51, %c0_52, %c0_53] : memref<27x32x16xbf16, #tpu.memory_space<vmem>>, vector<1x32x16xbf16>
    %57 = vector.shape_cast %56 : vector<1x32x16xbf16> to vector<32x16xbf16>
    %cst_54 = arith.constant dense<0.000000e+00> : vector<32x512xf32>
    %58 = tpu.matmul %57, %55, %cst_54 {dimension_numbers = #tpu.dot_dimension_numbers<[1], [0], [0], [1], [0, 0, 1, 1], [], []>} : vector<32x16xbf16>, vector<16x512xbf16>, vector<32x512xf32> -> vector<32x512xf32>
    %59 = arith.addf %54, %58 : vector<32x512xf32>
    %c0_55 = arith.constant 0 : index
    %c102 = arith.constant 102 : index
    %60 = vector.load %arg8[%c0_55, %c102] : memref<16x1024xbf16, #tpu.memory_space<vmem>>, vector<16x512xbf16>
    %c11_56 = arith.constant 11 : index
    %c0_57 = arith.constant 0 : index
    %c0_58 = arith.constant 0 : index
    %61 = vector.load %arg2[%c11_56, %c0_57, %c0_58] : memref<27x32x16xbf16, #tpu.memory_space<vmem>>, vector<1x32x16xbf16>
    %62 = vector.shape_cast %61 : vector<1x32x16xbf16> to vector<32x16xbf16>
    %cst_59 = arith.constant dense<0.000000e+00> : vector<32x512xf32>
    %63 = tpu.matmul %62, %60, %cst_59 {dimension_numbers = #tpu.dot_dimension_numbers<[1], [0], [0], [1], [0, 0, 1, 1], [], []>} : vector<32x16xbf16>, vector<16x512xbf16>, vector<32x512xf32> -> vector<32x512xf32>
    %64 = arith.addf %59, %63 : vector<32x512xf32>
    %c0_60 = arith.constant 0 : index
    %c110 = arith.constant 110 : index
    %65 = vector.load %arg8[%c0_60, %c110] : memref<16x1024xbf16, #tpu.memory_space<vmem>>, vector<16x512xbf16>
    %c12_61 = arith.constant 12 : index
    %c0_62 = arith.constant 0 : index
    %c0_63 = arith.constant 0 : index
    %66 = vector.load %arg2[%c12_61, %c0_62, %c0_63] : memref<27x32x16xbf16, #tpu.memory_space<vmem>>, vector<1x32x16xbf16>
    %67 = vector.shape_cast %66 : vector<1x32x16xbf16> to vector<32x16xbf16>
    %cst_64 = arith.constant dense<0.000000e+00> : vector<32x512xf32>
    %68 = tpu.matmul %67, %65, %cst_64 {dimension_numbers = #tpu.dot_dimension_numbers<[1], [0], [0], [1], [0, 0, 1, 1], [], []>} : vector<32x16xbf16>, vector<16x512xbf16>, vector<32x512xf32> -> vector<32x512xf32>
    %69 = arith.addf %64, %68 : vector<32x512xf32>
    %c0_65 = arith.constant 0 : index
    %c111 = arith.constant 111 : index
    %70 = vector.load %arg8[%c0_65, %c111] : memref<16x1024xbf16, #tpu.memory_space<vmem>>, vector<16x512xbf16>
    %c13 = arith.constant 13 : index
    %c0_66 = arith.constant 0 : index
    %c0_67 = arith.constant 0 : index
    %71 = vector.load %arg2[%c13, %c0_66, %c0_67] : memref<27x32x16xbf16, #tpu.memory_space<vmem>>, vector<1x32x16xbf16>
    %72 = vector.shape_cast %71 : vector<1x32x16xbf16> to vector<32x16xbf16>
    %cst_68 = arith.constant dense<0.000000e+00> : vector<32x512xf32>
    %73 = tpu.matmul %72, %70, %cst_68 {dimension_numbers = #tpu.dot_dimension_numbers<[1], [0], [0], [1], [0, 0, 1, 1], [], []>} : vector<32x16xbf16>, vector<16x512xbf16>, vector<32x512xf32> -> vector<32x512xf32>
    %74 = arith.addf %69, %73 : vector<32x512xf32>
    %c0_69 = arith.constant 0 : index
    %c112 = arith.constant 112 : index
    %75 = vector.load %arg8[%c0_69, %c112] : memref<16x1024xbf16, #tpu.memory_space<vmem>>, vector<16x512xbf16>
    %c14 = arith.constant 14 : index
    %c0_70 = arith.constant 0 : index
    %c0_71 = arith.constant 0 : index
    %76 = vector.load %arg2[%c14, %c0_70, %c0_71] : memref<27x32x16xbf16, #tpu.memory_space<vmem>>, vector<1x32x16xbf16>
    %77 = vector.shape_cast %76 : vector<1x32x16xbf16> to vector<32x16xbf16>
    %cst_72 = arith.constant dense<0.000000e+00> : vector<32x512xf32>
    %78 = tpu.matmul %77, %75, %cst_72 {dimension_numbers = #tpu.dot_dimension_numbers<[1], [0], [0], [1], [0, 0, 1, 1], [], []>} : vector<32x16xbf16>, vector<16x512xbf16>, vector<32x512xf32> -> vector<32x512xf32>
    %79 = arith.addf %74, %78 : vector<32x512xf32>
    %c0_73 = arith.constant 0 : index
    %c120 = arith.constant 120 : index
    %80 = vector.load %arg8[%c0_73, %c120] : memref<16x1024xbf16, #tpu.memory_space<vmem>>, vector<16x512xbf16>
    %c15 = arith.constant 15 : index
    %c0_74 = arith.constant 0 : index
    %c0_75 = arith.constant 0 : index
    %81 = vector.load %arg2[%c15, %c0_74, %c0_75] : memref<27x32x16xbf16, #tpu.memory_space<vmem>>, vector<1x32x16xbf16>
    %82 = vector.shape_cast %81 : vector<1x32x16xbf16> to vector<32x16xbf16>
    %cst_76 = arith.constant dense<0.000000e+00> : vector<32x512xf32>
    %83 = tpu.matmul %82, %80, %cst_76 {dimension_numbers = #tpu.dot_dimension_numbers<[1], [0], [0], [1], [0, 0, 1, 1], [], []>} : vector<32x16xbf16>, vector<16x512xbf16>, vector<32x512xf32> -> vector<32x512xf32>
    %84 = arith.addf %79, %83 : vector<32x512xf32>
    %c0_77 = arith.constant 0 : index
    %c121 = arith.constant 121 : index
    %85 = vector.load %arg8[%c0_77, %c121] : memref<16x1024xbf16, #tpu.memory_space<vmem>>, vector<16x512xbf16>
    %c16 = arith.constant 16 : index
    %c0_78 = arith.constant 0 : index
    %c0_79 = arith.constant 0 : index
    %86 = vector.load %arg2[%c16, %c0_78, %c0_79] : memref<27x32x16xbf16, #tpu.memory_space<vmem>>, vector<1x32x16xbf16>
    %87 = vector.shape_cast %86 : vector<1x32x16xbf16> to vector<32x16xbf16>
    %cst_80 = arith.constant dense<0.000000e+00> : vector<32x512xf32>
    %88 = tpu.matmul %87, %85, %cst_80 {dimension_numbers = #tpu.dot_dimension_numbers<[1], [0], [0], [1], [0, 0, 1, 1], [], []>} : vector<32x16xbf16>, vector<16x512xbf16>, vector<32x512xf32> -> vector<32x512xf32>
    %89 = arith.addf %84, %88 : vector<32x512xf32>
    %c0_81 = arith.constant 0 : index
    %c122 = arith.constant 122 : index
    %90 = vector.load %arg8[%c0_81, %c122] : memref<16x1024xbf16, #tpu.memory_space<vmem>>, vector<16x512xbf16>
    %c17 = arith.constant 17 : index
    %c0_82 = arith.constant 0 : index
    %c0_83 = arith.constant 0 : index
    %91 = vector.load %arg2[%c17, %c0_82, %c0_83] : memref<27x32x16xbf16, #tpu.memory_space<vmem>>, vector<1x32x16xbf16>
    %92 = vector.shape_cast %91 : vector<1x32x16xbf16> to vector<32x16xbf16>
    %cst_84 = arith.constant dense<0.000000e+00> : vector<32x512xf32>
    %93 = tpu.matmul %92, %90, %cst_84 {dimension_numbers = #tpu.dot_dimension_numbers<[1], [0], [0], [1], [0, 0, 1, 1], [], []>} : vector<32x16xbf16>, vector<16x512xbf16>, vector<32x512xf32> -> vector<32x512xf32>
    %94 = arith.addf %89, %93 : vector<32x512xf32>
    %c0_85 = arith.constant 0 : index
    %c200 = arith.constant 200 : index
    %95 = vector.load %arg8[%c0_85, %c200] : memref<16x1024xbf16, #tpu.memory_space<vmem>>, vector<16x512xbf16>
    %c18 = arith.constant 18 : index
    %c0_86 = arith.constant 0 : index
    %c0_87 = arith.constant 0 : index
    %96 = vector.load %arg2[%c18, %c0_86, %c0_87] : memref<27x32x16xbf16, #tpu.memory_space<vmem>>, vector<1x32x16xbf16>
    %97 = vector.shape_cast %96 : vector<1x32x16xbf16> to vector<32x16xbf16>
    %cst_88 = arith.constant dense<0.000000e+00> : vector<32x512xf32>
    %98 = tpu.matmul %97, %95, %cst_88 {dimension_numbers = #tpu.dot_dimension_numbers<[1], [0], [0], [1], [0, 0, 1, 1], [], []>} : vector<32x16xbf16>, vector<16x512xbf16>, vector<32x512xf32> -> vector<32x512xf32>
    %99 = arith.addf %94, %98 : vector<32x512xf32>
    %c0_89 = arith.constant 0 : index
    %c201 = arith.constant 201 : index
    %100 = vector.load %arg8[%c0_89, %c201] : memref<16x1024xbf16, #tpu.memory_space<vmem>>, vector<16x512xbf16>
    %c19 = arith.constant 19 : index
    %c0_90 = arith.constant 0 : index
    %c0_91 = arith.constant 0 : index
    %101 = vector.load %arg2[%c19, %c0_90, %c0_91] : memref<27x32x16xbf16, #tpu.memory_space<vmem>>, vector<1x32x16xbf16>
    %102 = vector.shape_cast %101 : vector<1x32x16xbf16> to vector<32x16xbf16>
    %cst_92 = arith.constant dense<0.000000e+00> : vector<32x512xf32>
    %103 = tpu.matmul %102, %100, %cst_92 {dimension_numbers = #tpu.dot_dimension_numbers<[1], [0], [0], [1], [0, 0, 1, 1], [], []>} : vector<32x16xbf16>, vector<16x512xbf16>, vector<32x512xf32> -> vector<32x512xf32>
    %104 = arith.addf %99, %103 : vector<32x512xf32>
    %c0_93 = arith.constant 0 : index
    %c202 = arith.constant 202 : index
    %105 = vector.load %arg8[%c0_93, %c202] : memref<16x1024xbf16, #tpu.memory_space<vmem>>, vector<16x512xbf16>
    %c20_94 = arith.constant 20 : index
    %c0_95 = arith.constant 0 : index
    %c0_96 = arith.constant 0 : index
    %106 = vector.load %arg2[%c20_94, %c0_95, %c0_96] : memref<27x32x16xbf16, #tpu.memory_space<vmem>>, vector<1x32x16xbf16>
    %107 = vector.shape_cast %106 : vector<1x32x16xbf16> to vector<32x16xbf16>
    %cst_97 = arith.constant dense<0.000000e+00> : vector<32x512xf32>
    %108 = tpu.matmul %107, %105, %cst_97 {dimension_numbers = #tpu.dot_dimension_numbers<[1], [0], [0], [1], [0, 0, 1, 1], [], []>} : vector<32x16xbf16>, vector<16x512xbf16>, vector<32x512xf32> -> vector<32x512xf32>
    %109 = arith.addf %104, %108 : vector<32x512xf32>
    %c0_98 = arith.constant 0 : index
    %c210 = arith.constant 210 : index
    %110 = vector.load %arg8[%c0_98, %c210] : memref<16x1024xbf16, #tpu.memory_space<vmem>>, vector<16x512xbf16>
    %c21_99 = arith.constant 21 : index
    %c0_100 = arith.constant 0 : index
    %c0_101 = arith.constant 0 : index
    %111 = vector.load %arg2[%c21_99, %c0_100, %c0_101] : memref<27x32x16xbf16, #tpu.memory_space<vmem>>, vector<1x32x16xbf16>
    %112 = vector.shape_cast %111 : vector<1x32x16xbf16> to vector<32x16xbf16>
    %cst_102 = arith.constant dense<0.000000e+00> : vector<32x512xf32>
    %113 = tpu.matmul %112, %110, %cst_102 {dimension_numbers = #tpu.dot_dimension_numbers<[1], [0], [0], [1], [0, 0, 1, 1], [], []>} : vector<32x16xbf16>, vector<16x512xbf16>, vector<32x512xf32> -> vector<32x512xf32>
    %114 = arith.addf %109, %113 : vector<32x512xf32>
    %c0_103 = arith.constant 0 : index
    %c211 = arith.constant 211 : index
    %115 = vector.load %arg8[%c0_103, %c211] : memref<16x1024xbf16, #tpu.memory_space<vmem>>, vector<16x512xbf16>
    %c22_104 = arith.constant 22 : index
    %c0_105 = arith.constant 0 : index
    %c0_106 = arith.constant 0 : index
    %116 = vector.load %arg2[%c22_104, %c0_105, %c0_106] : memref<27x32x16xbf16, #tpu.memory_space<vmem>>, vector<1x32x16xbf16>
    %117 = vector.shape_cast %116 : vector<1x32x16xbf16> to vector<32x16xbf16>
    %cst_107 = arith.constant dense<0.000000e+00> : vector<32x512xf32>
    %118 = tpu.matmul %117, %115, %cst_107 {dimension_numbers = #tpu.dot_dimension_numbers<[1], [0], [0], [1], [0, 0, 1, 1], [], []>} : vector<32x16xbf16>, vector<16x512xbf16>, vector<32x512xf32> -> vector<32x512xf32>
    %119 = arith.addf %114, %118 : vector<32x512xf32>
    %c0_108 = arith.constant 0 : index
    %c212 = arith.constant 212 : index
    %120 = vector.load %arg8[%c0_108, %c212] : memref<16x1024xbf16, #tpu.memory_space<vmem>>, vector<16x512xbf16>
    %c23 = arith.constant 23 : index
    %c0_109 = arith.constant 0 : index
    %c0_110 = arith.constant 0 : index
    %121 = vector.load %arg2[%c23, %c0_109, %c0_110] : memref<27x32x16xbf16, #tpu.memory_space<vmem>>, vector<1x32x16xbf16>
    %122 = vector.shape_cast %121 : vector<1x32x16xbf16> to vector<32x16xbf16>
    %cst_111 = arith.constant dense<0.000000e+00> : vector<32x512xf32>
    %123 = tpu.matmul %122, %120, %cst_111 {dimension_numbers = #tpu.dot_dimension_numbers<[1], [0], [0], [1], [0, 0, 1, 1], [], []>} : vector<32x16xbf16>, vector<16x512xbf16>, vector<32x512xf32> -> vector<32x512xf32>
    %124 = arith.addf %119, %123 : vector<32x512xf32>
    %c0_112 = arith.constant 0 : index
    %c220 = arith.constant 220 : index
    %125 = vector.load %arg8[%c0_112, %c220] : memref<16x1024xbf16, #tpu.memory_space<vmem>>, vector<16x512xbf16>
    %c24 = arith.constant 24 : index
    %c0_113 = arith.constant 0 : index
    %c0_114 = arith.constant 0 : index
    %126 = vector.load %arg2[%c24, %c0_113, %c0_114] : memref<27x32x16xbf16, #tpu.memory_space<vmem>>, vector<1x32x16xbf16>
    %127 = vector.shape_cast %126 : vector<1x32x16xbf16> to vector<32x16xbf16>
    %cst_115 = arith.constant dense<0.000000e+00> : vector<32x512xf32>
    %128 = tpu.matmul %127, %125, %cst_115 {dimension_numbers = #tpu.dot_dimension_numbers<[1], [0], [0], [1], [0, 0, 1, 1], [], []>} : vector<32x16xbf16>, vector<16x512xbf16>, vector<32x512xf32> -> vector<32x512xf32>
    %129 = arith.addf %124, %128 : vector<32x512xf32>
    %c0_116 = arith.constant 0 : index
    %c221 = arith.constant 221 : index
    %130 = vector.load %arg8[%c0_116, %c221] : memref<16x1024xbf16, #tpu.memory_space<vmem>>, vector<16x512xbf16>
    %c25 = arith.constant 25 : index
    %c0_117 = arith.constant 0 : index
    %c0_118 = arith.constant 0 : index
    %131 = vector.load %arg2[%c25, %c0_117, %c0_118] : memref<27x32x16xbf16, #tpu.memory_space<vmem>>, vector<1x32x16xbf16>
    %132 = vector.shape_cast %131 : vector<1x32x16xbf16> to vector<32x16xbf16>
    %cst_119 = arith.constant dense<0.000000e+00> : vector<32x512xf32>
    %133 = tpu.matmul %132, %130, %cst_119 {dimension_numbers = #tpu.dot_dimension_numbers<[1], [0], [0], [1], [0, 0, 1, 1], [], []>} : vector<32x16xbf16>, vector<16x512xbf16>, vector<32x512xf32> -> vector<32x512xf32>
    %134 = arith.addf %129, %133 : vector<32x512xf32>
    %c0_120 = arith.constant 0 : index
    %c222 = arith.constant 222 : index
    %135 = vector.load %arg8[%c0_120, %c222] : memref<16x1024xbf16, #tpu.memory_space<vmem>>, vector<16x512xbf16>
    %c26 = arith.constant 26 : index
    %c0_121 = arith.constant 0 : index
    %c0_122 = arith.constant 0 : index
    %136 = vector.load %arg2[%c26, %c0_121, %c0_122] : memref<27x32x16xbf16, #tpu.memory_space<vmem>>, vector<1x32x16xbf16>
    %137 = vector.shape_cast %136 : vector<1x32x16xbf16> to vector<32x16xbf16>
    %cst_123 = arith.constant dense<0.000000e+00> : vector<32x512xf32>
    %138 = tpu.matmul %137, %135, %cst_123 {dimension_numbers = #tpu.dot_dimension_numbers<[1], [0], [0], [1], [0, 0, 1, 1], [], []>} : vector<32x16xbf16>, vector<16x512xbf16>, vector<32x512xf32> -> vector<32x512xf32>
    %139 = arith.addf %134, %138 : vector<32x512xf32>
    %140 = arith.truncf %139 : vector<32x512xf32> to vector<32x512xbf16>
    %c0_124 = arith.constant 0 : index
    %c0_125 = arith.constant 0 : index
    %141 = vector.load %arg6[%c0_124, %c0_125] : memref<32x512xbf16, #tpu.memory_space<vmem>>, vector<32x512xbf16>
    tpu.vector_store %arg6[%c0_124, %c0_125], %140 {strides = array<i32>} : memref<32x512xbf16, #tpu.memory_space<vmem>>, vector<32x512xbf16>,
    %c0_126 = arith.constant 0 : index
    %c0_127 = arith.constant 0 : index
    %142 = vector.load %arg5[%c0_126, %c0_127] : memref<1x512xf32, #tpu.memory_space<vmem>>, vector<1x512xf32>
    %143 = vector.broadcast %142 : vector<1x512xf32> to vector<32x512xf32>
    %144 = arith.mulf %139, %143 : vector<32x512xf32>
    %cst_128 = arith.constant dense<0.000000e+00> : vector<32xf32>
    %145 = vector.multi_reduction <add>, %144, %cst_128 [1] : vector<32x512xf32> to vector<32xf32>
    %146 = vector.shape_cast %145 : vector<32xf32> to vector<32x1xf32>
    %147 = arith.mulf %144, %139 : vector<32x512xf32>
    %cst_129 = arith.constant dense<0.000000e+00> : vector<32xf32>
    %148 = vector.multi_reduction <add>, %147, %cst_129 [1] : vector<32x512xf32> to vector<32xf32>
    %149 = vector.shape_cast %148 : vector<32xf32> to vector<32x1xf32>
    %150 = tpu.concatenate %146, %149 in 1 : vector<32x1xf32>, vector<32x1xf32> -> vector<32x2xf32>
    %151 = vector.shape_cast %150 : vector<32x2xf32> to vector<1x32x2xf32>
    %c0_i32 = arith.constant 0 : i32
    %152 = arith.cmpi eq, %arg1, %c0_i32 : i32
    %153 = arith.extui %152 : i1 to i32
    %c0_i32_130 = arith.constant 0 : i32
    %154 = arith.cmpi ne, %153, %c0_i32_130 : i32
    scf.if %154 {
      %cst_137 = arith.constant 0.000000e+00 : f32
      %158 = vector.broadcast %cst_137 : f32 to vector<1x32x2xf32>
      %c0_138 = arith.constant 0 : index
      %c0_139 = arith.constant 0 : index
      %c0_140 = arith.constant 0 : index
      %159 = vector.load %arg7[%c0_138, %c0_139, %c0_140] : memref<1x32x2xf32, #tpu.memory_space<vmem>>, vector<1x32x2xf32>
      tpu.vector_store %arg7[%c0_138, %c0_139, %c0_140], %158 {strides = array<i32>} : memref<1x32x2xf32, #tpu.memory_space<vmem>>, vector<1x32x2xf32>,
    } else {
    }
    %c0_131 = arith.constant 0 : index
    %c0_132 = arith.constant 0 : index
    %c0_133 = arith.constant 0 : index
    %155 = vector.load %arg7[%c0_131, %c0_132, %c0_133] : memref<1x32x2xf32, #tpu.memory_space<vmem>>, vector<1x32x2xf32>
    %156 = arith.addf %155, %151 : vector<1x32x2xf32>
    %c0_134 = arith.constant 0 : index
    %c0_135 = arith.constant 0 : index
    %c0_136 = arith.constant 0 : index
    %157 = vector.load %arg7[%c0_134, %c0_135, %c0_136] : memref<1x32x2xf32, #tpu.memory_space<vmem>>, vector<1x32x2xf32>
    tpu.vector_store %arg7[%c0_134, %c0_135, %c0_136], %156 {strides = array<i32>} : memref<1x32x2xf32, #tpu.memory_space<vmem>>, vector<1x32x2xf32>,
    return
  }
  func.func @transform_0(%arg0: i32, %arg1: i32) -> (i32, i32, i32) {
    %c0_i32 = arith.constant 0 : i32
    %c0_i32_0 = arith.constant 0 : i32
    %c0_i32_1 = arith.constant 0 : i32
    %c0_i32_2 = arith.constant 0 : i32
    return %c0_i32, %c0_i32_0, %c0_i32_1 : i32, i32, i32
  }
  func.func @transform_1(%arg0: i32, %arg1: i32) -> (i32, i32) {
    %c3_i32 = arith.constant 3 : i32
    %0 = arith.muli %arg0, %c3_i32 : i32
    %1 = arith.addi %0, %arg1 : i32
    %c0_i32 = arith.constant 0 : i32
    %c0_i32_0 = arith.constant 0 : i32
    return %c0_i32, %1 : i32, i32
  }
  func.func @transform_2(%arg0: i32, %arg1: i32) -> (i32, i32) {
    %c3_i32 = arith.constant 3 : i32
    %0 = arith.muli %arg0, %c3_i32 : i32
    %1 = arith.addi %0, %arg1 : i32
    %c1_i32 = arith.constant 1 : i32
    %2 = arith.addi %1, %c1_i32 : i32
    %c0_i32 = arith.constant 0 : i32
    %c0_i32_0 = arith.constant 0 : i32
    return %c0_i32, %2 : i32, i32
  }
  func.func @transform_3(%arg0: i32, %arg1: i32) -> (i32, i32) {
    %c0_i32 = arith.constant 0 : i32
    %c0_i32_0 = arith.constant 0 : i32
    return %c0_i32, %arg1 : i32, i32
  }
  func.func @transform_4(%arg0: i32, %arg1: i32) -> (i32, i32) {
    %c2_i32 = arith.constant 2 : i32
    %0 = arith.muli %arg0, %c2_i32 : i32
    %1 = arith.addi %0, %arg1 : i32
    %c0_i32 = arith.constant 0 : i32
    %c0_i32_0 = arith.constant 0 : i32
    return %c0_i32, %1 : i32, i32
  }
  func.func @transform_5(%arg0: i32, %arg1: i32) -> (i32, i32, i32) {
    %c0_i32 = arith.constant 0 : i32
    %c0_i32_0 = arith.constant 0 : i32
    %c0_i32_1 = arith.constant 0 : i32
    return %arg0, %c0_i32, %c0_i32_0 : i32, i32, i32
  }
}

</mosaic_0001>

<bundles_post_ra>
// kernel: mul.44
= control target key start
LH: loop header
LB: loop body
LE: loop exit
PB: predicated region body
PF: predicated region fallthrough
CT: control target
= control target key end

     0   :  { %s20_s0 = inlined_call_operand.<no memory space> [shape: f32[], index: 0, kind: input, shape index: {}]   ;;  %s21_s1 = inlined_call_operand.vmem [shape: f32[12], index: 1, kind: output, shape index: {}]  }
   0x1   :  { %v2_v0 = vstv %s20_s0 }
   0x2   :  { %3 = vst [vmem:[%s21_s1] sm:$0x1] %v2_v0 }

// kernel: mul.45
= control target key start
LH: loop header
LB: loop body
LE: loop exit
PB: predicated region body
PF: predicated region fallthrough
CT: control target
= control target key end

     0   :  { %s20_s0 = inlined_call_operand.<no memory space> [shape: f32[], index: 0, kind: input, shape index: {}]   ;;  %s21_s1 = inlined_call_operand.vmem [shape: f32[4], index: 1, kind: output, shape index: {}]  }
   0x1   :  { %v2_v0 = vstv %s20_s0 }
   0x2   :  { %3 = vst [vmem:[%s21_s1] sm:$0x1] %v2_v0 }

// kernel: _lambda_.5
= control target key start
LH: loop header
LB: loop body
LE: loop exit
PB: predicated region body
PF: predicated region fallthrough
CT: control target
= control target key end

     0   :  { %s1004_s18 = smov 0   ;;  %s1006_s19 = smov 0   ;;  %s1142_s0 = inlined_call_operand.vmem [shape: bf16[32,2048], index: 0, kind: input, shape index: {}]   ;;  %s1143_s1 = inlined_call_operand.vmem [shape: f32[2,32,1], index: 1, kind: input, shape index: {}]   ;;  %s1144_s2 = inlined_call_operand.vmem [shape: f32[2,32,1], index: 2, kind: input, shape index: {}]   ;;  %s1145_s3 = inlined_call_operand.vmem [shape: f32[32,1], index: 3, kind: input, shape index: {}]   ;;  %s1146_s4 = inlined_call_operand.vmem [shape: f32[16,32], index: 4, kind: input, shape index: {}]   ;;  %s1147_s5 = inlined_call_operand.vmem [shape: f32[16,2048], index: 5, kind: output, shape index: {}]  }
   0x1   :  { %s1008_s20 = smov 0   ;;  %s1010_s21 = smov 0  }
   0x2   :  { %s1012_s22 = smov 0   ;;  %s1014_s23 = smov 0  }
   0x3   :  { %s1016_s24 = smov 0  }
   0x4 LB: > { %s24_s25 = sadd.s32 1, %s962_s22  ;;  %s27_s26 = sadd.s32 1, %s966_s23  ;;  %s970_s24 = sphi %s1016_s24, %s15_s24   ;;  %s966_s23 = sphi %s1014_s23, %s1154_s23   ;;  %s962_s22 = sphi %s1012_s22, %s1153_s22   ;;  %s958_s21 = sphi %s1010_s21, %s1152_s21   ;;  %s954_s20 = sphi %s1008_s20, %s1151_s20   ;;  %s950_s19 = sphi %s1006_s19, %s1150_s19   ;;  %s946_s18 = sphi %s1004_s18, %s1149_s18  }
   0x5   : > { %p25_p0 = scmp.ge.s32.totalorder %s24_s25, 2  ;;  %s807_s27 = sadd.s32 4294967295, %s970_s24  }
   0x6   : > { %s809_s28 = sshll.u32 %s966_s23, 1  ;;  %p45_p1 = scmp.ne.s32.totalorder %s950_s19, %s946_s18 }
   0x7   : > { %s1156_s25 = smov (%p25_p0, %s24_s25), 0  ;;  %s1158_s26 = smov (!%p25_p0, %s27_s26), %s966_s23 }
   0x8   : > { %p29_p2 = scmp.ge.s32.totalorder %s1158_s26, 2  ;;  %p46_p3 = scmp.eq.s32.totalorder %s970_s24, 0 }
   0x9   : > { %s32_s29 = sadd.s32 %s962_s22, %s809_s28  ;;  %p173_p4 = scmp.eq.s32.totalorder %s807_s27, 3 }
   0xa   : > { %s1160_s26 = smov (%p29_p2, %s1158_s26), 0  ;;  %p47_p5 = por %p46_p3, %p45_p1 }
   0xb   : > { %p1052_p6 = por %p173_p4, %p45_p1  ;;  %s810_s6 = sshll.u32 %s1160_s26, 1 }
   0xc   : > { %s34_s7 = sadd.s32 %s810_s6, %s1156_s25  ;;  %s38_s9 = sadd.s32 1, %s950_s19 }
   0xd   : > { %s35_s8 = ssub.s32 %s32_s29, %s34_s7  ;;  %p814_p8 = scmp.ge.s32.totalorder %s970_s24, 4 }
   0xe   : > { %p36_p7 = scmp.eq.s32.totalorder %s35_s8, 0 }
   0xf   : > { %201 = sbr.rel (%p814_p8) target bundleno = 30 (0x1e), region = 24 }
  0x10   : > { %s1060_s10 = scalar_select %p36_p7, %s950_s19, %s38_s9  }
  0x16   : > { %204 = sbr.rel (!%p47_p5) target bundleno = 30 (0x1e), region = 28  ;;  %s206_s11 = sand.u32 (%p47_p5), 1, %s950_s19  }
  0x17   : > { %s836_s12 = sshll.u32 (%p47_p5), %s32_s29, 4  ;;  %s815_s13 = sshll.u32 (%p47_p5), %s206_s11, 6 }
  0x18   : > { %s213_s16 = scalar_lea.vmem (%p47_p5), %s1142_s0, %s836_s12  ;;  %s208_s17 = scalar_lea.vmem (%p47_p5), [#allocation2], %s815_s13 }
  0x19   : > { %v226_v0 = vld [vmem:[%s213_s16] sm:$0xff] (%p47_p5)  ;;  %v228_v1 = vld [vmem:[%s213_s16 + $0x8] sm:$0xff] (%p47_p5) }
  0x1a   : > { %v230_v2 = vld [vmem:[%s213_s16 + $0x40] sm:$0xff] (%p47_p5)  ;;  %227 = vst [vmem:[%s208_s17] sm:$0xff] (%p47_p5), %v226_v0  ;;  %229 = vst [vmem:[%s208_s17 + $0x8] sm:$0xff] (%p47_p5), %v228_v1  ;;  %v232_v3 = vld [vmem:[%s213_s16 + $0x48] sm:$0xff] (%p47_p5) }
  0x1b   : > { %231 = vst [vmem:[%s208_s17 + $0x10] sm:$0xff] (%p47_p5), %v230_v2  ;;  %v234_v4 = vld [vmem:[%s213_s16 + $0x80] sm:$0xff] (%p47_p5)  ;;  %v236_v5 = vld [vmem:[%s213_s16 + $0x88] sm:$0xff] (%p47_p5)  ;;  %233 = vst [vmem:[%s208_s17 + $0x18] sm:$0xff] (%p47_p5), %v232_v3 }
  0x1c   : > { %235 = vst [vmem:[%s208_s17 + $0x20] sm:$0xff] (%p47_p5), %v234_v4  ;;  %237 = vst [vmem:[%s208_s17 + $0x28] sm:$0xff] (%p47_p5), %v236_v5  ;;  %v238_v6 = vld [vmem:[%s213_s16 + $0xc0] sm:$0xff] (%p47_p5)  ;;  %v240_v7 = vld [vmem:[%s213_s16 + $0xc8] sm:$0xff] (%p47_p5) }
  0x1d   : > { %239 = vst [vmem:[%s208_s17 + $0x30] sm:$0xff] %v238_v6  ;;  %241 = vst [vmem:[%s208_s17 + $0x38] sm:$0xff] %v240_v7 }
  0x1e PF: > { %p819_p9 = scmp.ge.s32.totalorder %s970_s24, 1  ;;  %p262_p10 = scmp.lt.s32.totalorder %s970_s24, 5 }
  0x20   : > { %p263_p11 = pnand %p819_p9, %p262_p10 }
  0x21   : > { %p308_p12 = scmp.lt.s32.totalorder (!%p263_p11), %s958_s21, 1  ;;  %v972_v8 = vmov (!%p263_p11), 0   ;;  %v442_v15 = vld [vmem:[%s1145_s3 + $0x8] sm:$0xff] (!%p263_p11)  ;;  %v441_v16 = vld [vmem:[%s1145_s3] sm:$0xff] (!%p263_p11)  ;;  %v444_v19 = vld [vmem:[%s1145_s3 + $0x18] sm:$0xff] (!%p263_p11)  ;;  %v973_v21 = vmov (!%p263_p11), 0.0  }
  0x22   : > { %266 = sbr.rel (%p263_p11) target bundleno = 431 (0x1af), region = 59  ;;  %915 = vset.pattern.permute.xlu1 (!%p263_p11), %v972_v8  ;;  %914 = vset.pattern.permute.xlu0 (!%p263_p11), %v972_v8  ;;  %v443_v20 = vld [vmem:[%s1145_s3 + $0x10] sm:$0xff] (!%p263_p11)  ;;  %s269_s29 = sand.u32 (!%p263_p11), 1, %s946_s18  }
  0x23   : > { %570 = vmatprep.mubr.f32.mxu0 (!%p263_p11), %v973_v21  ;;  %647 = vmatprep.mubr.f32.mxu1 (!%p263_p11), %v973_v21  ;;  %s1092_s6 = sshll.u32 (!%p263_p11), %s269_s29, 6 }
  0x24   : > { %s304_s12 = scalar_lea.vmem (!%p263_p11), [#allocation3], %s1092_s6 }
  0x29   : > { %s309_s27 = scalar_select %p308_p12, %s958_s21, 1 }
  0x2a   : > { %s831_s13 = sshll.u32 (%p1052_p6), %s958_s21, 1 }
  0x2b   : > { %s837_s28 = sshll.u32 %s309_s27, 5  ;;  %s676_s14 = sadd.s32 (%p1052_p6), %s954_s20, %s831_s13 }
  0x2c   : > { %s317_s7 = scalar_lea.vmem %s1144_s2, %s837_s28  ;;  %s312_s11 = scalar_lea.vmem %s1143_s1, %s837_s28 }
  0x2d   : > { %v385_v9 = vld [vmem:[%s317_s7] sm:$0xff]  ;;  %v386_v11 = vld [vmem:[%s317_s7 + $0x8] sm:$0xff]  ;;  %v348_v13 = vld [vmem:[%s312_s11 + $0x18] sm:$0xff]  ;;  %s839_s15 = sshll.u32 (%p1052_p6), %s676_s14, 5 }
  0x2e   : > { %v345_v10 = vld [vmem:[%s312_s11] sm:$0xff]  ;;  %391 = vperm.xlu1 %915, %v385_v9   ;;  %v346_v12 = vld [vmem:[%s312_s11 + $0x8] sm:$0xff]  ;;  %v347_v14 = vld [vmem:[%s312_s11 + $0x10] sm:$0xff]  ;;  %s679_s27 = scalar_lea.vmem (%p1052_p6), %s1147_s5, %s839_s15 }
  0x2f   : > { %351 = vperm.xlu0 %914, %v345_v10   ;;  %v388_v17 = vld [vmem:[%s317_s7 + $0x18] sm:$0xff]  ;;  %v387_v18 = vld [vmem:[%s317_s7 + $0x10] sm:$0xff]  ;;  %s271_s7 = scalar_lea.vmem [#allocation2], %s1092_s6 }
  0x30   : > { %v321_v22 = vld [vmem:[%s271_s7] sm:$0xff]  ;;  %v322_v23 = vld [vmem:[%s271_s7 + $0x8] sm:$0xff]  ;;  %v323_v28 = vld [vmem:[%s271_s7 + $0x10] sm:$0xff] }
  0x31   : > { %v329_v24 = vunpack.c.l.bf16 %v321_v22  ;;  %v330_v25 = vunpack.c.h.bf16 %v321_v22  ;;  %v331_v26 = vunpack.c.l.bf16 %v322_v23  ;;  %v332_v27 = vunpack.c.h.bf16 %v322_v23  ;;  %v324_v29 = vld [vmem:[%s271_s7 + $0x18] sm:$0xff]  ;;  %v327_v40 = vld [vmem:[%s271_s7 + $0x30] sm:$0xff]  ;;  %v325_v46 = vld [vmem:[%s271_s7 + $0x20] sm:$0xff] }
  0x32   : > { %396 = vperm.xlu1 %915, %v386_v11   ;;  %v333_v32 = vunpack.c.l.bf16 %v323_v28  ;;  %v334_v33 = vunpack.c.h.bf16 %v323_v28  ;;  %v335_v34 = vunpack.c.l.bf16 %v324_v29  ;;  %v336_v35 = vunpack.c.h.bf16 %v324_v29  ;;  %v328_v41 = vld [vmem:[%s271_s7 + $0x38] sm:$0xff]  ;;  %v326_v47 = vld [vmem:[%s271_s7 + $0x28] sm:$0xff] }
  0x33   : > { %356 = vperm.xlu0 %914, %v346_v12   ;;  %v341_v54 = vunpack.c.l.bf16 %v327_v40  ;;  %v342_v55 = vunpack.c.h.bf16 %v327_v40  ;;  %v343_v56 = vunpack.c.l.bf16 %v328_v41  ;;  %v344_v57 = vunpack.c.h.bf16 %v328_v41 }
  0x34   : > { %v337_v58 = vunpack.c.l.bf16 %v325_v46  ;;  %v338_v59 = vunpack.c.h.bf16 %v325_v46  ;;  %v339_v60 = vunpack.c.l.bf16 %v326_v47  ;;  %v340_v61 = vunpack.c.h.bf16 %v326_v47 }
  0x36   : > { %366 = vperm.xlu1 %915, %v348_v13  }
  0x37   : > { %361 = vperm.xlu0 %914, %v347_v14  }
  0x3a   : > { %452 = vperm.xlu1 %915, %v442_v15  }
  0x3b   : > { %447 = vperm.xlu0 %914, %v441_v16  }
  0x3e   : > { %406 = vperm.xlu1 %915, %v388_v17  }
  0x3f   : > { %401 = vperm.xlu0 %914, %v387_v18  }
  0x42   : > { %462 = vperm.xlu1 %915, %v444_v19  }
  0x43   : > { %457 = vperm.xlu0 %914, %v443_v20  }
  0xad   : > { %v392_v30 = vpop.permute.xlu1 %391 }
  0xae   : > { %v352_v31 = vpop.permute.xlu0 %351 }
  0xaf   : > { %v369_v36 = vmul.f32 %v352_v31, %v329_v24  ;;  %v370_v37 = vmul.f32 %v352_v31, %v330_v25  ;;  %v371_v38 = vmul.f32 %v352_v31, %v331_v26  ;;  %v372_v39 = vmul.f32 %v352_v31, %v332_v27 }
  0xb1   : > { %v409_v42 = vadd.f32 %v392_v30, %v369_v36  ;;  %v411_v43 = vadd.f32 %v392_v30, %v371_v38  ;;  %v397_v44 = vpop.permute.xlu1 %396  ;;  %v410_v48 = vadd.f32 %v392_v30, %v370_v37  ;;  %v412_v49 = vadd.f32 %v392_v30, %v372_v39 }
  0xb2   : > { %v357_v45 = vpop.permute.xlu0 %356 }
  0xb3   : > { %v373_v50 = vmul.f32 %v357_v45, %v333_v32  ;;  %v374_v51 = vmul.f32 %v357_v45, %v334_v33  ;;  %v375_v52 = vmul.f32 %v357_v45, %v335_v34  ;;  %v376_v53 = vmul.f32 %v357_v45, %v336_v35 }
  0xb4   : > { %vm426_vm0 = vcmp.ge.f32.partialorder %v410_v48, 0.0  ;;  %vm428_vm1 = vcmp.ge.f32.partialorder %v412_v49, 0.0  ;;  %vm425_vm2 = vcmp.ge.f32.partialorder %v409_v42, 0.0  ;;  %vm427_vm3 = vcmp.ge.f32.partialorder %v411_v43, 0.0 }
  0xb5   : > { %v413_v62 = vadd.f32 %v397_v44, %v373_v50  ;;  %v415_v63 = vadd.f32 %v397_v44, %v375_v52  ;;  %v367_v0 = vpop.permute.xlu1 %366  ;;  %v414_v2 = vadd.f32 %v397_v44, %v374_v51  ;;  %v416_v3 = vadd.f32 %v397_v44, %v376_v53 }
  0xb6   : > { %v362_v1 = vpop.permute.xlu0 %361  ;;  %v381_v4 = vmul.f32 %v367_v0, %v341_v54  ;;  %v382_v5 = vmul.f32 %v367_v0, %v342_v55  ;;  %v383_v6 = vmul.f32 %v367_v0, %v343_v56  ;;  %v384_v7 = vmul.f32 %v367_v0, %v344_v57 }
  0xb7   : > { %v377_v8 = vmul.f32 %v362_v1, %v337_v58  ;;  %v378_v9 = vmul.f32 %v362_v1, %v338_v59  ;;  %v379_v10 = vmul.f32 %v362_v1, %v339_v60  ;;  %v380_v11 = vmul.f32 %v362_v1, %v340_v61 }
  0xb8   : > { %vm430_vm4 = vcmp.ge.f32.partialorder %v414_v2, 0.0  ;;  %vm432_vm5 = vcmp.ge.f32.partialorder %v416_v3, 0.0  ;;  %vm429_vm6 = vcmp.ge.f32.partialorder %v413_v62, 0.0  ;;  %vm431_vm7 = vcmp.ge.f32.partialorder %v415_v63, 0.0 }
  0xb9   : > { %v453_v12 = vpop.permute.xlu1 %452 }
  0xba   : > { %v448_v13 = vpop.permute.xlu0 %447  ;;  %v469_v14 = vmul.f32 %v453_v12, %v413_v62  ;;  %v471_v15 = vmul.f32 %v453_v12, %v415_v63  ;;  %v470_v19 = vmul.f32 %v453_v12, %v414_v2  ;;  %v472_v22 = vmul.f32 %v453_v12, %v416_v3 }
  0xbb   : > { %v465_v16 = vmul.f32 %v448_v13, %v409_v42  ;;  %v467_v17 = vmul.f32 %v448_v13, %v411_v43  ;;  %v466_v18 = vmul.f32 %v448_v13, %v410_v48  ;;  %v468_v20 = vmul.f32 %v448_v13, %v412_v49 }
  0xbc   : > { %v485_v24 = vsel %vm429_vm6, %v413_v62, %v469_v14  ;;  %v487_v26 = vsel %vm431_vm7, %v415_v63, %v471_v15  ;;  %v486_v30 = vsel %vm430_vm4, %v414_v2, %v470_v19  ;;  %v488_v32 = vsel %vm432_vm5, %v416_v3, %v472_v22  ;;  %v497_v3 = vld [vmem:[%s1146_s4] sm:$0xff] }
  0xbd   : > { %v481_v23 = vsel %vm425_vm2, %v409_v42, %v465_v16  ;;  %v483_v25 = vsel %vm427_vm3, %v411_v43, %v467_v17  ;;  %v407_v27 = vpop.permute.xlu1 %406  ;;  %v482_v29 = vsel %vm426_vm0, %v410_v48, %v466_v18  ;;  %v484_v31 = vsel %vm428_vm1, %v412_v49, %v468_v20 }
  0xbe   : > { %v402_v28 = vpop.permute.xlu0 %401  ;;  %v421_v33 = vadd.f32 %v407_v27, %v381_v4  ;;  %v422_v34 = vadd.f32 %v407_v27, %v382_v5  ;;  %v423_v35 = vadd.f32 %v407_v27, %v383_v6  ;;  %v424_v36 = vadd.f32 %v407_v27, %v384_v7  ;;  %v498_v4 = vld [vmem:[%s1146_s4 + $0x8] sm:$0xff] }
  0xbf   : > { %v417_v37 = vadd.f32 %v402_v28, %v377_v8  ;;  %v418_v38 = vadd.f32 %v402_v28, %v378_v9  ;;  %v419_v39 = vadd.f32 %v402_v28, %v379_v10  ;;  %v420_v40 = vadd.f32 %v402_v28, %v380_v11 }
  0xc0   : > { %v840_v41 = vpack.c.bf16 %v486_v30, %v482_v29  ;;  %v848_v42 = vpack.c.bf16 %v488_v32, %v484_v31  ;;  %v842_v43 = vpack.c.bf16 %v485_v24, %v481_v23  ;;  %v850_v44 = vpack.c.bf16 %v487_v26, %v483_v25 }
  0xc1   : > { %v463_v45 = vpop.permute.xlu1 %462  ;;  %vm434_vm8 = vcmp.ge.f32.partialorder %v418_v38, 0.0  ;;  %vm438_vm9 = vcmp.ge.f32.partialorder %v422_v34, 0.0  ;;  %vm436_vm10 = vcmp.ge.f32.partialorder %v420_v40, 0.0  ;;  %vm440_vm11 = vcmp.ge.f32.partialorder %v424_v36, 0.0 }
  0xc2   : > { %v458_v46 = vpop.permute.xlu0 %457  ;;  %841 = vmatprep.subr.bf16.mxu0 %v840_v41  ;;  %849 = vmatprep.subr.bf16.mxu1 %v848_v42  ;;  %v477_v47 = vmul.f32 %v463_v45, %v421_v33  ;;  %v478_v48 = vmul.f32 %v463_v45, %v422_v34  ;;  %v479_v49 = vmul.f32 %v463_v45, %v423_v35  ;;  %vm433_vm12 = vcmp.ge.f32.partialorder %v417_v37, 0.0 }
  0xc3   : > { %843 = vmatpush1.bf16.msra.mxu0 %v842_v43  ;;  %851 = vmatpush1.bf16.msra.mxu1 %v850_v44  ;;  %v480_v50 = vmul.f32 %v463_v45, %v424_v36  ;;  %v473_v51 = vmul.f32 %v458_v46, %v417_v37  ;;  %v474_v52 = vmul.f32 %v458_v46, %v418_v38  ;;  %vm437_vm13 = vcmp.ge.f32.partialorder %v421_v33, 0.0 }
  0xc4   : > { %v475_v53 = vmul.f32 %v458_v46, %v419_v39  ;;  %v476_v54 = vmul.f32 %v458_v46, %v420_v40  ;;  %v494_v55 = vsel %vm438_vm9, %v422_v34, %v478_v48  ;;  %v493_v56 = vsel %vm437_vm13, %v421_v33, %v477_v47 }
  0xc5   : > { %v490_v57 = vsel %vm434_vm8, %v418_v38, %v474_v52  ;;  %v496_v58 = vsel %vm440_vm11, %v424_v36, %v480_v50  ;;  %v489_v59 = vsel %vm433_vm12, %v417_v37, %v473_v51  ;;  %vm435_vm14 = vcmp.ge.f32.partialorder %v419_v39, 0.0 }
  0xc6   : > { %v844_v60 = vpack.c.bf16 %v494_v55, %v490_v57  ;;  %v492_v61 = vsel %vm436_vm10, %v420_v40, %v476_v54  ;;  %v846_v62 = vpack.c.bf16 %v493_v56, %v489_v59  ;;  %vm439_vm15 = vcmp.ge.f32.partialorder %v423_v35, 0.0 }
  0xc7   : > { %v852_v63 = vpack.c.bf16 %v496_v58, %v492_v61  ;;  %v491_v0 = vsel %vm435_vm14, %v419_v39, %v475_v53  ;;  %v495_v1 = vsel %vm439_vm15, %v423_v35, %v479_v49  ;;  %vm499_vm0 = vcmask 261120  }
  0xc8   : > { %845 = vmatprep.subr.bf16.mxu0 %v844_v60  ;;  %v854_v2 = vpack.c.bf16 %v495_v1, %v491_v0 }
  0xc9   : > { %853 = vmatprep.subr.bf16.mxu1 %v852_v63  ;;  %847 = vmatpush1.bf16.msra.mxu0 %v846_v62 }
  0xca   : > { %855 = vmatpush1.bf16.msra.mxu1 %v854_v2 }
  0xcc   : > { %826 = vmatmul.mubr.msk.f32.vlgmr.msra.gmra.mrb[0].mxu0 %vm499_vm0, %v497_v3 }
  0xcd   : > { %828 = vmatmul.mubr.msk.f32.vlgmr.msra.gmra.mrb[0].mxu1 %vm499_vm0, %v497_v3  ;;  %576 = vmatprep.mubr.f32.mxu0 %v973_v21 }
  0xce   : > { %653 = vmatprep.mubr.f32.mxu1 %v973_v21 }
  0xd0   : > { %827 = vmatmul.mubr.msk.f32.gmra.mrb[2].mxu0 %vm499_vm0, %v498_v4 }
  0xd1   : > { %829 = vmatmul.mubr.msk.f32.gmra.mrb[2].mxu1 %vm499_vm0, %v498_v4 }
 0x19f   : > { %v572_v5 = vpop.f32.mrb[0].mxu0 }
 0x1a0   : > { %660 = vst [vmem:[%s304_s12] sm:$0xff] %v572_v5  ;;  %v649_v6 = vpop.f32.mrb[0].mxu1  ;;  %v574_v7 = vpop.f32.mrb[1].mxu0  ;;  %674 = sbr.rel (!%p1052_p6) target bundleno = 431 (0x1af), region = 67 }
 0x1a1   : > { %662 = vst [vmem:[%s304_s12 + $0x10] sm:$0xff] %v649_v6  ;;  %661 = vst [vmem:[%s304_s12 + $0x8] sm:$0xff] %v574_v7  ;;  %v651_v8 = vpop.f32.mrb[1].mxu1 }
 0x1a2   : > { %663 = vst [vmem:[%s304_s12 + $0x18] sm:$0xff] %v651_v8 }
 0x1a3   : > { %v578_v9 = vpop.f32.mrb[2].mxu0 }
 0x1a4   : > { %664 = vst [vmem:[%s304_s12 + $0x20] sm:$0xff] %v578_v9  ;;  %v655_v10 = vpop.f32.mrb[2].mxu1  ;;  %v580_v11 = vpop.f32.mrb[3].mxu0 }
 0x1a5   : > { %666 = vst [vmem:[%s304_s12 + $0x30] sm:$0xff] %v655_v10  ;;  %665 = vst [vmem:[%s304_s12 + $0x28] sm:$0xff] %v580_v11  ;;  %v657_v12 = vpop.f32.mrb[3].mxu1 }
 0x1a6   : > { %667 = vst [vmem:[%s304_s12 + $0x38] sm:$0xff] %v657_v12 }
 0x1a7   : > { %v692_v21 = vld [vmem:[%s304_s12] sm:$0xff] }
 0x1a8   : > { %v694_v13 = vld [vmem:[%s304_s12 + $0x8] sm:$0xff]  ;;  %v696_v14 = vld [vmem:[%s304_s12 + $0x10] sm:$0xff]  ;;  %693 = vst [vmem:[%s679_s27] sm:$0xff] %v692_v21 }
 0x1a9   : > { %v698_v15 = vld [vmem:[%s304_s12 + $0x18] sm:$0xff]  ;;  %695 = vst [vmem:[%s679_s27 + $0x8] sm:$0xff] %v694_v13  ;;  %697 = vst [vmem:[%s679_s27 + $0x10] sm:$0xff] %v696_v14 }
 0x1aa   : > { %699 = vst [vmem:[%s679_s27 + $0x18] sm:$0xff] %v698_v15 }
 0x1ab   : > { %v700_v16 = vld [vmem:[%s304_s12 + $0x20] sm:$0xff] }
 0x1ac   : > { %v702_v17 = vld [vmem:[%s304_s12 + $0x28] sm:$0xff]  ;;  %v704_v18 = vld [vmem:[%s304_s12 + $0x30] sm:$0xff]  ;;  %701 = vst [vmem:[%s679_s27 + $0x80] sm:$0xff] %v700_v16 }
 0x1ad   : > { %v706_v19 = vld [vmem:[%s304_s12 + $0x38] sm:$0xff]  ;;  %703 = vst [vmem:[%s679_s27 + $0x88] sm:$0xff] %v702_v17  ;;  %705 = vst [vmem:[%s679_s27 + $0x90] sm:$0xff] %v704_v18 }
 0x1ae   : > { %707 = vst [vmem:[%s679_s27 + $0x98] sm:$0xff] %v706_v19 }
 0x1af PF: > { %s15_s24 = sadd.s32 1, %s970_s24   ;;  %s1149_s18 = smov %s950_s19 }
 0x1b0   : > { %p12_p13 = scmp.ge.s32.totalorder %s15_s24, 6   ;;  %s1150_s19 = smov %s1060_s10 }
 0x1b1   : > { %s1151_s20 = smov %s962_s22  ;;  %s1152_s21 = smov %s966_s23 }
 0x1b2   : > { %s1153_s22 = smov %s1156_s25  ;;  %s1154_s23 = smov %s1160_s26 }
 0x1b3   :  { %14 = sbr.rel (!%p12_p13) target bundleno = 4 (0x4), region = 127 }

// kernel: _lambda_.4
= control target key start
LH: loop header
LB: loop body
LE: loop exit
PB: predicated region body
PF: predicated region fallthrough
CT: control target
= control target key end

     0   :  { %s6302_s18 = smov 0   ;;  %s6304_s19 = smov 0   ;;  %s7207_s0 = inlined_call_operand.vmem [shape: bf16[27,32,8], index: 0, kind: input, shape index: {}]   ;;  %s7208_s1 = inlined_call_operand.vmem [shape: bf16[8,3072], index: 1, kind: input, shape index: {}, may-alias: {1,2}]   ;;  %s7209_s2 = inlined_call_operand.vmem [shape: bf16[8,3072], index: 2, kind: input, shape index: {}, may-alias: {1,2}]   ;;  %s7210_s3 = inlined_call_operand.vmem [shape: f32[1,1024], index: 3, kind: input, shape index: {}]   ;;  %s7211_s4 = inlined_call_operand.vmem [shape: bf16[32,2048], index: 4, kind: output, shape index: {0}]   ;;  %s7212_s5 = inlined_call_operand.vmem [shape: f32[2,32,2], index: 5, kind: output, shape index: {1}]  }
   0x1   :  { %s6306_s20 = smov 0   ;;  %s6308_s21 = smov 0  }
   0x2   :  { %s6310_s22 = smov 0   ;;  %s6312_s23 = smov 0  }
   0x3   :  { %s6314_s24 = smov 0  }
   0x4 LB: > { %s25_s25 = sadd.s32 1, %s6234_s22  ;;  %s28_s26 = sadd.s32 1, %s6238_s23  ;;  %s6242_s24 = sphi %s6314_s24, %s16_s24   ;;  %s6238_s23 = sphi %s6312_s23, %s7219_s23   ;;  %s6234_s22 = sphi %s6310_s22, %s7218_s22   ;;  %s6230_s21 = sphi %s6308_s21, %s7217_s21   ;;  %s6226_s20 = sphi %s6306_s20, %s7216_s20   ;;  %s6222_s19 = sphi %s6304_s19, %s7215_s19   ;;  %s6218_s18 = sphi %s6302_s18, %s7214_s18  }
   0x5   : > { %p26_p0 = scmp.ge.s32.totalorder %s25_s25, 2  ;;  %s5252_s27 = sadd.s32 4294967295, %s6242_s24  }
   0x6   : > { %s5254_s28 = sshll.u32 %s6238_s23, 1  ;;  %p158_p1 = scmp.ne.s32.totalorder %s6222_s19, %s6218_s18 }
   0x7   : > { %s7221_s25 = smov (%p26_p0, %s25_s25), 0  ;;  %s7223_s26 = smov (!%p26_p0, %s28_s26), %s6238_s23 }
   0x8   : > { %s142_s29 = sadd.s32 %s6234_s22, %s5254_s28  ;;  %p30_p2 = scmp.ge.s32.totalorder %s7223_s26, 2 }
   0x9   : > { %p159_p3 = scmp.eq.s32.totalorder %s5252_s27, 3  ;;  %p5258_p4 = scmp.ge.s32.totalorder %s6242_s24, 1 }
   0xa   : > { %p248_p5 = scmp.lt.s32.totalorder %s6242_s24, 5  ;;  %s7225_s26 = smov (%p30_p2, %s7223_s26), 0 }
   0xb   : > { %p6351_p6 = por %p159_p3, %p158_p1  ;;  %s5255_s6 = sshll.u32 %s7225_s26, 1 }
   0xc   : > { %p249_p7 = pnand %p5258_p4, %p248_p5  ;;  %s144_s7 = sadd.s32 %s5255_s6, %s7221_s25 }
   0xd   : > { %s145_s8 = ssub.s32 %s142_s29, %s144_s7  ;;  %s148_s9 = sadd.s32 1, %s6222_s19  ;;  %v6244_v0 = vmov (!%p249_p7), 0   ;;  %vm383_vm0 = vcmask (!%p249_p7), 1039360   ;;  %vm395_vm1 = vcmask (!%p249_p7), 1043456   ;;  %v6129_v16 = vld [vmem:[%s7207_s0 + $0x10] sm:$0xff] (!%p249_p7)   ;;  %vm388_vm2 = vcmask (!%p249_p7), 64512  }
   0xe   : > { %p146_p8 = scmp.eq.s32.totalorder %s145_s8, 0  ;;  %252 = sbr.rel (%p249_p7) target bundleno = 959 (0x3bf), region = 36  ;;  %440 = vmatprep.mubr.bf16.mxu0 (!%p249_p7), %v6244_v0  ;;  %493 = vmatprep.mubr.bf16.mxu1 (!%p249_p7), %v6244_v0  ;;  %vm673_vm3 = vcmask (!%p249_p7), 1031168   ;;  %v6130_v27 = vld [vmem:[%s7207_s0 + $0x18] sm:$0xff] (!%p249_p7)   ;;  %v6131_v34 = vld [vmem:[%s7207_s0] sm:$0xff] (!%p249_p7)   ;;  %vm843_vm4 = vcmask (!%p249_p7), 965632  }
   0xf   : > { %s294_s11 = smul.u32 (!%p249_p7), 3, %s6230_s21  ;;  %p324_p11 = scmp.lt.s32.totalorder (!%p249_p7), %s6230_s21, 1  ;;  %v6132_v43 = vld [vmem:[%s7207_s0 + $0x8] sm:$0xff] (!%p249_p7)   ;;  %v6133_v48 = vld [vmem:[%s7207_s0 + $0x20] sm:$0xff] (!%p249_p7)   ;;  %vm1013_vm5 = vcmask (!%p249_p7), 957440   ;;  %v6135_v63 = vld [vmem:[%s7207_s0 + $0x30] sm:$0xff] (!%p249_p7)  }
  0x10   : > { %s6359_s10 = scalar_select %p146_p8, %s6222_s19, %s148_s9  }
  0x11   : > { %s295_s12 = sadd.s32 (!%p249_p7), %s6226_s20, %s294_s11  ;;  %s6245_s8 = smov (!%p249_p7), 127   ;;  %v6134_v56 = vld [vmem:[%s7207_s0 + $0x28] sm:$0xff] (!%p249_p7)   ;;  %vm1183_vm6 = vcmask (!%p249_p7), 949248   ;;  %vm1353_vm7 = vcmask (!%p249_p7), 883712   ;;  %vm1523_vm8 = vcmask (!%p249_p7), 875520   ;;  %vm1693_vm9 = vcmask (!%p249_p7), 867328  }
  0x12   : > { %s5260_s13 = sshll.u32 (!%p249_p7), %s295_s12, 2  ;;  %s6247_s16 = smov (!%p249_p7), 118   ;;  %vm1863_vm10 = vcmask (!%p249_p7), 228352   ;;  %vm2033_vm11 = vcmask (!%p249_p7), 220160   ;;  %vm2203_vm12 = vcmask (!%p249_p7), 211968   ;;  %vm2373_vm13 = vcmask (!%p249_p7), 146432  }
  0x13   : > { %p297_p9 = scmp.lt.s32.totalorder (!%p249_p7), %s5260_s13, 23  ;;  %s5613_s14 = sadd.s32 (!%p249_p7), 4, %s5260_s13  ;;  %vm2543_vm14 = vcmask (!%p249_p7), 138240   ;;  %vm2713_vm15 = vcmask (!%p249_p7), 130048  }
  0x14   : > { %p308_p10 = scmp.lt.s32.totalorder (!%p249_p7), %s5613_s14, 23  ;;  %s6248_s17 = smov (!%p249_p7), 117  }
  0x15   : > { %s7227_s13 = smov (!%p297_p9, %s5260_s13), 23  ;;  %s6251_s29 = smov 107  }
  0x16   : > { %s7229_s14 = smov (!%p308_p10, %s5613_s14), 23  ;;  %s5261_s15 = sshll.u32 %s7227_s13, 2 }
  0x17   : > { %s300_s27 = scalar_lea.vmem %s7208_s1, %s5261_s15  ;;  %s5263_s28 = sshll.u32 %s7229_s14, 2 }
  0x18   : > { %v331_v1 = vld [vmem:[%s300_s27 + $0x8] sm:$0xff]  ;;  %v330_v2 = vld [vmem:[%s300_s27] sm:$0xff]  ;;  %s311_s7 = scalar_lea.vmem %s7209_s2, %s5263_s28  ;;  %s6246_s15 = smov 126  }
  0x19   : > { %333 = vst [vmem:[#allocation2 + $0x8] sm:$0xff] %v331_v1  ;;  %v6371_v3 = vcombine.low %v331_v1, %v331_v1  ;;  %332 = vst [vmem:[#allocation2] sm:$0xff] %v330_v2  ;;  %v6373_v4 = vcombine.low %v330_v2, %v330_v2  ;;  %v334_v5 = vld [vmem:[%s311_s7] sm:$0xff]  ;;  %v6378_v6 = vcombine.high %v331_v1, %v331_v1  ;;  %s325_s9 = scalar_select %p324_p11, %s6230_s21, 1 }
  0x1a   : > { %336 = vst [vmem:[#allocation2 + $0x10] sm:$0xff] %v334_v5  ;;  %v6380_v7 = vcombine.high %v330_v2, %v330_v2  ;;  %s6249_s27 = smov 116   ;;  %s6250_s28 = smov 108  }
  0x1b   : > { %377 = vrot.lane.b32.xlu1 %v6371_v3, %s6245_s8  ;;  %373 = vrot.lane.b32.xlu0 %v6373_v4, %s6245_s8  ;;  %s5614_s11 = sshll.u32 %s325_s9, 5  ;;  %s6252_s6 = smov 106   ;;  %v531_v19 = vsel %vm395_vm1, %v6373_v4, 0  ;;  %v537_v23 = vsel %vm395_vm1, %v6371_v3, 0 }
  0x1c   : > { %s6386_s14 = scalar_lea.vmem %s7212_s5, %s5614_s11  ;;  %s6253_s7 = smov 28  }
  0x1d   : > { %s6255_s9 = smov 26   ;;  %s6256_s11 = smov 18  }
  0x1e   : > { %s6270_s13 = smov 34   ;;  %p5605_p13 = scmp.ne.s32.totalorder %s6226_s20, 0 }
  0x1f   : > { %379 = vrot.lane.b32.xlu1 %v6378_v6, %s6245_s8  ;;  %375 = vrot.lane.b32.xlu0 %v6380_v7, %s6245_s8 }
  0x20   : > { %v3368_v58 = vld [vmem:[#allocation2 + $0x4] sm:$0xff] }
  0x21   : > { %v6390_v8 = vld [vmem:[#allocation2 + $0x10] ss:$0 sps:$4 sm:$0xff]   ;;  %v6554_v62 = vcombine.low %v3368_v58, %v3368_v58 }
  0x22   : > { %v3369_v1 = vld [vmem:[#allocation2 + $0xc] sm:$0xff] }
  0x23   : > { %381 = vrot.lane.b32.xlu0 %v6390_v8, %s6245_s8  ;;  %663 = vrot.lane.b32.xlu1 %v6373_v4, %s6246_s15  ;;  %s6254_s8 = smov 27  }
  0x27   : > { %665 = vrot.lane.b32.xlu0 %v6380_v7, %s6246_s15  ;;  %667 = vrot.lane.b32.xlu1 %v6371_v3, %s6246_s15 }
  0x2b   : > { %669 = vrot.lane.b32.xlu0 %v6378_v6, %s6246_s15  ;;  %671 = vrot.lane.b32.xlu1 %v6390_v8, %s6246_s15  ;;  %s6257_s15 = smov 17  }
  0x2f   : > { %833 = vrot.lane.b32.xlu0 %v6373_v4, %s6247_s16  ;;  %835 = vrot.lane.b32.xlu1 %v6380_v7, %s6247_s16 }
  0x33   : > { %837 = vrot.lane.b32.xlu0 %v6371_v3, %s6247_s16  ;;  %839 = vrot.lane.b32.xlu1 %v6378_v6, %s6247_s16 }
  0x37   : > { %841 = vrot.lane.b32.xlu0 %v6390_v8, %s6247_s16  ;;  %1003 = vrot.lane.b32.xlu1 %v6373_v4, %s6248_s17  ;;  %s6261_s16 = smov 6  }
  0x3b   : > { %1005 = vrot.lane.b32.xlu0 %v6380_v7, %s6248_s17  ;;  %1007 = vrot.lane.b32.xlu1 %v6371_v3, %s6248_s17 }
  0x3f   : > { %1009 = vrot.lane.b32.xlu0 %v6378_v6, %s6248_s17  ;;  %1011 = vrot.lane.b32.xlu1 %v6390_v8, %s6248_s17  ;;  %s6265_s17 = smov 46  }
  0x43   : > { %1173 = vrot.lane.b32.xlu0 %v6373_v4, %s6249_s27  ;;  %1175 = vrot.lane.b32.xlu1 %v6380_v7, %s6249_s27 }
  0x47   : > { %1177 = vrot.lane.b32.xlu0 %v6371_v3, %s6249_s27  ;;  %1179 = vrot.lane.b32.xlu1 %v6378_v6, %s6249_s27 }
  0x4b   : > { %1181 = vrot.lane.b32.xlu0 %v6390_v8, %s6249_s27  ;;  %1343 = vrot.lane.b32.xlu1 %v6373_v4, %s6250_s28  ;;  %s6258_s27 = smov 16  }
  0x4f   : > { %1345 = vrot.lane.b32.xlu0 %v6380_v7, %s6250_s28  ;;  %1347 = vrot.lane.b32.xlu1 %v6371_v3, %s6250_s28 }
  0x53   : > { %1349 = vrot.lane.b32.xlu0 %v6378_v6, %s6250_s28  ;;  %1351 = vrot.lane.b32.xlu1 %v6390_v8, %s6250_s28  ;;  %s6262_s28 = smov 56  }
  0x57   : > { %1513 = vrot.lane.b32.xlu0 %v6373_v4, %s6251_s29  ;;  %1515 = vrot.lane.b32.xlu1 %v6380_v7, %s6251_s29 }
  0x5b   : > { %1517 = vrot.lane.b32.xlu0 %v6371_v3, %s6251_s29  ;;  %1519 = vrot.lane.b32.xlu1 %v6378_v6, %s6251_s29 }
  0x5f   : > { %1521 = vrot.lane.b32.xlu0 %v6390_v8, %s6251_s29  ;;  %1683 = vrot.lane.b32.xlu1 %v6373_v4, %s6252_s6  ;;  %s6266_s29 = smov 45  }
  0x63   : > { %1685 = vrot.lane.b32.xlu0 %v6380_v7, %s6252_s6  ;;  %1687 = vrot.lane.b32.xlu1 %v6371_v3, %s6252_s6 }
  0x67   : > { %1689 = vrot.lane.b32.xlu0 %v6378_v6, %s6252_s6  ;;  %1691 = vrot.lane.b32.xlu1 %v6390_v8, %s6252_s6  ;;  %s6259_s6 = smov 8  }
  0x6b   : > { %1853 = vrot.lane.b32.xlu0 %v6373_v4, %s6253_s7  ;;  %1855 = vrot.lane.b32.xlu1 %v6380_v7, %s6253_s7 }
  0x6f   : > { %1857 = vrot.lane.b32.xlu0 %v6371_v3, %s6253_s7  ;;  %1859 = vrot.lane.b32.xlu1 %v6378_v6, %s6253_s7 }
  0x73   : > { %1861 = vrot.lane.b32.xlu0 %v6390_v8, %s6253_s7  ;;  %2023 = vrot.lane.b32.xlu1 %v6373_v4, %s6254_s8  ;;  %s6263_s7 = smov 55  }
  0x77   : > { %2025 = vrot.lane.b32.xlu0 %v6380_v7, %s6254_s8  ;;  %2027 = vrot.lane.b32.xlu1 %v6371_v3, %s6254_s8 }
  0x7b   : > { %2029 = vrot.lane.b32.xlu0 %v6378_v6, %s6254_s8  ;;  %2031 = vrot.lane.b32.xlu1 %v6390_v8, %s6254_s8 }
  0x7f   : > { %2193 = vrot.lane.b32.xlu0 %v6373_v4, %s6255_s9  ;;  %2195 = vrot.lane.b32.xlu1 %v6380_v7, %s6255_s9 }
  0x83   : > { %2197 = vrot.lane.b32.xlu0 %v6371_v3, %s6255_s9  ;;  %2199 = vrot.lane.b32.xlu1 %v6378_v6, %s6255_s9 }
  0x87   : > { %2201 = vrot.lane.b32.xlu0 %v6390_v8, %s6255_s9  ;;  %2363 = vrot.lane.b32.xlu1 %v6373_v4, %s6256_s11  ;;  %s6260_s9 = smov 7  }
  0x8b   : > { %2365 = vrot.lane.b32.xlu0 %v6380_v7, %s6256_s11  ;;  %2367 = vrot.lane.b32.xlu1 %v6371_v3, %s6256_s11 }
  0x8d   : > { %v378_v9 = vpop.permute.xlu1 %377  ;;  %v374_v10 = vpop.permute.xlu0 %373 }
  0x8f   : > { %2369 = vrot.lane.b32.xlu0 %v6378_v6, %s6256_s11  ;;  %2371 = vrot.lane.b32.xlu1 %v6390_v8, %s6256_s11  ;;  %s6264_s11 = smov 54  }
  0x91   : > { %v380_v11 = vpop.permute.xlu1 %379  ;;  %v376_v12 = vpop.permute.xlu0 %375 }
  0x92   : > { %v385_v13 = vsel %vm383_vm0, %v376_v12, %v378_v9  ;;  %v384_v14 = vsel %vm383_vm0, %v374_v10, %v376_v12  ;;  %v386_v17 = vsel %vm383_vm0, %v378_v9, %v380_v11  ;;  %v6579_v12 = vld [vmem:[#allocation2 + $0x14] ss:$0 sps:$4 sm:$0xff]  }
  0x93   : > { %5278 = vmatprep.subr.msk.bf16.mxu0 %vm395_vm1, %v385_v13  ;;  %v397_v15 = vsel %vm395_vm1, %v384_v14, 0  ;;  %2533 = vrot.lane.b32.xlu0 %v6373_v4, %s6257_s15  ;;  %v403_v22 = vsel %vm395_vm1, %v386_v17, 0  ;;  %v6136_v13 = vld [vmem:[%s7207_s0 + $0x38] sm:$0xff]  }
  0x94   : > { %409 = vmatpush1.bf16.msra.mxu0 %v397_v15  ;;  %2535 = vrot.lane.b32.xlu1 %v6380_v7, %s6257_s15 }
  0x95   : > { %v382_v18 = vpop.permute.xlu0 %381  ;;  %5286 = vmatprep.subr.msk.bf16.mxu0 %vm395_vm1, %v6380_v7  ;;  %v664_v20 = vpop.permute.xlu1 %663 }
  0x96   : > { %v387_v21 = vsel %vm383_vm0, %v380_v11, %v382_v18  ;;  %v6137_v18 = vld [vmem:[%s7207_s0 + $0x40] sm:$0xff]   ;;  %vm3053_vm0 = vcmask 56320  }
  0x97   : > { %5279 = vmatmul.mubr.msk.bf16.vlgmr.msra.gmra.mrb[0].mxu0 %vm388_vm2, %v6129_v16  ;;  %5281 = vmatprep.subr.msk.bf16.mxu1 %vm395_vm1, %v387_v21 }
  0x98   : > { %462 = vmatpush1.bf16.msra.mxu1 %v403_v22  ;;  %543 = vmatpush1.bf16.msra.mxu0 %v531_v19 }
  0x99   : > { %5289 = vmatprep.subr.msk.bf16.mxu1 %vm395_vm1, %v6378_v6  ;;  %450 = vmatprep.mubr.bf16.mxu0 %v6244_v0  ;;  %v666_v24 = vpop.permute.xlu0 %665  ;;  %v668_v25 = vpop.permute.xlu1 %667 }
  0x9a   : > { %v675_v26 = vsel %vm673_vm3, %v666_v24, %v668_v25  ;;  %2537 = vrot.lane.b32.xlu0 %v6371_v3, %s6257_s15  ;;  %2539 = vrot.lane.b32.xlu1 %v6378_v6, %s6257_s15  ;;  %v674_v33 = vsel %vm673_vm3, %v664_v20, %v666_v24 }
  0x9b   : > { %5282 = vmatmul.mubr.msk.bf16.vlgmr.msra.gmra.mrb[0].mxu1 %vm388_vm2, %v6129_v16  ;;  %5298 = vmatprep.subr.msk.bf16.mxu0 %vm395_vm1, %v675_v26  ;;  %v685_v35 = vsel %vm395_vm1, %v674_v33, 0  ;;  %v6138_v26 = vld [vmem:[%s7207_s0 + $0x48] sm:$0xff]  }
  0x9c   : > { %596 = vmatpush1.bf16.msra.mxu1 %v537_v23  ;;  %503 = vmatprep.mubr.bf16.mxu1 %v6244_v0 }
  0x9d   : > { %v670_v28 = vpop.permute.xlu0 %669  ;;  %v672_v29 = vpop.permute.xlu1 %671 }
  0x9e   : > { %v677_v30 = vsel %vm673_vm3, %v670_v28, %v672_v29  ;;  %2541 = vrot.lane.b32.xlu0 %v6390_v8, %s6257_s15  ;;  %2703 = vrot.lane.b32.xlu1 %v6373_v4, %s6258_s27  ;;  %v676_v37 = vsel %vm673_vm3, %v668_v25, %v670_v28  ;;  %vm3223_vm3 = vcmask 48128  }
  0x9f   : > { %5280 = vmatmul.mubr.msk.bf16.gmra.mrb[4].mxu0 %vm388_vm2, %v6130_v27  ;;  %5301 = vmatprep.subr.msk.bf16.mxu1 %vm395_vm1, %v677_v30  ;;  %v691_v40 = vsel %vm395_vm1, %v676_v37, 0 }
  0xa0   : > { %574 = vmatprep.mubr.bf16.mxu0 %v6244_v0 }
  0xa1   : > { %v834_v31 = vpop.permute.xlu0 %833  ;;  %v836_v32 = vpop.permute.xlu1 %835 }
  0xa2   : > { %2705 = vrot.lane.b32.xlu0 %v6380_v7, %s6258_s27  ;;  %2707 = vrot.lane.b32.xlu1 %v6371_v3, %s6258_s27  ;;  %v844_v47 = vsel %vm843_vm4, %v834_v31, %v836_v32  ;;  %v6139_v31 = vld [vmem:[%s7207_s0 + $0x50] sm:$0xff]  }
  0xa3   : > { %5283 = vmatmul.mubr.msk.bf16.gmra.mrb[4].mxu1 %vm388_vm2, %v6130_v27  ;;  %v855_v49 = vsel %vm395_vm1, %v844_v47, 0 }
  0xa4   : > { %627 = vmatprep.mubr.bf16.mxu1 %v6244_v0 }
  0xa5   : > { %v838_v36 = vpop.permute.xlu0 %837  ;;  %v840_v39 = vpop.permute.xlu1 %839 }
  0xa6   : > { %v845_v38 = vsel %vm843_vm4, %v836_v32, %v838_v36  ;;  %2709 = vrot.lane.b32.xlu0 %v6378_v6, %s6258_s27  ;;  %2711 = vrot.lane.b32.xlu1 %v6390_v8, %s6258_s27  ;;  %v846_v50 = vsel %vm843_vm4, %v838_v36, %v840_v39  ;;  %s5264_s27 = sshll.u32 %s6226_s20, 2 }
  0xa7   : > { %5287 = vmatmul.mubr.msk.bf16.vlgmr.msra.gmra.mrb[0].mxu0 %vm388_vm2, %v6131_v34  ;;  %v861_v54 = vsel %vm395_vm1, %v846_v50, 0  ;;  %p317_p12 = scmp.lt.s32.totalorder %s5264_s27, 7 }
  0xa8   : > { %697 = vmatpush1.bf16.msra.mxu0 %v685_v35  ;;  %584 = vmatprep.mubr.bf16.mxu0 %v6244_v0 }
  0xa9   : > { %5310 = vmatprep.subr.msk.bf16.mxu0 %vm395_vm1, %v845_v38  ;;  %v842_v41 = vpop.permute.xlu0 %841  ;;  %v1004_v44 = vpop.permute.xlu1 %1003  ;;  %s7231_s27 = smov (!%p317_p12, %s5264_s27), 7 }
  0xaa   : > { %v847_v42 = vsel %vm843_vm4, %v840_v39, %v842_v41  ;;  %2873 = vrot.lane.b32.xlu0 %v6373_v4, %s6259_s6  ;;  %2875 = vrot.lane.b32.xlu1 %v6380_v7, %s6259_s6  ;;  %v6140_v39 = vld [vmem:[%s7207_s0 + $0x58] sm:$0xff]   ;;  %vm3409_vm4 = vcmask 457728  }
  0xab   : > { %5290 = vmatmul.mubr.msk.bf16.vlgmr.msra.gmra.mrb[0].mxu1 %vm388_vm2, %v6131_v34 }
  0xac   : > { %750 = vmatpush1.bf16.msra.mxu1 %v691_v40  ;;  %637 = vmatprep.mubr.bf16.mxu1 %v6244_v0 }
  0xad   : > { %5313 = vmatprep.subr.msk.bf16.mxu1 %vm395_vm1, %v847_v42  ;;  %v1006_v45 = vpop.permute.xlu0 %1005  ;;  %v1008_v46 = vpop.permute.xlu1 %1007 }
  0xae   : > { %2877 = vrot.lane.b32.xlu0 %v6371_v3, %s6259_s6  ;;  %2879 = vrot.lane.b32.xlu1 %v6378_v6, %s6259_s6  ;;  %v1015_v51 = vsel %vm1013_vm5, %v1006_v45, %v1008_v46  ;;  %v1014_v61 = vsel %vm1013_vm5, %v1004_v44, %v1006_v45  ;;  %v6141_v44 = vld [vmem:[%s7207_s0 + $0x60] sm:$0xff]  }
  0xaf   : > { %5288 = vmatmul.mubr.msk.bf16.gmra.mrb[4].mxu0 %vm388_vm2, %v6132_v43  ;;  %v1025_v2 = vsel %vm395_vm1, %v1014_v61, 0 }
  0xb0   : > { %728 = vmatprep.mubr.bf16.mxu0 %v6244_v0 }
  0xb1   : > { %v1010_v52 = vpop.permute.xlu0 %1009  ;;  %v1012_v53 = vpop.permute.xlu1 %1011 }
  0xb2   : > { %2881 = vrot.lane.b32.xlu0 %v6390_v8, %s6259_s6  ;;  %3043 = vrot.lane.b32.xlu1 %v6373_v4, %s6260_s9  ;;  %v1017_v55 = vsel %vm1013_vm5, %v1010_v52, %v1012_v53  ;;  %s319_s6 = scalar_lea.vmem %s7210_s3, %s7231_s27 }
  0xb3   : > { %5291 = vmatmul.mubr.msk.bf16.gmra.mrb[4].mxu1 %vm388_vm2, %v6132_v43 }
  0xb4   : > { %781 = vmatprep.mubr.bf16.mxu1 %v6244_v0 }
  0xb5   : > { %v1174_v57 = vpop.permute.xlu0 %1173  ;;  %v1176_v59 = vpop.permute.xlu1 %1175 }
  0xb6   : > { %3045 = vrot.lane.b32.xlu0 %v6380_v7, %s6260_s9  ;;  %3047 = vrot.lane.b32.xlu1 %v6371_v3, %s6260_s9  ;;  %v1184_v17 = vsel %vm1183_vm6, %v1174_v57, %v1176_v59  ;;  %v6143_v57 = vld [vmem:[%s7207_s0 + $0x70] sm:$0xff]  }
  0xb7   : > { %5299 = vmatmul.mubr.msk.bf16.vlgmr.msra.gmra.mrb[0].mxu0 %vm388_vm2, %v6133_v48  ;;  %v1195_v19 = vsel %vm395_vm1, %v1184_v17, 0 }
  0xb8   : > { %867 = vmatpush1.bf16.msra.mxu0 %v855_v49  ;;  %738 = vmatprep.mubr.bf16.mxu0 %v6244_v0 }
  0xb9   : > { %5322 = vmatprep.subr.msk.bf16.mxu0 %vm395_vm1, %v1015_v51  ;;  %v1178_v60 = vpop.permute.xlu0 %1177 }
  0xba   : > { %3049 = vrot.lane.b32.xlu0 %v6378_v6, %s6260_s9  ;;  %3051 = vrot.lane.b32.xlu1 %v6390_v8, %s6260_s9  ;;  %v1185_v5 = vsel %vm1183_vm6, %v1176_v59, %v1178_v60 }
  0xbb   : > { %5302 = vmatmul.mubr.msk.bf16.vlgmr.msra.gmra.mrb[0].mxu1 %vm388_vm2, %v6133_v48 }
  0xbc   : > { %920 = vmatpush1.bf16.msra.mxu1 %v861_v54  ;;  %791 = vmatprep.mubr.bf16.mxu1 %v6244_v0 }
  0xbd   : > { %5325 = vmatprep.subr.msk.bf16.mxu1 %vm395_vm1, %v1017_v55  ;;  %v1182_v9 = vpop.permute.xlu0 %1181 }
  0xbe   : > { %3213 = vrot.lane.b32.xlu0 %v6373_v4, %s6261_s16  ;;  %3215 = vrot.lane.b32.xlu1 %v6380_v7, %s6261_s16  ;;  %v6562_v4 = vcombine.high %v3368_v58, %v3368_v58  ;;  %v1180_v7 = vpop.permute.xlu1 %1179 }
  0xbf   : > { %5300 = vmatmul.mubr.msk.bf16.gmra.mrb[4].mxu0 %vm388_vm2, %v6134_v56  ;;  %v1187_v11 = vsel %vm1183_vm6, %v1180_v7, %v1182_v9  ;;  %v1186_v20 = vsel %vm1183_vm6, %v1178_v60, %v1180_v7  ;;  %vm3749_vm6 = vcmask 441344  }
  0xc0   : > { %898 = vmatprep.mubr.bf16.mxu0 %v6244_v0  ;;  %v1201_v24 = vsel %vm395_vm1, %v1186_v20, 0  ;;  %v6146_v20 = vld [vmem:[%s7207_s0 + $0x88] sm:$0xff]  }
  0xc1   : > { %v1346_v15 = vpop.permute.xlu0 %1345 }
  0xc2   : > { %3217 = vrot.lane.b32.xlu0 %v6371_v3, %s6261_s16  ;;  %3219 = vrot.lane.b32.xlu1 %v6378_v6, %s6261_s16  ;;  %v1016_v3 = vsel %vm1013_vm5, %v1008_v46, %v1010_v52  ;;  %v6568_v6 = vcombine.low %v3369_v1, %v3369_v1  ;;  %v1344_v14 = vpop.permute.xlu1 %1343  ;;  %v6142_v52 = vld [vmem:[%s7207_s0 + $0x68] sm:$0xff]   ;;  %vm3579_vm5 = vcmask 449536  }
  0xc3   : > { %5303 = vmatmul.mubr.msk.bf16.gmra.mrb[4].mxu1 %vm388_vm2, %v6134_v56  ;;  %v1031_v10 = vsel %vm395_vm1, %v1016_v3, 0  ;;  %v1354_v30 = vsel %vm1353_vm7, %v1344_v14, %v1346_v15  ;;  %v6144_v3 = vld [vmem:[%s7207_s0 + $0x78] sm:$0xff]  }
  0xc4   : > { %951 = vmatprep.mubr.bf16.mxu1 %v6244_v0  ;;  %v1365_v32 = vsel %vm395_vm1, %v1354_v30, 0 }
  0xc5   : > { %v1350_v22 = vpop.permute.xlu0 %1349 }
  0xc6   : > { %3221 = vrot.lane.b32.xlu0 %v6390_v8, %s6261_s16  ;;  %3399 = vrot.lane.b32.xlu1 %v6554_v62, %s6262_s28  ;;  %v6577_v8 = vcombine.high %v3369_v1, %v3369_v1  ;;  %v1348_v16 = vpop.permute.xlu1 %1347 }
  0xc7   : > { %5311 = vmatmul.mubr.msk.bf16.vlgmr.msra.gmra.mrb[0].mxu0 %vm388_vm2, %v6135_v63  ;;  %v1355_v21 = vsel %vm1353_vm7, %v1346_v15, %v1348_v16  ;;  %v1356_v33 = vsel %vm1353_vm7, %v1348_v16, %v1350_v22 }
  0xc8   : > { %1037 = vmatpush1.bf16.msra.mxu0 %v1025_v2  ;;  %908 = vmatprep.mubr.bf16.mxu0 %v6244_v0  ;;  %v1371_v37 = vsel %vm395_vm1, %v1356_v33, 0  ;;  %v6150_v33 = vld [vmem:[%s7207_s0 + $0x98] sm:$0xff]  }
  0xc9   : > { %5334 = vmatprep.subr.msk.bf16.mxu0 %vm395_vm1, %v1185_v5  ;;  %v1514_v27 = vpop.permute.xlu0 %1513 }
  0xca   : > { %3401 = vrot.lane.b32.xlu0 %v6562_v4, %s6262_s28  ;;  %3403 = vrot.lane.b32.xlu1 %v6568_v6, %s6262_s28  ;;  %v1352_v23 = vpop.permute.xlu1 %1351 }
  0xcb   : > { %5314 = vmatmul.mubr.msk.bf16.vlgmr.msra.gmra.mrb[0].mxu1 %vm388_vm2, %v6135_v63  ;;  %v1357_v25 = vsel %vm1353_vm7, %v1350_v22, %v1352_v23  ;;  %vm3919_vm7 = vcmask 375808  }
  0xcc   : > { %1090 = vmatpush1.bf16.msra.mxu1 %v1031_v10  ;;  %961 = vmatprep.mubr.bf16.mxu1 %v6244_v0 }
  0xcd   : > { %5337 = vmatprep.subr.msk.bf16.mxu1 %vm395_vm1, %v1187_v11  ;;  %v1518_v29 = vpop.permute.xlu0 %1517  ;;  %v6145_v11 = vld [vmem:[%s7207_s0 + $0x80] sm:$0xff]  }
  0xce   : > { %3405 = vrot.lane.b32.xlu0 %v6577_v8, %s6262_s28  ;;  %3407 = vrot.lane.b32.xlu1 %v6579_v12, %s6262_s28  ;;  %v1516_v28 = vpop.permute.xlu1 %1515 }
  0xcf   : > { %5312 = vmatmul.mubr.msk.bf16.gmra.mrb[4].mxu0 %vm388_vm2, %v6136_v13  ;;  %v1525_v34 = vsel %vm1523_vm8, %v1516_v28, %v1518_v29  ;;  %v1524_v43 = vsel %vm1523_vm8, %v1514_v27, %v1516_v28 }
  0xd0   : > { %1068 = vmatprep.mubr.bf16.mxu0 %v6244_v0  ;;  %v1535_v45 = vsel %vm395_vm1, %v1524_v43, 0 }
  0xd1   : > { %v1522_v36 = vpop.permute.xlu0 %1521 }
  0xd2   : > { %3569 = vrot.lane.b32.xlu0 %v6554_v62, %s6263_s7  ;;  %3571 = vrot.lane.b32.xlu1 %v6562_v4, %s6263_s7  ;;  %v1520_v35 = vpop.permute.xlu1 %1519 }
  0xd3   : > { %5315 = vmatmul.mubr.msk.bf16.gmra.mrb[4].mxu1 %vm388_vm2, %v6136_v13  ;;  %v1527_v38 = vsel %vm1523_vm8, %v1520_v35, %v1522_v36  ;;  %v1526_v46 = vsel %vm1523_vm8, %v1518_v29, %v1520_v35  ;;  %vm4089_vm8 = vcmask 367616  }
  0xd4   : > { %1121 = vmatprep.mubr.bf16.mxu1 %v6244_v0  ;;  %v1541_v50 = vsel %vm395_vm1, %v1526_v46, 0  ;;  %v6156_v46 = vld [vmem:[%s7207_s0 + $0xb0] sm:$0xff]  }
  0xd5   : > { %v1686_v41 = vpop.permute.xlu0 %1685 }
  0xd6   : > { %3573 = vrot.lane.b32.xlu0 %v6568_v6, %s6263_s7  ;;  %3575 = vrot.lane.b32.xlu1 %v6577_v8, %s6263_s7  ;;  %v1684_v40 = vpop.permute.xlu1 %1683 }
  0xd7   : > { %5323 = vmatmul.mubr.msk.bf16.vlgmr.msra.gmra.mrb[0].mxu0 %vm388_vm2, %v6137_v18  ;;  %v1694_v56 = vsel %vm1693_vm9, %v1684_v40, %v1686_v41 }
  0xd8   : > { %1207 = vmatpush1.bf16.msra.mxu0 %v1195_v19  ;;  %1078 = vmatprep.mubr.bf16.mxu0 %v6244_v0  ;;  %v1705_v58 = vsel %vm395_vm1, %v1694_v56, 0 }
  0xd9   : > { %5346 = vmatprep.subr.msk.bf16.mxu0 %vm395_vm1, %v1355_v21  ;;  %v1690_v48 = vpop.permute.xlu0 %1689 }
  0xda   : > { %3577 = vrot.lane.b32.xlu0 %v6579_v12, %s6263_s7  ;;  %3739 = vrot.lane.b32.xlu1 %v6554_v62, %s6264_s11  ;;  %v1688_v42 = vpop.permute.xlu1 %1687  ;;  %s6269_s7 = smov 35  }
  0xdb   : > { %5326 = vmatmul.mubr.msk.bf16.vlgmr.msra.gmra.mrb[0].mxu1 %vm388_vm2, %v6137_v18  ;;  %v1695_v47 = vsel %vm1693_vm9, %v1686_v41, %v1688_v42  ;;  %v1696_v59 = vsel %vm1693_vm9, %v1688_v42, %v1690_v48 }
  0xdc   : > { %1260 = vmatpush1.bf16.msra.mxu1 %v1201_v24  ;;  %1131 = vmatprep.mubr.bf16.mxu1 %v6244_v0  ;;  %v1711_v1 = vsel %vm395_vm1, %v1696_v59, 0  ;;  %v6158_v59 = vld [vmem:[%s7207_s0 + $0xc0] sm:$0xff]  }
  0xdd   : > { %5349 = vmatprep.subr.msk.bf16.mxu1 %vm395_vm1, %v1357_v25  ;;  %v1854_v53 = vpop.permute.xlu0 %1853  ;;  %v6147_v25 = vld [vmem:[%s7207_s0 + $0x90] sm:$0xff]  }
  0xde   : > { %3741 = vrot.lane.b32.xlu0 %v6562_v4, %s6264_s11  ;;  %3743 = vrot.lane.b32.xlu1 %v6568_v6, %s6264_s11  ;;  %v1692_v49 = vpop.permute.xlu1 %1691 }
  0xdf   : > { %5324 = vmatmul.mubr.msk.bf16.gmra.mrb[4].mxu0 %vm388_vm2, %v6138_v26  ;;  %v1697_v51 = vsel %vm1693_vm9, %v1690_v48, %v1692_v49  ;;  %vm4259_vm9 = vcmask 359424  }
  0xe0   : > { %1238 = vmatprep.mubr.bf16.mxu0 %v6244_v0 }
  0xe1   : > { %v1858_v55 = vpop.permute.xlu0 %1857 }
  0xe2   : > { %3745 = vrot.lane.b32.xlu0 %v6577_v8, %s6264_s11  ;;  %3747 = vrot.lane.b32.xlu1 %v6579_v12, %s6264_s11  ;;  %s6267_s11 = smov 44   ;;  %v1856_v54 = vpop.permute.xlu1 %1855 }
  0xe3   : > { %5327 = vmatmul.mubr.msk.bf16.gmra.mrb[4].mxu1 %vm388_vm2, %v6138_v26  ;;  %v1865_v60 = vsel %vm1863_vm10, %v1856_v54, %v1858_v55  ;;  %v1864_v10 = vsel %vm1863_vm10, %v1854_v53, %v1856_v54  ;;  %v6157_v54 = vld [vmem:[%s7207_s0 + $0xb8] sm:$0xff]  }
  0xe4   : > { %1291 = vmatprep.mubr.bf16.mxu1 %v6244_v0  ;;  %v1875_v13 = vsel %vm395_vm1, %v1864_v10, 0 }
  0xe5   : > { %v1862_v63 = vpop.permute.xlu0 %1861 }
  0xe6   : > { %3909 = vrot.lane.b32.xlu0 %v6554_v62, %s6265_s17  ;;  %3911 = vrot.lane.b32.xlu1 %v6562_v4, %s6265_s17  ;;  %v1860_v61 = vpop.permute.xlu1 %1859 }
  0xe7   : > { %5335 = vmatmul.mubr.msk.bf16.vlgmr.msra.gmra.mrb[0].mxu0 %vm388_vm2, %v6139_v31  ;;  %v1867_v2 = vsel %vm1863_vm10, %v1860_v61, %v1862_v63  ;;  %v1866_v14 = vsel %vm1863_vm10, %v1858_v55, %v1860_v61  ;;  %vm4429_vm10 = vcmask 293888  }
  0xe8   : > { %1377 = vmatpush1.bf16.msra.mxu0 %v1365_v32  ;;  %1248 = vmatprep.mubr.bf16.mxu0 %v6244_v0  ;;  %v1881_v18 = vsel %vm395_vm1, %v1866_v14, 0  ;;  %v6160_v14 = vld [vmem:[%s7207_s0 + $0xd0] sm:$0xff]  }
  0xe9   : > { %5358 = vmatprep.subr.msk.bf16.mxu0 %vm395_vm1, %v1525_v34  ;;  %v2026_v7 = vpop.permute.xlu0 %2025 }
  0xea   : > { %3913 = vrot.lane.b32.xlu0 %v6568_v6, %s6265_s17  ;;  %3915 = vrot.lane.b32.xlu1 %v6577_v8, %s6265_s17  ;;  %v2024_v5 = vpop.permute.xlu1 %2023 }
  0xeb   : > { %5338 = vmatmul.mubr.msk.bf16.vlgmr.msra.gmra.mrb[0].mxu1 %vm388_vm2, %v6139_v31  ;;  %v2034_v24 = vsel %vm2033_vm11, %v2024_v5, %v2026_v7 }
  0xec   : > { %1430 = vmatpush1.bf16.msra.mxu1 %v1371_v37  ;;  %1301 = vmatprep.mubr.bf16.mxu1 %v6244_v0  ;;  %v2045_v26 = vsel %vm395_vm1, %v2034_v24, 0 }
  0xed   : > { %5361 = vmatprep.subr.msk.bf16.mxu1 %vm395_vm1, %v1527_v38  ;;  %v2030_v16 = vpop.permute.xlu0 %2029 }
  0xee   : > { %3917 = vrot.lane.b32.xlu0 %v6579_v12, %s6265_s17  ;;  %4079 = vrot.lane.b32.xlu1 %v6554_v62, %s6266_s29  ;;  %s6268_s17 = smov 36   ;;  %v2028_v9 = vpop.permute.xlu1 %2027 }
  0xef   : > { %5336 = vmatmul.mubr.msk.bf16.gmra.mrb[4].mxu0 %vm388_vm2, %v6140_v39  ;;  %v2035_v15 = vsel %vm2033_vm11, %v2026_v7, %v2028_v9  ;;  %v2036_v27 = vsel %vm2033_vm11, %v2028_v9, %v2030_v16  ;;  %v6159_v7 = vld [vmem:[%s7207_s0 + $0xc8] sm:$0xff]  }
  0xf0   : > { %1408 = vmatprep.mubr.bf16.mxu0 %v6244_v0  ;;  %v2051_v31 = vsel %vm395_vm1, %v2036_v27, 0  ;;  %v6162_v27 = vld [vmem:[%s7207_s0 + $0xe0] sm:$0xff]  }
  0xf1   : > { %v2194_v21 = vpop.permute.xlu0 %2193 }
  0xf2   : > { %4081 = vrot.lane.b32.xlu0 %v6562_v4, %s6266_s29  ;;  %4083 = vrot.lane.b32.xlu1 %v6568_v6, %s6266_s29  ;;  %v2032_v17 = vpop.permute.xlu1 %2031 }
  0xf3   : > { %5339 = vmatmul.mubr.msk.bf16.gmra.mrb[4].mxu1 %vm388_vm2, %v6140_v39  ;;  %v2037_v19 = vsel %vm2033_vm11, %v2030_v16, %v2032_v17  ;;  %vm4599_vm11 = vcmask 285696  }
  0xf4   : > { %1461 = vmatprep.mubr.bf16.mxu1 %v6244_v0 }
  0xf5   : > { %v2198_v23 = vpop.permute.xlu0 %2197 }
  0xf6   : > { %4085 = vrot.lane.b32.xlu0 %v6577_v8, %s6266_s29  ;;  %4087 = vrot.lane.b32.xlu1 %v6579_v12, %s6266_s29  ;;  %v2196_v22 = vpop.permute.xlu1 %2195 }
  0xf7   : > { %5347 = vmatmul.mubr.msk.bf16.vlgmr.msra.gmra.mrb[0].mxu0 %vm388_vm2, %v6141_v44  ;;  %v2205_v28 = vsel %vm2203_vm12, %v2196_v22, %v2198_v23  ;;  %v2204_v37 = vsel %vm2203_vm12, %v2194_v21, %v2196_v22  ;;  %v6161_v22 = vld [vmem:[%s7207_s0 + $0xd8] sm:$0xff]  }
  0xf8   : > { %1547 = vmatpush1.bf16.msra.mxu0 %v1535_v45  ;;  %1418 = vmatprep.mubr.bf16.mxu0 %v6244_v0 }
  0xf9   : > { %5370 = vmatprep.subr.msk.bf16.mxu0 %vm395_vm1, %v1695_v47  ;;  %v2202_v30 = vpop.permute.xlu0 %2201 }
  0xfa   : > { %4249 = vrot.lane.b32.xlu0 %v6554_v62, %s6267_s11  ;;  %4251 = vrot.lane.b32.xlu1 %v6562_v4, %s6267_s11  ;;  %v2200_v29 = vpop.permute.xlu1 %2199 }
  0xfb   : > { %5350 = vmatmul.mubr.msk.bf16.vlgmr.msra.gmra.mrb[0].mxu1 %vm388_vm2, %v6141_v44  ;;  %v2207_v32 = vsel %vm2203_vm12, %v2200_v29, %v2202_v30  ;;  %v2206_v38 = vsel %vm2203_vm12, %v2198_v23, %v2200_v29  ;;  %vm4769_vm12 = vcmask 277504  }
  0xfc   : > { %1600 = vmatpush1.bf16.msra.mxu1 %v1541_v50  ;;  %1471 = vmatprep.mubr.bf16.mxu1 %v6244_v0  ;;  %v2221_v40 = vsel %vm395_vm1, %v2206_v38, 0  ;;  %v6164_v38 = vld [vmem:[%s7207_s0 + $0xf0] sm:$0xff]  }
  0xfd   : > { %5373 = vmatprep.subr.msk.bf16.mxu1 %vm395_vm1, %v1697_v51  ;;  %v2366_v35 = vpop.permute.xlu0 %2365 }
  0xfe   : > { %4253 = vrot.lane.b32.xlu0 %v6568_v6, %s6267_s11  ;;  %4255 = vrot.lane.b32.xlu1 %v6577_v8, %s6267_s11  ;;  %v2364_v34 = vpop.permute.xlu1 %2363 }
  0xff   : > { %5348 = vmatmul.mubr.msk.bf16.gmra.mrb[4].mxu0 %vm388_vm2, %v6142_v52  ;;  %v2374_v45 = vsel %vm2373_vm13, %v2364_v34, %v2366_v35 }
 0x100   : > { %1578 = vmatprep.mubr.bf16.mxu0 %v6244_v0  ;;  %v2385_v47 = vsel %vm395_vm1, %v2374_v45, 0 }
 0x102   : > { %4257 = vrot.lane.b32.xlu0 %v6579_v12, %s6267_s11  ;;  %4419 = vrot.lane.b32.xlu1 %v6554_v62, %s6268_s17  ;;  %v2368_v36 = vpop.permute.xlu1 %2367 }
 0x103   : > { %5351 = vmatmul.mubr.msk.bf16.gmra.mrb[4].mxu1 %vm388_vm2, %v6142_v52 }
 0x104   : > { %1631 = vmatprep.mubr.bf16.mxu1 %v6244_v0 }
 0x106   : > { %4421 = vrot.lane.b32.xlu0 %v6562_v4, %s6268_s17  ;;  %4423 = vrot.lane.b32.xlu1 %v6568_v6, %s6268_s17  ;;  %v2372_v39 = vpop.permute.xlu1 %2371 }
 0x107   : > { %5359 = vmatmul.mubr.msk.bf16.vlgmr.msra.gmra.mrb[0].mxu0 %vm388_vm2, %v6143_v57 }
 0x108   : > { %1717 = vmatpush1.bf16.msra.mxu0 %v1705_v58  ;;  %1588 = vmatprep.mubr.bf16.mxu0 %v6244_v0 }
 0x109   : > { %5382 = vmatprep.subr.msk.bf16.mxu0 %vm395_vm1, %v1865_v60 }
 0x10a   : > { %4425 = vrot.lane.b32.xlu0 %v6577_v8, %s6268_s17  ;;  %4427 = vrot.lane.b32.xlu1 %v6579_v12, %s6268_s17  ;;  %v2536_v43 = vpop.permute.xlu1 %2535 }
 0x10b   : > { %5362 = vmatmul.mubr.msk.bf16.vlgmr.msra.gmra.mrb[0].mxu1 %vm388_vm2, %v6143_v57 }
 0x10c   : > { %1770 = vmatpush1.bf16.msra.mxu1 %v1711_v1  ;;  %1641 = vmatprep.mubr.bf16.mxu1 %v6244_v0 }
 0x10d   : > { %5385 = vmatprep.subr.msk.bf16.mxu1 %vm395_vm1, %v1867_v2 }
 0x10e   : > { %4589 = vrot.lane.b32.xlu0 %v6554_v62, %s6269_s7  ;;  %4591 = vrot.lane.b32.xlu1 %v6562_v4, %s6269_s7  ;;  %v2540_v50 = vpop.permute.xlu1 %2539 }
 0x10f   : > { %5360 = vmatmul.mubr.msk.bf16.gmra.mrb[4].mxu0 %vm388_vm2, %v6144_v3 }
 0x110   : > { %1748 = vmatprep.mubr.bf16.mxu0 %v6244_v0 }
 0x112   : > { %4593 = vrot.lane.b32.xlu0 %v6568_v6, %s6269_s7  ;;  %4595 = vrot.lane.b32.xlu1 %v6577_v8, %s6269_s7  ;;  %v2704_v55 = vpop.permute.xlu1 %2703 }
 0x113   : > { %5363 = vmatmul.mubr.msk.bf16.gmra.mrb[4].mxu1 %vm388_vm2, %v6144_v3 }
 0x114   : > { %1801 = vmatprep.mubr.bf16.mxu1 %v6244_v0 }
 0x116   : > { %4597 = vrot.lane.b32.xlu0 %v6579_v12, %s6269_s7  ;;  %4759 = vrot.lane.b32.xlu1 %v6554_v62, %s6270_s13  ;;  %v6154_v62 = vld [vmem:[%s7207_s0 + $0xa0] sm:$0xff]   ;;  %v2708_v57 = vpop.permute.xlu1 %2707  ;;  %s284_s7 = sand.u32 1, %s6218_s18  }
 0x117   : > { %5371 = vmatmul.mubr.msk.bf16.vlgmr.msra.gmra.mrb[0].mxu0 %vm388_vm2, %v6145_v11  ;;  %s5259_s8 = sshll.u32 %s284_s7, 6 }
 0x118   : > { %1887 = vmatpush1.bf16.msra.mxu0 %v1875_v13  ;;  %1758 = vmatprep.mubr.bf16.mxu0 %v6244_v0  ;;  %s7137_s18 = scalar_lea.vmem [#allocation3], %s5259_s8 }
 0x119   : > { %5394 = vmatprep.subr.msk.bf16.mxu0 %vm395_vm1, %v2035_v15 }
 0x11a   : > { %4761 = vrot.lane.b32.xlu0 %v6562_v4, %s6270_s13  ;;  %4763 = vrot.lane.b32.xlu1 %v6568_v6, %s6270_s13  ;;  %v2215_v4 = vsel %vm395_vm1, %v2204_v37, 0  ;;  %v2375_v6 = vsel %vm2373_vm13, %v2366_v35, %v2368_v36  ;;  %v2712_v2 = vpop.permute.xlu1 %2711  ;;  %v6163_v35 = vld [vmem:[%s7207_s0 + $0xe8] sm:$0xff]  }
 0x11b   : > { %5374 = vmatmul.mubr.msk.bf16.vlgmr.msra.gmra.mrb[0].mxu1 %vm388_vm2, %v6145_v11 }
 0x11c   : > { %1940 = vmatpush1.bf16.msra.mxu1 %v1881_v18  ;;  %1811 = vmatprep.mubr.bf16.mxu1 %v6244_v0 }
 0x11d   : > { %5397 = vmatprep.subr.msk.bf16.mxu1 %vm395_vm1, %v2037_v19 }
 0x11e   : > { %4765 = vrot.lane.b32.xlu0 %v6577_v8, %s6270_s13  ;;  %4767 = vrot.lane.b32.xlu1 %v6579_v12, %s6270_s13  ;;  %v2370_v8 = vpop.permute.xlu0 %2369  ;;  %v6155_v12 = vld [vmem:[%s7207_s0 + $0xa8] sm:$0xff]   ;;  %v2876_v10 = vpop.permute.xlu1 %2875 }
 0x11f   : > { %5372 = vmatmul.mubr.msk.bf16.gmra.mrb[4].mxu0 %vm388_vm2, %v6146_v20  ;;  %v2377_v41 = vsel %vm2373_vm13, %v2370_v8, %v2372_v39  ;;  %v2376_v48 = vsel %vm2373_vm13, %v2368_v36, %v2370_v8 }
 0x120   : > { %1918 = vmatprep.mubr.bf16.mxu0 %v6244_v0  ;;  %v2391_v52 = vsel %vm395_vm1, %v2376_v48, 0  ;;  %v6166_v48 = vld [vmem:[%s7207_s0 + $0x100] sm:$0xff]  }
 0x122   : > { %v2534_v42 = vpop.permute.xlu0 %2533  ;;  %v2880_v18 = vpop.permute.xlu1 %2879 }
 0x123   : > { %5375 = vmatmul.mubr.msk.bf16.gmra.mrb[4].mxu1 %vm388_vm2, %v6146_v20  ;;  %v2544_v58 = vsel %vm2543_vm14, %v2534_v42, %v2536_v43 }
 0x124   : > { %1971 = vmatprep.mubr.bf16.mxu1 %v6244_v0  ;;  %v2555_v60 = vsel %vm395_vm1, %v2544_v58, 0 }
 0x126   : > { %v2538_v44 = vpop.permute.xlu0 %2537  ;;  %v3044_v23 = vpop.permute.xlu1 %3043 }
 0x127   : > { %5383 = vmatmul.mubr.msk.bf16.vlgmr.msra.gmra.mrb[0].mxu0 %vm388_vm2, %v6147_v25  ;;  %v2545_v49 = vsel %vm2543_vm14, %v2536_v43, %v2538_v44  ;;  %v2546_v61 = vsel %vm2543_vm14, %v2538_v44, %v2540_v50  ;;  %v6165_v43 = vld [vmem:[%s7207_s0 + $0xf8] sm:$0xff]  }
 0x128   : > { %2057 = vmatpush1.bf16.msra.mxu0 %v2045_v26  ;;  %1928 = vmatprep.mubr.bf16.mxu0 %v6244_v0  ;;  %v2561_v3 = vsel %vm395_vm1, %v2546_v61, 0  ;;  %v6168_v61 = vld [vmem:[%s7207_s0 + $0x110] sm:$0xff]  }
 0x129   : > { %5406 = vmatprep.subr.msk.bf16.mxu0 %vm395_vm1, %v2205_v28 }
 0x12a   : > { %v2542_v51 = vpop.permute.xlu0 %2541 }
 0x12b   : > { %5386 = vmatmul.mubr.msk.bf16.vlgmr.msra.gmra.mrb[0].mxu1 %vm388_vm2, %v6147_v25  ;;  %v2547_v53 = vsel %vm2543_vm14, %v2540_v50, %v2542_v51  ;;  %v3048_v25 = vpop.permute.xlu1 %3047 }
 0x12c   : > { %2110 = vmatpush1.bf16.msra.mxu1 %v2051_v31  ;;  %1981 = vmatprep.mubr.bf16.mxu1 %v6244_v0 }
 0x12d   : > { %5409 = vmatprep.subr.msk.bf16.mxu1 %vm395_vm1, %v2207_v32 }
 0x12e   : > { %v2706_v56 = vpop.permute.xlu0 %2705 }
 0x12f   : > { %5384 = vmatmul.mubr.msk.bf16.gmra.mrb[4].mxu0 %vm388_vm2, %v6150_v33  ;;  %v2715_v63 = vsel %vm2713_vm15, %v2706_v56, %v2708_v57  ;;  %v2714_v13 = vsel %vm2713_vm15, %v2704_v55, %v2706_v56  ;;  %v3052_v32 = vpop.permute.xlu1 %3051  ;;  %v6167_v56 = vld [vmem:[%s7207_s0 + $0x108] sm:$0xff]  }
 0x130   : > { %2088 = vmatprep.mubr.bf16.mxu0 %v6244_v0  ;;  %v2725_v15 = vsel %vm395_vm1, %v2714_v13, 0 }
 0x132   : > { %v2710_v1 = vpop.permute.xlu0 %2709 }
 0x133   : > { %5387 = vmatmul.mubr.msk.bf16.gmra.mrb[4].mxu1 %vm388_vm2, %v6150_v33  ;;  %v2717_v5 = vsel %vm2713_vm15, %v2710_v1, %v2712_v2  ;;  %v2716_v16 = vsel %vm2713_vm15, %v2708_v57, %v2710_v1  ;;  %v3216_v37 = vpop.permute.xlu1 %3215 }
 0x134   : > { %2141 = vmatprep.mubr.bf16.mxu1 %v6244_v0  ;;  %v2731_v20 = vsel %vm395_vm1, %v2716_v16, 0  ;;  %v6170_v16 = vld [vmem:[%s7207_s0 + $0x120] sm:$0xff]  }
 0x136   : > { %v2874_v9 = vpop.permute.xlu0 %2873 }
 0x137   : > { %5395 = vmatmul.mubr.msk.bf16.vlgmr.msra.gmra.mrb[0].mxu0 %vm388_vm2, %v6154_v62  ;;  %v2884_v26 = vsel %vm388_vm2, %v2874_v9, %v2876_v10 }
 0x138   : > { %2227 = vmatpush1.bf16.msra.mxu0 %v2215_v4  ;;  %2098 = vmatprep.mubr.bf16.mxu0 %v6244_v0  ;;  %v2895_v28 = vsel %vm395_vm1, %v2884_v26, 0 }
 0x139   : > { %5418 = vmatprep.subr.msk.bf16.mxu0 %vm395_vm1, %v2375_v6 }
 0x13a   : > { %v2878_v11 = vpop.permute.xlu0 %2877 }
 0x13b   : > { %5398 = vmatmul.mubr.msk.bf16.vlgmr.msra.gmra.mrb[0].mxu1 %vm388_vm2, %v6154_v62  ;;  %v2885_v17 = vsel %vm388_vm2, %v2876_v10, %v2878_v11  ;;  %v2886_v29 = vsel %vm388_vm2, %v2878_v11, %v2880_v18  ;;  %v6169_v10 = vld [vmem:[%s7207_s0 + $0x118] sm:$0xff]  }
 0x13c   : > { %2280 = vmatpush1.bf16.msra.mxu1 %v2221_v40  ;;  %2151 = vmatprep.mubr.bf16.mxu1 %v6244_v0  ;;  %v2901_v33 = vsel %vm395_vm1, %v2886_v29, 0  ;;  %v3220_v40 = vpop.permute.xlu1 %3219  ;;  %v6172_v29 = vld [vmem:[%s7207_s0 + $0x130] sm:$0xff]  }
 0x13d   : > { %5421 = vmatprep.subr.msk.bf16.mxu1 %vm395_vm1, %v2377_v41 }
 0x13e   : > { %v2882_v19 = vpop.permute.xlu0 %2881 }
 0x13f   : > { %5396 = vmatmul.mubr.msk.bf16.gmra.mrb[4].mxu0 %vm388_vm2, %v6155_v12  ;;  %v2887_v21 = vsel %vm388_vm2, %v2880_v18, %v2882_v19 }
 0x140   : > { %2258 = vmatprep.mubr.bf16.mxu0 %v6244_v0  ;;  %v3400_v44 = vpop.permute.xlu1 %3399 }
 0x142   : > { %v3046_v24 = vpop.permute.xlu0 %3045 }
 0x143   : > { %5399 = vmatmul.mubr.msk.bf16.gmra.mrb[4].mxu1 %vm388_vm2, %v6155_v12  ;;  %v3055_v30 = vsel %vm3053_vm0, %v3046_v24, %v3048_v25  ;;  %v3054_v4 = vsel %vm3053_vm0, %v3044_v23, %v3046_v24  ;;  %v6171_v24 = vld [vmem:[%s7207_s0 + $0x128] sm:$0xff]  }
 0x144   : > { %2311 = vmatprep.mubr.bf16.mxu1 %v6244_v0  ;;  %v3065_v6 = vsel %vm395_vm1, %v3054_v4, 0 }
 0x146   : > { %v3050_v31 = vpop.permute.xlu0 %3049 }
 0x147   : > { %5407 = vmatmul.mubr.msk.bf16.vlgmr.msra.gmra.mrb[0].mxu0 %vm388_vm2, %v6156_v46  ;;  %v3057_v34 = vsel %vm3053_vm0, %v3050_v31, %v3052_v32  ;;  %v3056_v8 = vsel %vm3053_vm0, %v3048_v25, %v3050_v31 }
 0x148   : > { %2397 = vmatpush1.bf16.msra.mxu0 %v2385_v47  ;;  %2268 = vmatprep.mubr.bf16.mxu0 %v6244_v0  ;;  %v3071_v12 = vsel %vm395_vm1, %v3056_v8, 0  ;;  %v6174_v8 = vld [vmem:[%s7207_s0 + $0x140] sm:$0xff]  }
 0x149   : > { %5430 = vmatprep.subr.msk.bf16.mxu0 %vm395_vm1, %v2545_v49 }
 0x14a   : > { %v3214_v36 = vpop.permute.xlu0 %3213 }
 0x14b   : > { %5410 = vmatmul.mubr.msk.bf16.vlgmr.msra.gmra.mrb[0].mxu1 %vm388_vm2, %v6156_v46  ;;  %v3404_v46 = vpop.permute.xlu1 %3403  ;;  %v3224_v47 = vsel %vm3223_vm3, %v3214_v36, %v3216_v37 }
 0x14c   : > { %2450 = vmatpush1.bf16.msra.mxu1 %v2391_v52  ;;  %2321 = vmatprep.mubr.bf16.mxu1 %v6244_v0  ;;  %v3235_v49 = vsel %vm395_vm1, %v3224_v47, 0 }
 0x14d   : > { %5433 = vmatprep.subr.msk.bf16.mxu1 %vm395_vm1, %v2547_v53 }
 0x14e   : > { %v3218_v62 = vpop.permute.xlu0 %3217 }
 0x14f   : > { %5408 = vmatmul.mubr.msk.bf16.gmra.mrb[4].mxu0 %vm388_vm2, %v6157_v54  ;;  %v3225_v39 = vsel %vm3223_vm3, %v3216_v37, %v3218_v62  ;;  %v3226_v50 = vsel %vm3223_vm3, %v3218_v62, %v3220_v40  ;;  %v3408_v53 = vpop.permute.xlu1 %3407  ;;  %v6173_v37 = vld [vmem:[%s7207_s0 + $0x138] sm:$0xff]  }
 0x150   : > { %2428 = vmatprep.mubr.bf16.mxu0 %v6244_v0 }
 0x152   : > { %v3222_v41 = vpop.permute.xlu0 %3221 }
 0x153   : > { %5411 = vmatmul.mubr.msk.bf16.gmra.mrb[4].mxu1 %vm388_vm2, %v6157_v54  ;;  %v3227_v42 = vsel %vm3223_vm3, %v3220_v40, %v3222_v41  ;;  %v3241_v54 = vsel %vm395_vm1, %v3226_v50, 0  ;;  %v3572_v58 = vpop.permute.xlu1 %3571  ;;  %v6176_v50 = vld [vmem:[%s7207_s0 + $0x150] sm:$0xff]  }
 0x154   : > { %2481 = vmatprep.mubr.bf16.mxu1 %v6244_v0 }
 0x156   : > { %v3402_v45 = vpop.permute.xlu0 %3401 }
 0x157   : > { %5419 = vmatmul.mubr.msk.bf16.vlgmr.msra.gmra.mrb[0].mxu0 %vm388_vm2, %v6158_v59  ;;  %v3411_v51 = vsel %vm3409_vm4, %v3402_v45, %v3404_v46 }
 0x158   : > { %2567 = vmatpush1.bf16.msra.mxu0 %v2555_v60  ;;  %2438 = vmatprep.mubr.bf16.mxu0 %v6244_v0  ;;  %v3410_v60 = vsel %vm3409_vm4, %v3400_v44, %v3402_v45  ;;  %v6175_v45 = vld [vmem:[%s7207_s0 + $0x148] sm:$0xff]  }
 0x159   : > { %5442 = vmatprep.subr.msk.bf16.mxu0 %vm395_vm1, %v2715_v63  ;;  %v3421_v63 = vsel %vm395_vm1, %v3410_v60, 0 }
 0x15a   : > { %v3406_v52 = vpop.permute.xlu0 %3405 }
 0x15b   : > { %5422 = vmatmul.mubr.msk.bf16.vlgmr.msra.gmra.mrb[0].mxu1 %vm388_vm2, %v6158_v59  ;;  %v3413_v55 = vsel %vm3409_vm4, %v3406_v52, %v3408_v53  ;;  %v3412_v1 = vsel %vm3409_vm4, %v3404_v46, %v3406_v52 }
 0x15c   : > { %2620 = vmatpush1.bf16.msra.mxu1 %v2561_v3  ;;  %2491 = vmatprep.mubr.bf16.mxu1 %v6244_v0  ;;  %v3576_v3 = vpop.permute.xlu1 %3575 }
 0x15d   : > { %5445 = vmatprep.subr.msk.bf16.mxu1 %vm395_vm1, %v2717_v5 }
 0x15e   : > { %v3570_v57 = vpop.permute.xlu0 %3569 }
 0x15f   : > { %5420 = vmatmul.mubr.msk.bf16.gmra.mrb[4].mxu0 %vm388_vm2, %v6159_v7 }
 0x160   : > { %2598 = vmatprep.mubr.bf16.mxu0 %v6244_v0  ;;  %v3740_v11 = vpop.permute.xlu1 %3739 }
 0x162   : > { %v3574_v59 = vpop.permute.xlu0 %3573 }
 0x163   : > { %5423 = vmatmul.mubr.msk.bf16.gmra.mrb[4].mxu1 %vm388_vm2, %v6159_v7  ;;  %v3581_v2 = vsel %vm3579_vm5, %v3572_v58, %v3574_v59  ;;  %v3427_v7 = vsel %vm395_vm1, %v3412_v1, 0  ;;  %v3582_v18 = vsel %vm3579_vm5, %v3574_v59, %v3576_v3  ;;  %v6178_v1 = vld [vmem:[%s7207_s0 + $0x160] sm:$0xff]  }
 0x164   : > { %2651 = vmatprep.mubr.bf16.mxu1 %v6244_v0 }
 0x166   : > { %v3578_v5 = vpop.permute.xlu0 %3577 }
 0x167   : > { %5431 = vmatmul.mubr.msk.bf16.vlgmr.msra.gmra.mrb[0].mxu0 %vm388_vm2, %v6160_v14  ;;  %v3583_v9 = vsel %vm3579_vm5, %v3576_v3, %v3578_v5 }
 0x168   : > { %2737 = vmatpush1.bf16.msra.mxu0 %v2725_v15  ;;  %2608 = vmatprep.mubr.bf16.mxu0 %v6244_v0  ;;  %v3580_v15 = vsel %vm3579_vm5, %v3570_v57, %v3572_v58  ;;  %v6177_v58 = vld [vmem:[%s7207_s0 + $0x158] sm:$0xff]  }
 0x169   : > { %5454 = vmatprep.subr.msk.bf16.mxu0 %vm395_vm1, %v2885_v17  ;;  %v3591_v17 = vsel %vm395_vm1, %v3580_v15, 0 }
 0x16a   : > { %v3742_v13 = vpop.permute.xlu0 %3741 }
 0x16b   : > { %5434 = vmatmul.mubr.msk.bf16.vlgmr.msra.gmra.mrb[0].mxu1 %vm388_vm2, %v6160_v14  ;;  %v3744_v14 = vpop.permute.xlu1 %3743 }
 0x16c   : > { %2790 = vmatpush1.bf16.msra.mxu1 %v2731_v20  ;;  %2661 = vmatprep.mubr.bf16.mxu1 %v6244_v0  ;;  %v3751_v19 = vsel %vm3749_vm6, %v3742_v13, %v3744_v14 }
 0x16d   : > { %5457 = vmatprep.subr.msk.bf16.mxu1 %vm395_vm1, %v2887_v21 }
 0x16e   : > { %v3746_v20 = vpop.permute.xlu0 %3745 }
 0x16f   : > { %5432 = vmatmul.mubr.msk.bf16.gmra.mrb[4].mxu0 %vm388_vm2, %v6161_v22  ;;  %v3748_v21 = vpop.permute.xlu1 %3747  ;;  %v3752_v31 = vsel %vm3749_vm6, %v3744_v14, %v3746_v20 }
 0x170   : > { %2768 = vmatprep.mubr.bf16.mxu0 %v6244_v0  ;;  %v3753_v23 = vsel %vm3749_vm6, %v3746_v20, %v3748_v21 }
 0x172   : > { %v3910_v25 = vpop.permute.xlu0 %3909 }
 0x173   : > { %5435 = vmatmul.mubr.msk.bf16.gmra.mrb[4].mxu1 %vm388_vm2, %v6161_v22  ;;  %v3597_v22 = vsel %vm395_vm1, %v3582_v18, 0  ;;  %v3912_v26 = vpop.permute.xlu1 %3911  ;;  %v6180_v18 = vld [vmem:[%s7207_s0 + $0x170] sm:$0xff]  }
 0x174   : > { %2821 = vmatprep.mubr.bf16.mxu1 %v6244_v0 }
 0x177   : > { %5443 = vmatmul.mubr.msk.bf16.vlgmr.msra.gmra.mrb[0].mxu0 %vm388_vm2, %v6162_v27 }
 0x178   : > { %2907 = vmatpush1.bf16.msra.mxu0 %v2895_v28  ;;  %2778 = vmatprep.mubr.bf16.mxu0 %v6244_v0  ;;  %v3750_v28 = vsel %vm3749_vm6, %v3740_v11, %v3742_v13  ;;  %v6179_v13 = vld [vmem:[%s7207_s0 + $0x168] sm:$0xff]  }
 0x179   : > { %5466 = vmatprep.subr.msk.bf16.mxu0 %vm395_vm1, %v3055_v30  ;;  %v3761_v30 = vsel %vm395_vm1, %v3750_v28, 0 }
 0x17b   : > { %5446 = vmatmul.mubr.msk.bf16.vlgmr.msra.gmra.mrb[0].mxu1 %vm388_vm2, %v6162_v27  ;;  %v3914_v27 = vpop.permute.xlu0 %3913 }
 0x17c   : > { %2960 = vmatpush1.bf16.msra.mxu1 %v2901_v33  ;;  %2831 = vmatprep.mubr.bf16.mxu1 %v6244_v0  ;;  %v3921_v32 = vsel %vm3919_vm7, %v3912_v26, %v3914_v27  ;;  %v3916_v33 = vpop.permute.xlu1 %3915 }
 0x17d   : > { %5469 = vmatprep.subr.msk.bf16.mxu1 %vm395_vm1, %v3057_v34  ;;  %v3922_v40 = vsel %vm3919_vm7, %v3914_v27, %v3916_v33 }
 0x17f   : > { %5444 = vmatmul.mubr.msk.bf16.gmra.mrb[4].mxu0 %vm388_vm2, %v6163_v35  ;;  %v3918_v34 = vpop.permute.xlu0 %3917 }
 0x180   : > { %2938 = vmatprep.mubr.bf16.mxu0 %v6244_v0  ;;  %v3923_v36 = vsel %vm3919_vm7, %v3916_v33, %v3918_v34  ;;  %v4080_v62 = vpop.permute.xlu1 %4079 }
 0x183   : > { %5447 = vmatmul.mubr.msk.bf16.gmra.mrb[4].mxu1 %vm388_vm2, %v6163_v35  ;;  %v3767_v35 = vsel %vm395_vm1, %v3752_v31, 0  ;;  %v4082_v4 = vpop.permute.xlu0 %4081  ;;  %v6182_v31 = vld [vmem:[%s7207_s0 + $0x180] sm:$0xff]  }
 0x184   : > { %2991 = vmatprep.mubr.bf16.mxu1 %v6244_v0 }
 0x187   : > { %5455 = vmatmul.mubr.msk.bf16.vlgmr.msra.gmra.mrb[0].mxu0 %vm388_vm2, %v6164_v38 }
 0x188   : > { %3077 = vmatpush1.bf16.msra.mxu0 %v3065_v6  ;;  %2948 = vmatprep.mubr.bf16.mxu0 %v6244_v0  ;;  %v3920_v6 = vsel %vm3919_vm7, %v3910_v25, %v3912_v26  ;;  %v6181_v26 = vld [vmem:[%s7207_s0 + $0x178] sm:$0xff]  }
 0x189   : > { %5478 = vmatprep.subr.msk.bf16.mxu0 %vm395_vm1, %v3225_v39  ;;  %v3931_v39 = vsel %vm395_vm1, %v3920_v6, 0  ;;  %v6184_v6 = vld [vmem:[%s7207_s0 + $0x190] sm:$0xff]  }
 0x18b   : > { %5458 = vmatmul.mubr.msk.bf16.vlgmr.msra.gmra.mrb[0].mxu1 %vm388_vm2, %v6164_v38  ;;  %v4084_v38 = vpop.permute.xlu1 %4083 }
 0x18c   : > { %3130 = vmatpush1.bf16.msra.mxu1 %v3071_v12  ;;  %3001 = vmatprep.mubr.bf16.mxu1 %v6244_v0  ;;  %v4091_v41 = vsel %vm4089_vm8, %v4082_v4, %v4084_v38  ;;  %v4086_v12 = vpop.permute.xlu0 %4085 }
 0x18d   : > { %5481 = vmatprep.subr.msk.bf16.mxu1 %vm395_vm1, %v3227_v42  ;;  %v4092_v52 = vsel %vm4089_vm8, %v4084_v38, %v4086_v12 }
 0x18f   : > { %5456 = vmatmul.mubr.msk.bf16.gmra.mrb[4].mxu0 %vm388_vm2, %v6165_v43  ;;  %v4088_v42 = vpop.permute.xlu1 %4087 }
 0x190   : > { %3108 = vmatprep.mubr.bf16.mxu0 %v6244_v0  ;;  %v4093_v44 = vsel %vm4089_vm8, %v4086_v12, %v4088_v42  ;;  %v4250_v46 = vpop.permute.xlu0 %4249  ;;  %v6186_v12 = vld [vmem:[%s7207_s0 + $0x1a0] sm:$0xff]   ;;  %v6187_v42 = vld [vmem:[%s7207_s0 + $0x1a8] sm:$0xff]  }
 0x193   : > { %5459 = vmatmul.mubr.msk.bf16.gmra.mrb[4].mxu1 %vm388_vm2, %v6165_v43  ;;  %v3937_v43 = vsel %vm395_vm1, %v3922_v40, 0  ;;  %v4252_v47 = vpop.permute.xlu1 %4251 }
 0x194   : > { %3161 = vmatprep.mubr.bf16.mxu1 %v6244_v0 }
 0x197   : > { %5467 = vmatmul.mubr.msk.bf16.vlgmr.msra.gmra.mrb[0].mxu0 %vm388_vm2, %v6166_v48 }
 0x198   : > { %3247 = vmatpush1.bf16.msra.mxu0 %v3235_v49  ;;  %3118 = vmatprep.mubr.bf16.mxu0 %v6244_v0  ;;  %v4090_v49 = vsel %vm4089_vm8, %v4080_v62, %v4082_v4  ;;  %v6183_v4 = vld [vmem:[%s7207_s0 + $0x188] sm:$0xff]  }
 0x199   : > { %5495 = vmatprep.subr.msk.bf16.mxu0 %vm395_vm1, %v3411_v51  ;;  %v4101_v51 = vsel %vm395_vm1, %v4090_v49, 0 }
 0x19b   : > { %5470 = vmatmul.mubr.msk.bf16.vlgmr.msra.gmra.mrb[0].mxu1 %vm388_vm2, %v6166_v48  ;;  %v4254_v48 = vpop.permute.xlu0 %4253 }
 0x19c   : > { %3300 = vmatpush1.bf16.msra.mxu1 %v3241_v54  ;;  %3171 = vmatprep.mubr.bf16.mxu1 %v6244_v0  ;;  %v4261_v53 = vsel %vm4259_vm9, %v4252_v47, %v4254_v48  ;;  %v4256_v54 = vpop.permute.xlu1 %4255 }
 0x19d   : > { %5498 = vmatprep.subr.msk.bf16.mxu1 %vm395_vm1, %v3413_v55  ;;  %v4262_v3 = vsel %vm4259_vm9, %v4254_v48, %v4256_v54 }
 0x19f   : > { %5468 = vmatmul.mubr.msk.bf16.gmra.mrb[4].mxu0 %vm388_vm2, %v6167_v56  ;;  %v4258_v55 = vpop.permute.xlu0 %4257 }
 0x1a0   : > { %3278 = vmatprep.mubr.bf16.mxu0 %v6244_v0  ;;  %v4263_v57 = vsel %vm4259_vm9, %v4256_v54, %v4258_v55  ;;  %v4420_v59 = vpop.permute.xlu1 %4419 }
 0x1a3   : > { %5471 = vmatmul.mubr.msk.bf16.gmra.mrb[4].mxu1 %vm388_vm2, %v6167_v56  ;;  %v4107_v56 = vsel %vm395_vm1, %v4092_v52, 0  ;;  %v4422_v60 = vpop.permute.xlu0 %4421 }
 0x1a4   : > { %3331 = vmatprep.mubr.bf16.mxu1 %v6244_v0 }
 0x1a7   : > { %5479 = vmatmul.mubr.msk.bf16.vlgmr.msra.gmra.mrb[0].mxu0 %vm388_vm2, %v6168_v61 }
 0x1a8   : > { %3433 = vmatpush1.bf16.msra.mxu0 %v3421_v63  ;;  %3288 = vmatprep.mubr.bf16.mxu0 %v6244_v0  ;;  %v4260_v63 = vsel %vm4259_vm9, %v4250_v46, %v4252_v47  ;;  %v4970_v46 = vld [vmem:[%s319_s6] sm:$0xf] }
 0x1a9   : > { %5507 = vmatprep.subr.msk.bf16.mxu0 %vm395_vm1, %v3581_v2  ;;  %v4271_v2 = vsel %vm395_vm1, %v4260_v63, 0 }
 0x1ab   : > { %5482 = vmatmul.mubr.msk.bf16.vlgmr.msra.gmra.mrb[0].mxu1 %vm388_vm2, %v6168_v61  ;;  %v4424_v61 = vpop.permute.xlu1 %4423 }
 0x1ac   : > { %3486 = vmatpush1.bf16.msra.mxu1 %v3427_v7  ;;  %3341 = vmatprep.mubr.bf16.mxu1 %v6244_v0  ;;  %v4431_v5 = vsel %vm4429_vm10, %v4422_v60, %v4424_v61  ;;  %v4426_v7 = vpop.permute.xlu0 %4425 }
 0x1ad   : > { %5510 = vmatprep.subr.msk.bf16.mxu1 %vm395_vm1, %v3583_v9  ;;  %v4432_v20 = vsel %vm4429_vm10, %v4424_v61, %v4426_v7 }
 0x1af   : > { %5480 = vmatmul.mubr.msk.bf16.gmra.mrb[4].mxu0 %vm388_vm2, %v6169_v10  ;;  %v4428_v9 = vpop.permute.xlu1 %4427 }
 0x1b0   : > { %3464 = vmatprep.mubr.bf16.mxu0 %v6244_v0  ;;  %v4433_v11 = vsel %vm4429_vm10, %v4426_v7, %v4428_v9  ;;  %v4590_v14 = vpop.permute.xlu0 %4589 }
 0x1b3   : > { %5483 = vmatmul.mubr.msk.bf16.gmra.mrb[4].mxu1 %vm388_vm2, %v6169_v10  ;;  %v4277_v10 = vsel %vm395_vm1, %v4262_v3, 0  ;;  %v4592_v15 = vpop.permute.xlu1 %4591 }
 0x1b4   : > { %3517 = vmatprep.mubr.bf16.mxu1 %v6244_v0 }
 0x1b7   : > { %5496 = vmatmul.mubr.msk.bf16.vlgmr.msra.gmra.mrb[0].mxu0 %vm388_vm2, %v6170_v16 }
 0x1b8   : > { %3603 = vmatpush1.bf16.msra.mxu0 %v3591_v17  ;;  %3474 = vmatprep.mubr.bf16.mxu0 %v6244_v0  ;;  %v4430_v17 = vsel %vm4429_vm10, %v4420_v59, %v4422_v60 }
 0x1b9   : > { %5519 = vmatprep.subr.msk.bf16.mxu0 %vm395_vm1, %v3751_v19  ;;  %v4441_v19 = vsel %vm395_vm1, %v4430_v17, 0 }
 0x1bb   : > { %5499 = vmatmul.mubr.msk.bf16.vlgmr.msra.gmra.mrb[0].mxu1 %vm388_vm2, %v6170_v16  ;;  %v4594_v16 = vpop.permute.xlu0 %4593 }
 0x1bc   : > { %3656 = vmatpush1.bf16.msra.mxu1 %v3597_v22  ;;  %3527 = vmatprep.mubr.bf16.mxu1 %v6244_v0  ;;  %v4601_v21 = vsel %vm4599_vm11, %v4592_v15, %v4594_v16  ;;  %v4596_v22 = vpop.permute.xlu1 %4595 }
 0x1bd   : > { %5522 = vmatprep.subr.msk.bf16.mxu1 %vm395_vm1, %v3753_v23  ;;  %v4602_v33 = vsel %vm4599_vm11, %v4594_v16, %v4596_v22 }
 0x1bf   : > { %5497 = vmatmul.mubr.msk.bf16.gmra.mrb[4].mxu0 %vm388_vm2, %v6171_v24  ;;  %v4598_v23 = vpop.permute.xlu0 %4597 }
 0x1c0   : > { %3634 = vmatprep.mubr.bf16.mxu0 %v6244_v0  ;;  %v4603_v25 = vsel %vm4599_vm11, %v4596_v22, %v4598_v23  ;;  %v4760_v27 = vpop.permute.xlu1 %4759 }
 0x1c3   : > { %5500 = vmatmul.mubr.msk.bf16.gmra.mrb[4].mxu1 %vm388_vm2, %v6171_v24  ;;  %v4447_v24 = vsel %vm395_vm1, %v4432_v20, 0  ;;  %v4762_v28 = vpop.permute.xlu0 %4761 }
 0x1c4   : > { %3687 = vmatprep.mubr.bf16.mxu1 %v6244_v0  ;;  %v4770_v38 = vsel %vm4769_vm12, %v4760_v27, %v4762_v28 }
 0x1c7   : > { %5508 = vmatmul.mubr.msk.bf16.vlgmr.msra.gmra.mrb[0].mxu0 %vm388_vm2, %v6172_v29 }
 0x1c8   : > { %3773 = vmatpush1.bf16.msra.mxu0 %v3761_v30  ;;  %3644 = vmatprep.mubr.bf16.mxu0 %v6244_v0  ;;  %v4600_v30 = vsel %vm4599_vm11, %v4590_v14, %v4592_v15 }
 0x1c9   : > { %5531 = vmatprep.subr.msk.bf16.mxu0 %vm395_vm1, %v3921_v32  ;;  %v4611_v32 = vsel %vm395_vm1, %v4600_v30, 0 }
 0x1cb   : > { %5511 = vmatmul.mubr.msk.bf16.vlgmr.msra.gmra.mrb[0].mxu1 %vm388_vm2, %v6172_v29  ;;  %v4764_v29 = vpop.permute.xlu1 %4763 }
 0x1cc   : > { %3826 = vmatpush1.bf16.msra.mxu1 %v3767_v35  ;;  %3697 = vmatprep.mubr.bf16.mxu1 %v6244_v0  ;;  %v4771_v34 = vsel %vm4769_vm12, %v4762_v28, %v4764_v29  ;;  %v4766_v35 = vpop.permute.xlu0 %4765 }
 0x1cd   : > { %5534 = vmatprep.subr.msk.bf16.mxu1 %vm395_vm1, %v3923_v36 }
 0x1cf   : > { %5509 = vmatmul.mubr.msk.bf16.gmra.mrb[4].mxu0 %vm388_vm2, %v6173_v37  ;;  %v4768_v36 = vpop.permute.xlu1 %4767 }
 0x1d0   : > { %3804 = vmatprep.mubr.bf16.mxu0 %v6244_v0  ;;  %v4773_v62 = vsel %vm4769_vm12, %v4766_v35, %v4768_v36 }
 0x1d3   : > { %5512 = vmatmul.mubr.msk.bf16.gmra.mrb[4].mxu1 %vm388_vm2, %v6173_v37  ;;  %v4617_v37 = vsel %vm395_vm1, %v4602_v33, 0 }
 0x1d4   : > { %3857 = vmatprep.mubr.bf16.mxu1 %v6244_v0 }
 0x1d7   : > { %5520 = vmatmul.mubr.msk.bf16.vlgmr.msra.gmra.mrb[0].mxu0 %vm388_vm2, %v6174_v8 }
 0x1d8   : > { %3943 = vmatpush1.bf16.msra.mxu0 %v3931_v39  ;;  %3814 = vmatprep.mubr.bf16.mxu0 %v6244_v0  ;;  %v4772_v39 = vsel %vm4769_vm12, %v4764_v29, %v4766_v35 }
 0x1d9   : > { %5543 = vmatprep.subr.msk.bf16.mxu0 %vm395_vm1, %v4091_v41  ;;  %v4787_v40 = vsel %vm395_vm1, %v4772_v39, 0  ;;  %v6185_v41 = vld [vmem:[%s7207_s0 + $0x198] sm:$0xff]  }
 0x1db   : > { %5523 = vmatmul.mubr.msk.bf16.vlgmr.msra.gmra.mrb[0].mxu1 %vm388_vm2, %v6174_v8  ;;  %v4781_v8 = vsel %vm395_vm1, %v4770_v38, 0 }
 0x1dc   : > { %3996 = vmatpush1.bf16.msra.mxu1 %v3937_v43  ;;  %3867 = vmatprep.mubr.bf16.mxu1 %v6244_v0  ;;  %v4972_v43 = vlaneseq }
 0x1dd   : > { %5546 = vmatprep.subr.msk.bf16.mxu1 %vm395_vm1, %v4093_v44 }
 0x1de   : > { %v4973_v44 = vshrl.u32 %v4972_v43, 7 }
 0x1df   : > { %5521 = vmatmul.mubr.msk.bf16.gmra.mrb[4].mxu0 %vm388_vm2, %v6175_v45 }
 0x1e0   : > { %3974 = vmatprep.mubr.bf16.mxu0 %v6244_v0  ;;  %v4978_v47 = vsub.s32 1, %v4973_v44  ;;  %v4982_v49 = vsub.s32 2, %v4973_v44 }
 0x1e2   : > { %v7132_v54 = vrot.slane %v4970_v46, %v4982_v49 }
 0x1e3   : > { %5524 = vmatmul.mubr.msk.bf16.gmra.mrb[4].mxu1 %vm388_vm2, %v6175_v45  ;;  %v4974_v45 = vsub.s32 0, %v4973_v44 }
 0x1e4   : > { %4027 = vmatprep.mubr.bf16.mxu1 %v6244_v0 }
 0x1e5   : > { %v4975_v48 = vrot.slane %v4970_v46, %v4974_v45 }
 0x1e7   : > { %5532 = vmatmul.mubr.msk.bf16.vlgmr.msra.gmra.mrb[0].mxu0 %vm388_vm2, %v6176_v50 }
 0x1e8   : > { %4113 = vmatpush1.bf16.msra.mxu0 %v4101_v51  ;;  %3984 = vmatprep.mubr.bf16.mxu0 %v6244_v0 }
 0x1e9   : > { %5555 = vmatprep.subr.msk.bf16.mxu0 %vm395_vm1, %v4261_v53 }
 0x1eb   : > { %5535 = vmatmul.mubr.msk.bf16.vlgmr.msra.gmra.mrb[0].mxu1 %vm388_vm2, %v6176_v50  ;;  %v4986_v50 = vsub.s32 3, %v4973_v44 }
 0x1ec   : > { %4166 = vmatpush1.bf16.msra.mxu1 %v4107_v56  ;;  %4037 = vmatprep.mubr.bf16.mxu1 %v6244_v0 }
 0x1ed   : > { %5558 = vmatprep.subr.msk.bf16.mxu1 %vm395_vm1, %v4263_v57  ;;  %v7135_v61 = vrot.slane %v4970_v46, %v4986_v50 }
 0x1ef   : > { %5533 = vmatmul.mubr.msk.bf16.gmra.mrb[4].mxu0 %vm388_vm2, %v6177_v58 }
 0x1f0   : > { %4144 = vmatprep.mubr.bf16.mxu0 %v6244_v0 }
 0x1f3   : > { %5536 = vmatmul.mubr.msk.bf16.gmra.mrb[4].mxu1 %vm388_vm2, %v6177_v58 }
 0x1f4   : > { %4197 = vmatprep.mubr.bf16.mxu1 %v6244_v0 }
 0x1f7   : > { %5544 = vmatmul.mubr.msk.bf16.vlgmr.msra.gmra.mrb[0].mxu0 %vm388_vm2, %v6178_v1 }
 0x1f8   : > { %4283 = vmatpush1.bf16.msra.mxu0 %v4271_v2  ;;  %4154 = vmatprep.mubr.bf16.mxu0 %v6244_v0 }
 0x1f9   : > { %5567 = vmatprep.subr.msk.bf16.mxu0 %vm395_vm1, %v4431_v5 }
 0x1fb   : > { %5547 = vmatmul.mubr.msk.bf16.vlgmr.msra.gmra.mrb[0].mxu1 %vm388_vm2, %v6178_v1 }
 0x1fc   : > { %4336 = vmatpush1.bf16.msra.mxu1 %v4277_v10  ;;  %4207 = vmatprep.mubr.bf16.mxu1 %v6244_v0 }
 0x1fd   : > { %5570 = vmatprep.subr.msk.bf16.mxu1 %vm395_vm1, %v4433_v11 }
 0x1ff   : > { %5545 = vmatmul.mubr.msk.bf16.gmra.mrb[4].mxu0 %vm388_vm2, %v6179_v13 }
 0x200   : > { %4314 = vmatprep.mubr.bf16.mxu0 %v6244_v0 }
 0x203   : > { %5548 = vmatmul.mubr.msk.bf16.gmra.mrb[4].mxu1 %vm388_vm2, %v6179_v13 }
 0x204   : > { %4367 = vmatprep.mubr.bf16.mxu1 %v6244_v0 }
 0x207   : > { %5556 = vmatmul.mubr.msk.bf16.vlgmr.msra.gmra.mrb[0].mxu0 %vm388_vm2, %v6180_v18 }
 0x208   : > { %4453 = vmatpush1.bf16.msra.mxu0 %v4441_v19  ;;  %4324 = vmatprep.mubr.bf16.mxu0 %v6244_v0 }
 0x209   : > { %5579 = vmatprep.subr.msk.bf16.mxu0 %vm395_vm1, %v4601_v21 }
 0x20b   : > { %5559 = vmatmul.mubr.msk.bf16.vlgmr.msra.gmra.mrb[0].mxu1 %vm388_vm2, %v6180_v18 }
 0x20c   : > { %4506 = vmatpush1.bf16.msra.mxu1 %v4447_v24  ;;  %4377 = vmatprep.mubr.bf16.mxu1 %v6244_v0 }
 0x20d   : > { %5582 = vmatprep.subr.msk.bf16.mxu1 %vm395_vm1, %v4603_v25 }
 0x20f   : > { %5557 = vmatmul.mubr.msk.bf16.gmra.mrb[4].mxu0 %vm388_vm2, %v6181_v26 }
 0x210   : > { %4484 = vmatprep.mubr.bf16.mxu0 %v6244_v0 }
 0x213   : > { %5560 = vmatmul.mubr.msk.bf16.gmra.mrb[4].mxu1 %vm388_vm2, %v6181_v26 }
 0x214   : > { %4537 = vmatprep.mubr.bf16.mxu1 %v6244_v0 }
 0x217   : > { %5568 = vmatmul.mubr.msk.bf16.vlgmr.msra.gmra.mrb[0].mxu0 %vm388_vm2, %v6182_v31 }
 0x218   : > { %4623 = vmatpush1.bf16.msra.mxu0 %v4611_v32  ;;  %4494 = vmatprep.mubr.bf16.mxu0 %v6244_v0 }
 0x219   : > { %5591 = vmatprep.subr.msk.bf16.mxu0 %vm395_vm1, %v4771_v34 }
 0x21b   : > { %5571 = vmatmul.mubr.msk.bf16.vlgmr.msra.gmra.mrb[0].mxu1 %vm388_vm2, %v6182_v31 }
 0x21c   : > { %4676 = vmatpush1.bf16.msra.mxu1 %v4617_v37  ;;  %4547 = vmatprep.mubr.bf16.mxu1 %v6244_v0 }
 0x21d   : > { %5594 = vmatprep.subr.msk.bf16.mxu1 %vm395_vm1, %v4773_v62  ;;  %vm5064_vm1 = vcmask 7168  }
 0x21f   : > { %5569 = vmatmul.mubr.msk.bf16.gmra.mrb[4].mxu0 %vm388_vm2, %v6183_v4 }
 0x220   : > { %4654 = vmatprep.mubr.bf16.mxu0 %v6244_v0 }
 0x223   : > { %5572 = vmatmul.mubr.msk.bf16.gmra.mrb[4].mxu1 %vm388_vm2, %v6183_v4 }
 0x224   : > { %4707 = vmatprep.mubr.bf16.mxu1 %v6244_v0 }
 0x227   : > { %5580 = vmatmul.mubr.msk.bf16.vlgmr.msra.gmra.mrb[0].mxu0 %vm388_vm2, %v6184_v6 }
 0x228   : > { %4793 = vmatpush1.bf16.msra.mxu0 %v4781_v8  ;;  %4664 = vmatprep.mubr.bf16.mxu0 %v6244_v0 }
 0x22b   : > { %5583 = vmatmul.mubr.msk.bf16.vlgmr.msra.gmra.mrb[0].mxu1 %vm388_vm2, %v6184_v6 }
 0x22c   : > { %4846 = vmatpush1.bf16.msra.mxu1 %v4787_v40  ;;  %4717 = vmatprep.mubr.bf16.mxu1 %v6244_v0 }
 0x22f   : > { %5581 = vmatmul.mubr.msk.bf16.gmra.mrb[4].mxu0 %vm388_vm2, %v6185_v41 }
 0x230   : > { %4824 = vmatprep.mubr.bf16.mxu0 %v6244_v0 }
 0x233   : > { %5584 = vmatmul.mubr.msk.bf16.gmra.mrb[4].mxu1 %vm388_vm2, %v6185_v41 }
 0x234   : > { %4877 = vmatprep.mubr.bf16.mxu1 %v6244_v0 }
 0x237   : > { %5592 = vmatmul.mubr.msk.bf16.vlgmr.msra.gmra.mrb[0].mxu0 %vm388_vm2, %v6186_v12 }
 0x238   : > { %4834 = vmatprep.mubr.bf16.mxu0 %v6244_v0 }
 0x23b   : > { %5595 = vmatmul.mubr.msk.bf16.vlgmr.msra.gmra.mrb[0].mxu1 %vm388_vm2, %v6186_v12 }
 0x23c   : > { %4887 = vmatprep.mubr.bf16.mxu1 %v6244_v0  ;;  %v7130_v0 = vrot.slane %v4970_v46, %v4978_v47 }
 0x23f   : > { %5593 = vmatmul.mubr.msk.bf16.gmra.mrb[4].mxu0 %vm388_vm2, %v6187_v42 }
 0x243   : > { %5596 = vmatmul.mubr.msk.bf16.gmra.mrb[4].mxu1 %vm388_vm2, %v6187_v42  ;;  %vm5073_vm2 = vcmask (!%p5605_p13), 15360  }
 0x30a   : > { %v4826_v51 = vpop.f32.mrb[0].mxu0 }
 0x30b   : > { %v4992_v52 = vmul.f32 %v4975_v48, %v4826_v51  ;;  %v4828_v53 = vpop.f32.mrb[1].mxu0 }
 0x30c   : > { %v5615_v55 = vpack.c.bf16 %v4828_v53, %v4826_v51  ;;  %v4993_v56 = vmul.f32 %v7130_v0, %v4828_v53  ;;  %v4830_v57 = vpop.f32.mrb[2].mxu0 }
 0x30d   : > { %v5028_v58 = vmul.f32 %v4992_v52, %v4826_v51  ;;  %v4996_v59 = vmul.f32 %v4975_v48, %v4830_v57  ;;  %v4832_v60 = vpop.f32.mrb[3].mxu0 }
 0x30e   : > { %4962 = vst [vmem:[%s7137_s18] sm:$0xff] %v5615_v55  ;;  %v5008_v63 = vadd.f32 %v4993_v56, %v4992_v52  ;;  %v5029_v1 = vmul.f32 %v4993_v56, %v4828_v53  ;;  %v5617_v2 = vpack.c.bf16 %v4832_v60, %v4830_v57  ;;  %v4997_v3 = vmul.f32 %v7130_v0, %v4832_v60  ;;  %v4879_v5 = vpop.f32.mrb[0].mxu1 }
 0x30f   : > { %v5032_v7 = vmul.f32 %v4996_v59, %v4830_v57  ;;  %v4994_v9 = vmul.f32 %v7132_v54, %v4879_v5  ;;  %v4881_v10 = vpop.f32.mrb[1].mxu1 }
 0x310   : > { %v5044_v11 = vadd.f32 %v5029_v1, %v5028_v58  ;;  %4964 = vst [vmem:[%s7137_s18 + $0x10] sm:$0xff] %v5617_v2  ;;  %v5013_v13 = vadd.f32 %v4997_v3, %v4996_v59  ;;  %v5033_v14 = vmul.f32 %v4997_v3, %v4832_v60  ;;  %v5616_v15 = vpack.c.bf16 %v4881_v10, %v4879_v5  ;;  %v4883_v16 = vpop.f32.mrb[2].mxu1 }
 0x311   : > { %v5009_v17 = vadd.f32 %v5008_v63, %v4994_v9  ;;  %v5030_v18 = vmul.f32 %v4994_v9, %v4879_v5  ;;  %v4995_v19 = vmul.f32 %v7135_v61, %v4881_v10  ;;  %v4998_v20 = vmul.f32 %v7132_v54, %v4883_v16  ;;  %v4885_v21 = vpop.f32.mrb[3].mxu1 }
 0x312   : > { %v5049_v22 = vadd.f32 %v5033_v14, %v5032_v7  ;;  %4963 = vst [vmem:[%s7137_s18 + $0x8] sm:$0xff] %v5616_v15  ;;  %v5618_v23 = vpack.c.bf16 %v4885_v21, %v4883_v16  ;;  %v4999_v24 = vmul.f32 %v7135_v61, %v4885_v21  ;;  %v4836_v25 = vpop.f32.mrb[4].mxu0 }
 0x313   : > { %v5045_v26 = vadd.f32 %v5044_v11, %v5030_v18  ;;  %v5031_v27 = vmul.f32 %v4995_v19, %v4881_v10  ;;  %v5014_v28 = vadd.f32 %v5013_v13, %v4998_v20  ;;  %v5034_v29 = vmul.f32 %v4998_v20, %v4883_v16  ;;  %v4838_v30 = vpop.f32.mrb[5].mxu0 }
 0x314   : > { %4965 = vst [vmem:[%s7137_s18 + $0x18] sm:$0xff] %v5618_v23  ;;  %v5035_v31 = vmul.f32 %v4999_v24, %v4885_v21  ;;  %v5000_v32 = vmul.f32 %v4975_v48, %v4836_v25  ;;  %v5619_v33 = vpack.c.bf16 %v4838_v30, %v4836_v25  ;;  %v5001_v34 = vmul.f32 %v7130_v0, %v4838_v30  ;;  %v4840_v35 = vpop.f32.mrb[6].mxu0 }
 0x315   : > { %v5050_v36 = vadd.f32 %v5049_v22, %v5034_v29  ;;  %v5004_v37 = vmul.f32 %v4975_v48, %v4840_v35  ;;  %v5010_v62 = vadd.f32 %v5009_v17, %v4995_v19  ;;  %v4842_v4 = vpop.f32.mrb[7].mxu0  ;;  %v5015_v38 = vadd.f32 %v5014_v28, %v4999_v24 }
 0x316   : > { %v5036_v6 = vmul.f32 %v5000_v32, %v4836_v25  ;;  %4966 = vst [vmem:[%s7137_s18 + $0x20] sm:$0xff] %v5619_v33  ;;  %v5018_v8 = vadd.f32 %v5001_v34, %v5000_v32  ;;  %v5037_v39 = vmul.f32 %v5001_v34, %v4838_v30  ;;  %v5621_v40 = vpack.c.bf16 %v4842_v4, %v4840_v35  ;;  %v4889_v41 = vpop.f32.mrb[4].mxu1 }
 0x317   : > { %v5040_v12 = vmul.f32 %v5004_v37, %v4840_v35  ;;  %5011 = vadd.xlane.f32.xlu0 %v5010_v62  ;;  %v5005_v42 = vmul.f32 %v7130_v0, %v4842_v4  ;;  %v5002_v43 = vmul.f32 %v7132_v54, %v4889_v41  ;;  %v4891_v44 = vpop.f32.mrb[5].mxu1  ;;  %5016 = vadd.xlane.f32.xlu1 %v5015_v38  ;;  %v6271_v23 = vmov (!%p5605_p13), 0.0  }
 0x318   : > { %v5054_v45 = vadd.f32 %v5037_v39, %v5036_v6  ;;  %4968 = vst [vmem:[%s7137_s18 + $0x30] sm:$0xff] %v5621_v40  ;;  %v5620_v46 = vpack.c.bf16 %v4891_v44, %v4889_v41  ;;  %v5003_v47 = vmul.f32 %v7135_v61, %v4891_v44  ;;  %v4893_v48 = vpop.f32.mrb[6].mxu1  ;;  %v5051_v49 = vadd.f32 %v5050_v36, %v5035_v31 }
 0x319   : > { %v5023_v50 = vadd.f32 %v5005_v42, %v5004_v37  ;;  %v5041_v51 = vmul.f32 %v5005_v42, %v4842_v4  ;;  %v5019_v52 = vadd.f32 %v5018_v8, %v5002_v43  ;;  %v5038_v53 = vmul.f32 %v5002_v43, %v4889_v41  ;;  %v4895_v55 = vpop.f32.mrb[7].mxu1  ;;  %5074 = vst.msk [vmem:[%s6386_s14] sm:$0xff] (!%p5605_p13), %vm5073_vm2, %v6271_v23 }
 0x31a   : > { %4967 = vst [vmem:[%s7137_s18 + $0x28] sm:$0xff] %v5620_v46  ;;  %v5039_v56 = vmul.f32 %v5003_v47, %v4891_v44  ;;  %v5006_v0 = vmul.f32 %v7132_v54, %v4893_v48  ;;  %v5622_v57 = vpack.c.bf16 %v4895_v55, %v4893_v48  ;;  %v5007_v58 = vmul.f32 %v7135_v61, %v4895_v55 }
 0x31b   : > { %v5059_v59 = vadd.f32 %v5041_v51, %v5040_v12  ;;  %v5055_v60 = vadd.f32 %v5054_v45, %v5038_v53  ;;  %5052 = vadd.xlane.f32.xlu0 %v5051_v49  ;;  %v5046_v63 = vadd.f32 %v5045_v26, %v5031_v27  ;;  %v5020_v1 = vadd.f32 %v5019_v52, %v5003_v47 }
 0x31c   : > { %v5024_v2 = vadd.f32 %v5023_v50, %v5006_v0  ;;  %v5042_v3 = vmul.f32 %v5006_v0, %v4893_v48  ;;  %4969 = vst [vmem:[%s7137_s18 + $0x38] sm:$0xff] %v5622_v57  ;;  %v5043_v5 = vmul.f32 %v5007_v58, %v4895_v55  ;;  %5075 = vst.msk [vmem:[%s6386_s14 + $0x8] sm:$0xff] (!%p5605_p13), %vm5073_vm2, %v6271_v23 }
 0x31d   : > { %5047 = vadd.xlane.f32.xlu1 %v5046_v63  ;;  %v5056_v7 = vadd.f32 %v5055_v60, %v5039_v56  ;;  %5076 = vst.msk [vmem:[%s6386_s14 + $0x10] sm:$0xff] (!%p5605_p13), %vm5073_vm2, %v6271_v23  ;;  %5077 = vst.msk [vmem:[%s6386_s14 + $0x18] sm:$0xff] (!%p5605_p13), %vm5073_vm2, %v6271_v23 }
 0x31e   : > { %v5060_v9 = vadd.f32 %v5059_v59, %v5042_v3  ;;  %v5025_v10 = vadd.f32 %v5024_v2, %v5007_v58 }
 0x31f   : > { %5021 = vadd.xlane.f32.xlu0 %v5020_v1 }
 0x320   : > { %v5061_v11 = vadd.f32 %v5060_v9, %v5043_v5 }
 0x321   : > { %5057 = vadd.xlane.f32.xlu1 %v5056_v7 }
 0x323   : > { %5026 = vadd.xlane.f32.xlu0 %v5025_v10 }
 0x327   : > { %5062 = vadd.xlane.f32.xlu0 %v5061_v11 }
 0x3a4   : > { %v5012_v54 = vpop.xlane.xlu0 %5011  ;;  %v5017_v61 = vpop.xlane.xlu1 %5016 }
 0x3a8   : > { %v5053_v13 = vpop.xlane.xlu0 %5052 }
 0x3a9   : > { %v5066_v14 = vsel %vm5064_vm1, %v5017_v61, %v5053_v13 }
 0x3aa   : > { %v5048_v15 = vpop.xlane.xlu1 %5047 }
 0x3ab   : > { %v5065_v16 = vsel %vm5064_vm1, %v5012_v54, %v5048_v15 }
 0x3ac   : > { %v5022_v17 = vpop.xlane.xlu0 %5021 }
 0x3ae   : > { %v5058_v18 = vpop.xlane.xlu1 %5057 }
 0x3af   : > { %v5067_v19 = vsel %vm5064_vm1, %v5022_v17, %v5058_v18  ;;  %5072 = sbr.rel (%p5605_p13) target bundleno = 950 (0x3b6), region = 40 }
 0x3b0   : > { %v5027_v20 = vpop.xlane.xlu0 %5026 }
 0x3b4   : > { %v5063_v21 = vpop.xlane.xlu0 %5062 }
 0x3b5   : > { %v5068_v22 = vsel %vm5064_vm1, %v5027_v20, %v5063_v21 }
 0x3b6 PF: > { %v5078_v24 = vld [vmem:[%s6386_s14] sm:$0xff]  ;;  %vm5086_vm13 = vcmask 15360   ;;  %v5079_v25 = vld [vmem:[%s6386_s14 + $0x8] sm:$0xff]  ;;  %v5080_v26 = vld [vmem:[%s6386_s14 + $0x10] sm:$0xff]  ;;  %5102 = sbr.rel (!%p6351_p6) target bundleno = 959 (0x3bf), region = 44  ;;  %s5607_s9 = sshll.u32 (%p6351_p6), %s6230_s21, 1 }
 0x3b7   : > { %v5082_v27 = vadd.f32 %v5078_v24, %v5065_v16  ;;  %v5083_v28 = vadd.f32 %v5079_v25, %v5066_v14  ;;  %v5084_v29 = vadd.f32 %v5080_v26, %v5067_v19  ;;  %v5081_v30 = vld [vmem:[%s6386_s14 + $0x18] sm:$0xff]  ;;  %v5120_v32 = vld [vmem:[%s7137_s18] sm:$0xff] (%p6351_p6)  ;;  %v5122_v33 = vld [vmem:[%s7137_s18 + $0x8] sm:$0xff] (%p6351_p6)  ;;  %s5104_s11 = sadd.s32 (%p6351_p6), %s6226_s20, %s5607_s9 }
 0x3b8   : > { %v5085_v31 = vadd.f32 %v5081_v30, %v5068_v22  ;;  %v5124_v34 = vld [vmem:[%s7137_s18 + $0x10] sm:$0xff] (%p6351_p6)  ;;  %v5126_v35 = vld [vmem:[%s7137_s18 + $0x18] sm:$0xff] (%p6351_p6)  ;;  %v5128_v36 = vld [vmem:[%s7137_s18 + $0x20] sm:$0xff] (%p6351_p6)  ;;  %s5623_s30 = sshll.u32 (%p6351_p6), %s5104_s11, 4 }
 0x3b9   : > { %5087 = vst.msk [vmem:[%s6386_s14] sm:$0xff] %vm5086_vm13, %v5082_v27  ;;  %5088 = vst.msk [vmem:[%s6386_s14 + $0x8] sm:$0xff] %vm5086_vm13, %v5083_v28  ;;  %v5130_v37 = vld [vmem:[%s7137_s18 + $0x28] sm:$0xff] (%p6351_p6)  ;;  %v5132_v62 = vld [vmem:[%s7137_s18 + $0x30] sm:$0xff] (%p6351_p6)  ;;  %s5107_s13 = scalar_lea.vmem (%p6351_p6), %s7211_s4, %s5623_s30 }
 0x3ba   : > { %5089 = vst.msk [vmem:[%s6386_s14 + $0x10] sm:$0xff] %vm5086_vm13, %v5084_v29  ;;  %5090 = vst.msk [vmem:[%s6386_s14 + $0x18] sm:$0xff] %vm5086_vm13, %v5085_v31  ;;  %v5134_v4 = vld [vmem:[%s7137_s18 + $0x38] sm:$0xff] (%p6351_p6) }
 0x3bb   : > { %5121 = vst [vmem:[%s5107_s13] sm:$0xff] (%p6351_p6), %v5120_v32  ;;  %5123 = vst [vmem:[%s5107_s13 + $0x8] sm:$0xff] (%p6351_p6), %v5122_v33 }
 0x3bc   : > { %5125 = vst [vmem:[%s5107_s13 + $0x40] sm:$0xff] (%p6351_p6), %v5124_v34  ;;  %5127 = vst [vmem:[%s5107_s13 + $0x48] sm:$0xff] (%p6351_p6), %v5126_v35 }
 0x3bd   : > { %5129 = vst [vmem:[%s5107_s13 + $0x80] sm:$0xff] %v5128_v36  ;;  %5131 = vst [vmem:[%s5107_s13 + $0x88] sm:$0xff] %v5130_v37 }
 0x3be   : > { %5133 = vst [vmem:[%s5107_s13 + $0xc0] sm:$0xff] %v5132_v62  ;;  %5135 = vst [vmem:[%s5107_s13 + $0xc8] sm:$0xff] %v5134_v4 }
 0x3bf PF: > { %s16_s24 = sadd.s32 1, %s6242_s24   ;;  %s7214_s18 = smov %s6222_s19 }
 0x3c0   : > { %p13_p0 = scmp.ge.s32.totalorder %s16_s24, 6   ;;  %s7215_s19 = smov %s6359_s10 }
 0x3c1   : > { %s7216_s20 = smov %s6234_s22  ;;  %s7217_s21 = smov %s6238_s23 }
 0x3c2   : > { %s7218_s22 = smov %s7221_s25  ;;  %s7219_s23 = smov %s7225_s26 }
 0x3c3   :  { %15 = sbr.rel (!%p13_p0) target bundleno = 4 (0x4), region = 137 }

// kernel: _lambda_.6
= control target key start
LH: loop header
LB: loop body
LE: loop exit
PB: predicated region body
PF: predicated region fallthrough
CT: control target
= control target key end

     0   :  { %s7046_s0 = inlined_call_operand.vmem [shape: bf16[27,32,16], index: 0, kind: input, shape index: {}]   ;;  %s7047_s1 = inlined_call_operand.vmem [shape: bf16[16,3072], index: 1, kind: input, shape index: {}, may-alias: {1,2}]   ;;  %s7048_s2 = inlined_call_operand.vmem [shape: bf16[16,3072], index: 2, kind: input, shape index: {}, may-alias: {1,2}]   ;;  %s7049_s3 = inlined_call_operand.vmem [shape: f32[1,1024], index: 3, kind: input, shape index: {}]   ;;  %s7050_s4 = inlined_call_operand.vmem [shape: bf16[32,2048], index: 4, kind: output, shape index: {0}]   ;;  %s7051_s5 = inlined_call_operand.vmem [shape: f32[2,32,2], index: 5, kind: output, shape index: {1}]  }
   0x1   :  { %7057 = sst [smem:[#allocation10_spill]] %s7046_s0 }
   0x2   :  { %7058 = sst [smem:[#allocation11_spill]] %s7049_s3 }
   0x3   :  { %7059 = sst [smem:[#allocation12_spill]] %s7050_s4 }
   0x4   :  { %7060 = sst [smem:[#allocation13_spill]] %s7051_s5 }
   0x5   :  { %s6183_s18 = smov 0   ;;  %s6185_s19 = smov 0  }
   0x6   :  { %s6187_s20 = smov 0   ;;  %s6189_s21 = smov 0  }
   0x7   :  { %s6191_s22 = smov 0   ;;  %s6193_s23 = smov 0  }
   0x8   :  { %s6195_s24 = smov 0   ;;  %s6197_s25 = smov 0  }
   0x9   :  { %s6199_s26 = smov 0   ;;  %s6201_s27 = smov 0  }
   0xa   :  { %s6203_s28 = smov 0  }
   0xb LB: > { %7061 = sst [smem:[#allocation6_spill]] %s6091_s20  ;;  %s25_s30 = sadd.s32 1, %s6115_s26  ;;  %s6123_s28 = sphi %s6203_s28, %s16_s28   ;;  %s6119_s27 = sphi %s6201_s27, %s7087_s27   ;;  %s6115_s26 = sphi %s6199_s26, %s7086_s26   ;;  %s6111_s25 = sphi %s6197_s25, %s7078_s25   ;;  %s6107_s24 = sphi %s6195_s24, %s7085_s24   ;;  %s6103_s23 = sphi %s6193_s23, %s7084_s23   ;;  %s6099_s22 = sphi %s6191_s22, %s7083_s22   ;;  %s6095_s21 = sphi %s6189_s21, %s7082_s21   ;;  %s6091_s20 = sphi %s6187_s20, %s7081_s20   ;;  %s6087_s19 = sphi %s6185_s19, %s7080_s19   ;;  %s6083_s18 = sphi %s6183_s18, %s7079_s18  }
   0xc   : > { %7062 = sst [smem:[#allocation7_spill]] %s6107_s24  ;;  %p26_p0 = scmp.ge.s32.totalorder %s25_s30, 2 }
   0xd   : > { %7063 = sst [smem:[#allocation8_spill]] %s6111_s25  ;;  %s28_s6 = sadd.s32 1, %s6119_s27 }
   0xe   : > { %7064 = sst [smem:[#allocation9_spill]] %s6119_s27  ;;  %s53_s7 = smul.u32 3, %s6119_s27 }
   0xf   : > { %s60_s8 = sadd.s32 1, %s6103_s23  ;;  %s7089_s30 = smov (%p26_p0, %s25_s30), 0 }
  0x10   : > { %s7091_s6 = smov (!%p26_p0, %s28_s6), %s6119_s27  ;;  %s6247_s9 = sadd.s32 %s6115_s26, %s53_s7 }
  0x11   : > { %p67_p1 = scmp.ne.s32.totalorder %s6103_s23, %s6099_s22  ;;  %p30_p2 = scmp.ge.s32.totalorder %s7091_s6, 2 }
  0x12   : > { %p68_p3 = scmp.eq.s32.totalorder %s6123_s28, 0  ;;  %s85_s10 = sadd.s32 1, %s6247_s9 }
  0x13   : > { %s92_s11 = sadd.s32 1, %s6095_s21  ;;  %s7093_s6 = smov (%p30_p2, %s7091_s6), 0 }
  0x14   : > { %p6256_p4 = por %p68_p3, %p67_p1  ;;  %p99_p5 = scmp.ne.s32.totalorder %s6095_s21, %s6091_s20 }
  0x15   : > { %s55_s13 = smul.u32 3, %s7093_s6  ;;  %s5121_s14 = sshll.u32 %s6119_s27, 1 }
  0x16   : > { %p6264_p6 = por %p99_p5, %p68_p3  ;;  %s142_s16 = sadd.s32 %s6115_s26, %s5121_s14 }
  0x17   : > { %s56_s17 = sadd.s32 %s55_s13, %s7089_s30  ;;  %s5122_s7 = sshll.u32 %s7093_s6, 1 }
  0x18   : > { %s57_s29 = ssub.s32 %s6247_s9, %s56_s17  ;;  %s88_s4 = sadd.s32 1, %s56_s17 }
  0x19   : > { %p58_p7 = scmp.eq.s32.totalorder %s57_s29, 0  ;;  %s89_s3 = ssub.s32 %s85_s10, %s88_s4 }
  0x1a   : > { %p90_p8 = scmp.eq.s32.totalorder %s89_s3, 0  ;;  %s144_s24 = sadd.s32 %s5122_s7, %s7089_s30 }
  0x1b   : > { %s6274_s0 = scalar_select %p58_p7, %s6103_s23, %s60_s8  }
  0x1c   : > { %s6277_s27 = scalar_select %p90_p8, %s6095_s21, %s92_s11  }
  0x1d   : > { %s145_s5 = ssub.s32 %s142_s16, %s144_s24  ;;  %s148_s25 = sadd.s32 1, %s6087_s19 }
  0x1e   : > { %p146_p9 = scmp.eq.s32.totalorder %s145_s5, 0  ;;  %p158_p10 = scmp.ne.s32.totalorder %s6087_s19, %s6083_s18 }
  0x1f   : > { %s7067_s20 = sadd.s32 4294967295, %s6123_s28   ;;  %p5124_p13 = scmp.ge.s32.totalorder %s6123_s28, 4 }
  0x20   : > { %p159_p11 = scmp.eq.s32.totalorder %s7067_s20, 3 }
  0x21   : > { %s6285_s14 = scalar_select %p146_p9, %s6087_s19, %s148_s25  }
  0x22   : > { %p6287_p12 = por %p159_p11, %p158_p10  ;;  %210 = sbr.rel (%p5124_p13) target bundleno = 55 (0x37), region = 20 }
  0x29   : > { %213 = sbr.rel (!%p6256_p4) target bundleno = 48 (0x30), region = 24  ;;  %s215_s3 = sand.u32 (%p6256_p4), 1, %s6103_s23  }
  0x2a   : > { %s5430_s4 = sshll.u32 (%p6256_p4), %s6247_s9, 4  ;;  %s5125_s5 = sshll.u32 (%p6256_p4), %s215_s3, 5 }
  0x2b   : > { %s222_s20 = scalar_lea.vmem (%p6256_p4), %s7047_s1, %s5430_s4  ;;  %s217_s25 = scalar_lea.vmem (%p6256_p4), [#allocation3], %s5125_s5 }
  0x2c   : > { %v235_v0 = vld [vmem:[%s222_s20] sm:$0xff] (%p6256_p4)  ;;  %v237_v1 = vld [vmem:[%s222_s20 + $0x8] sm:$0xff] (%p6256_p4) }
  0x2d   : > { %v239_v2 = vld [vmem:[%s222_s20 + $0x60] sm:$0xff] (%p6256_p4)  ;;  %236 = vst [vmem:[%s217_s25] sm:$0xff] (%p6256_p4), %v235_v0  ;;  %238 = vst [vmem:[%s217_s25 + $0x8] sm:$0xff] (%p6256_p4), %v237_v1  ;;  %v241_v3 = vld [vmem:[%s222_s20 + $0x68] sm:$0xff] (%p6256_p4) }
  0x2e   : > { %240 = vst [vmem:[%s217_s25 + $0x10] sm:$0xff] (%p6256_p4), %v239_v2  ;;  %242 = vst [vmem:[%s217_s25 + $0x18] sm:$0xff] (%p6256_p4), %v241_v3 }
  0x30 PF: > { %248 = sbr.rel (!%p6264_p6) target bundleno = 55 (0x37), region = 47  ;;  %s250_s8 = sand.u32 (%p6264_p6), 1, %s6095_s21  }
  0x31   : > { %s5129_s10 = sshll.u32 (%p6264_p6), %s6247_s9, 4  ;;  %s5128_s11 = sshll.u32 (%p6264_p6), %s250_s8, 5 }
  0x32   : > { %s5023_s17 = scalar_lea.vmem (%p6264_p6), %s7048_s2, %s5129_s10  ;;  %s252_s7 = scalar_lea.vmem (%p6264_p6), [#allocation4], %s5128_s11 }
  0x33   : > { %v5130_v4 = vld [vmem:[%s5023_s17 + $0x10] sm:$0xff] (%p6264_p6)  ;;  %v5131_v5 = vld [vmem:[%s5023_s17 + $0x18] sm:$0xff] (%p6264_p6) }
  0x34   : > { %v5132_v6 = vld [vmem:[%s5023_s17 + $0x70] sm:$0xff] (%p6264_p6)  ;;  %272 = vst [vmem:[%s252_s7] sm:$0xff] (%p6264_p6), %v5130_v4  ;;  %274 = vst [vmem:[%s252_s7 + $0x8] sm:$0xff] (%p6264_p6), %v5131_v5  ;;  %v5133_v7 = vld [vmem:[%s5023_s17 + $0x78] sm:$0xff] (%p6264_p6) }
  0x35   : > { %276 = vst [vmem:[%s252_s7 + $0x10] sm:$0xff] (%p6264_p6), %v5132_v6  ;;  %278 = vst [vmem:[%s252_s7 + $0x18] sm:$0xff] (%p6264_p6), %v5133_v7 }
  0x37 PF: > { %p5134_p0 = scmp.ge.s32.totalorder %s6123_s28, 1  ;;  %p291_p1 = scmp.lt.s32.totalorder %s6123_s28, 5 }
  0x39   : > { %p292_p2 = pnand %p5134_p0, %p291_p1 }
  0x3a   : > { %s7069_s9 = sld [smem:[#allocation6_spill]] (!%p292_p2)  ;;  %s298_s15 = sand.u32 (!%p292_p2), 1, %s6099_s22   ;;  %v6125_v8 = vmov (!%p292_p2), 0   ;;  %vm460_vm0 = vcmask (!%p292_p2), 1039360   ;;  %vm469_vm1 = vcmask (!%p292_p2), 130048   ;;  %vm729_vm2 = vcmask (!%p292_p2), 1031168  }
  0x3b   : > { %295 = sbr.rel (%p292_p2) target bundleno = 1000 (0x3e8), region = 74  ;;  %s7070_s3 = sld [smem:[#allocation8_spill]] (!%p292_p2)  ;;  %508 = vmatprep.mubr.bf16.mxu0 (!%p292_p2), %v6125_v8  ;;  %561 = vmatprep.mubr.bf16.mxu1 (!%p292_p2), %v6125_v8  ;;  %vm891_vm3 = vcmask (!%p292_p2), 965632   ;;  %vm1053_vm4 = vcmask (!%p292_p2), 957440   ;;  %vm1215_vm5 = vcmask (!%p292_p2), 949248   ;;  %vm1377_vm6 = vcmask (!%p292_p2), 883712  }
  0x3c   : > { %s5135_s4 = sshll.u32 (!%p292_p2), %s298_s15, 5  ;;  %s6126_s22 = smov (!%p292_p2), 127   ;;  %vm1539_vm7 = vcmask (!%p292_p2), 875520   ;;  %vm1701_vm8 = vcmask (!%p292_p2), 867328   ;;  %vm1863_vm9 = vcmask (!%p292_p2), 228352   ;;  %vm2025_vm10 = vcmask (!%p292_p2), 220160  }
  0x3d   : > { %s6314_s29 = scalar_lea.vmem (!%p292_p2), [#allocation3], %s5135_s4  ;;  %s7071_s11 = sld [smem:[#allocation13_spill]] (!%p292_p2)  ;;  %vm2187_vm11 = vcmask (!%p292_p2), 211968   ;;  %vm2349_vm12 = vcmask (!%p292_p2), 146432   ;;  %vm2511_vm13 = vcmask (!%p292_p2), 138240   ;;  %vm2835_vm14 = vcmask (!%p292_p2), 64512  }
  0x3e   : > { %v6317_v9 = vld [vmem:[%s6314_s29 + $0x4] ss:$16 sps:$4 sm:$0xff] (!%p292_p2)   ;;  %v6320_v10 = vld [vmem:[%s6314_s29] ss:$16 sps:$4 sm:$0xff] (!%p292_p2)   ;;  %v6324_v11 = vld [vmem:[%s6314_s29 + $0x8] ss:$16 sps:$4 sm:$0xff] (!%p292_p2)  }
  0x3f   : > { %452 = vrot.lane.b32.xlu0 (!%p292_p2), %v6317_v9, %s6126_s22  ;;  %450 = vrot.lane.b32.xlu1 (!%p292_p2), %v6320_v10, %s6126_s22  ;;  %v6329_v12 = vld [vmem:[%s6314_s29 + $0xc] ss:$16 sps:$4 sm:$0xff] (!%p292_p2)   ;;  %s6127_s16 = smov (!%p292_p2), 126   ;;  %s6128_s17 = smov (!%p292_p2), 118   ;;  %vm2997_vm15 = vcmask (!%p292_p2), 56320  }
  0x40   : > { %s305_s5 = sand.u32 (!%p292_p2), 1, %s7069_s9   ;;  %s6129_s7 = smov (!%p292_p2), 117  }
  0x41   : > { %s6312_s24 = sshll.u32 (!%p292_p2), %s305_s5, 5  ;;  %p359_p3 = scmp.lt.s32.totalorder (!%p292_p2), %s7070_s3, 1 }
  0x42   : > { %s307_s20 = scalar_lea.vmem [#allocation4], %s6312_s24  ;;  %s6130_s9 = smov 116  }
  0x43   : > { %v6334_v13 = vld [vmem:[%s307_s20] ss:$16 sps:$4 sm:$0xff]   ;;  %454 = vrot.lane.b32.xlu0 %v6324_v11, %s6126_s22  ;;  %s7095_s3 = smov (!%p359_p3, %s7070_s3), 1  ;;  %456 = vrot.lane.b32.xlu1 %v6329_v12, %s6126_s22  ;;  %s6131_s15 = smov 108   ;;  %v6499_v0 = vld [vmem:[%s307_s20 + $0x4] ss:$16 sps:$4 sm:$0xff]  }
  0x44   : > { %s5431_s25 = sshll.u32 %s7095_s3, 5  ;;  %s6132_s3 = smov 107  }
  0x45   : > { %s6342_s12 = scalar_lea.vmem %s7071_s11, %s5431_s25  ;;  %s6133_s4 = smov 106  }
  0x46   : > { %s6134_s5 = smov 28   ;;  %s6136_s25 = smov 26  }
  0x47   : > { %458 = vrot.lane.b32.xlu0 %v6334_v13, %s6126_s22  ;;  %721 = vrot.lane.b32.xlu1 %v6317_v9, %s6127_s16  ;;  %s6135_s22 = smov 27   ;;  %s6137_s8 = smov 18  }
  0x48   : > { %s6144_s24 = smov 55   ;;  %s6149_s11 = smov 36  }
  0x49   : > { %s6151_s20 = smov 34  }
  0x4b   : > { %723 = vrot.lane.b32.xlu0 %v6324_v11, %s6127_s16  ;;  %719 = vrot.lane.b32.xlu1 %v6320_v10, %s6127_s16 }
  0x4f   : > { %725 = vrot.lane.b32.xlu0 %v6329_v12, %s6127_s16  ;;  %727 = vrot.lane.b32.xlu1 %v6334_v13, %s6127_s16  ;;  %s7072_s16 = sld [smem:[#allocation10_spill]] }
  0x53   : > { %883 = vrot.lane.b32.xlu0 %v6317_v9, %s6128_s17  ;;  %885 = vrot.lane.b32.xlu1 %v6324_v11, %s6128_s17 }
  0x55   : > { %v5981_v20 = vld [vmem:[%s7072_s16 + $0x10] sm:$0xff]   ;;  %v5982_v28 = vld [vmem:[%s7072_s16 + $0x18] sm:$0xff]   ;;  %v5983_v34 = vld [vmem:[%s7072_s16] sm:$0xff]  }
  0x56   : > { %v5984_v42 = vld [vmem:[%s7072_s16 + $0x8] sm:$0xff]   ;;  %v5985_v46 = vld [vmem:[%s7072_s16 + $0x20] sm:$0xff]   ;;  %v5987_v57 = vld [vmem:[%s7072_s16 + $0x30] sm:$0xff]  }
  0x57   : > { %881 = vrot.lane.b32.xlu0 %v6320_v10, %s6128_s17  ;;  %887 = vrot.lane.b32.xlu1 %v6329_v12, %s6128_s17  ;;  %v5986_v53 = vld [vmem:[%s7072_s16 + $0x28] sm:$0xff]   ;;  %v5988_v1 = vld [vmem:[%s7072_s16 + $0x38] sm:$0xff]  }
  0x58   : > { %v5989_v5 = vld [vmem:[%s7072_s16 + $0x40] sm:$0xff]  }
  0x5b   : > { %889 = vrot.lane.b32.xlu0 %v6334_v13, %s6128_s17  ;;  %1045 = vrot.lane.b32.xlu1 %v6317_v9, %s6129_s7  ;;  %s6138_s17 = smov 17  }
  0x5f   : > { %1047 = vrot.lane.b32.xlu0 %v6324_v11, %s6129_s7  ;;  %1043 = vrot.lane.b32.xlu1 %v6320_v10, %s6129_s7 }
  0x63   : > { %1049 = vrot.lane.b32.xlu0 %v6329_v12, %s6129_s7  ;;  %1051 = vrot.lane.b32.xlu1 %v6334_v13, %s6129_s7  ;;  %s7073_s7 = sld [smem:[#allocation7_spill]] }
  0x67   : > { %1207 = vrot.lane.b32.xlu0 %v6317_v9, %s6130_s9  ;;  %1209 = vrot.lane.b32.xlu1 %v6324_v11, %s6130_s9 }
  0x69   : > { %p5423_p5 = scmp.ne.s32.totalorder %s7073_s7, 0 }
  0x6b   : > { %1205 = vrot.lane.b32.xlu0 %v6320_v10, %s6130_s9  ;;  %1211 = vrot.lane.b32.xlu1 %v6329_v12, %s6130_s9 }
  0x6f   : > { %1213 = vrot.lane.b32.xlu0 %v6334_v13, %s6130_s9  ;;  %1369 = vrot.lane.b32.xlu1 %v6317_v9, %s6131_s15  ;;  %s6142_s9 = smov 6  }
  0x73   : > { %1371 = vrot.lane.b32.xlu0 %v6324_v11, %s6131_s15  ;;  %1367 = vrot.lane.b32.xlu1 %v6320_v10, %s6131_s15 }
  0x77   : > { %1373 = vrot.lane.b32.xlu0 %v6329_v12, %s6131_s15  ;;  %1375 = vrot.lane.b32.xlu1 %v6334_v13, %s6131_s15  ;;  %s6139_s15 = smov 16  }
  0x7b   : > { %1531 = vrot.lane.b32.xlu0 %v6317_v9, %s6132_s3  ;;  %1533 = vrot.lane.b32.xlu1 %v6324_v11, %s6132_s3 }
  0x7f   : > { %1529 = vrot.lane.b32.xlu0 %v6320_v10, %s6132_s3  ;;  %1535 = vrot.lane.b32.xlu1 %v6329_v12, %s6132_s3 }
  0x83   : > { %1537 = vrot.lane.b32.xlu0 %v6334_v13, %s6132_s3  ;;  %1693 = vrot.lane.b32.xlu1 %v6317_v9, %s6133_s4  ;;  %s6150_s3 = smov 35  }
  0x87   : > { %1695 = vrot.lane.b32.xlu0 %v6324_v11, %s6133_s4  ;;  %1691 = vrot.lane.b32.xlu1 %v6320_v10, %s6133_s4 }
  0x8b   : > { %1697 = vrot.lane.b32.xlu0 %v6329_v12, %s6133_s4  ;;  %1699 = vrot.lane.b32.xlu1 %v6334_v13, %s6133_s4  ;;  %s6143_s4 = smov 56  }
  0x8f   : > { %1855 = vrot.lane.b32.xlu0 %v6317_v9, %s6134_s5  ;;  %1857 = vrot.lane.b32.xlu1 %v6324_v11, %s6134_s5 }
  0x93   : > { %1853 = vrot.lane.b32.xlu0 %v6320_v10, %s6134_s5  ;;  %1859 = vrot.lane.b32.xlu1 %v6329_v12, %s6134_s5 }
  0x97   : > { %1861 = vrot.lane.b32.xlu0 %v6334_v13, %s6134_s5  ;;  %2017 = vrot.lane.b32.xlu1 %v6317_v9, %s6135_s22  ;;  %s6140_s5 = smov 8  }
  0x9b   : > { %2019 = vrot.lane.b32.xlu0 %v6324_v11, %s6135_s22  ;;  %2015 = vrot.lane.b32.xlu1 %v6320_v10, %s6135_s22 }
  0x9f   : > { %2021 = vrot.lane.b32.xlu0 %v6329_v12, %s6135_s22  ;;  %2023 = vrot.lane.b32.xlu1 %v6334_v13, %s6135_s22 }
  0xa3   : > { %2179 = vrot.lane.b32.xlu0 %v6317_v9, %s6136_s25  ;;  %2181 = vrot.lane.b32.xlu1 %v6324_v11, %s6136_s25 }
  0xa7   : > { %2177 = vrot.lane.b32.xlu0 %v6320_v10, %s6136_s25  ;;  %2183 = vrot.lane.b32.xlu1 %v6329_v12, %s6136_s25 }
  0xab   : > { %2185 = vrot.lane.b32.xlu0 %v6334_v13, %s6136_s25  ;;  %2341 = vrot.lane.b32.xlu1 %v6317_v9, %s6137_s8 }
  0xaf   : > { %2343 = vrot.lane.b32.xlu0 %v6324_v11, %s6137_s8  ;;  %2339 = vrot.lane.b32.xlu1 %v6320_v10, %s6137_s8 }
  0xb1   : > { %v453_v14 = vpop.permute.xlu0 %452  ;;  %v451_v15 = vpop.permute.xlu1 %450 }
  0xb2   : > { %v461_v19 = vsel %vm460_vm0, %v451_v15, %v453_v14 }
  0xb3   : > { %2345 = vrot.lane.b32.xlu0 %v6329_v12, %s6137_s8  ;;  %2347 = vrot.lane.b32.xlu1 %v6334_v13, %s6137_s8  ;;  %s6141_s8 = smov 7  }
  0xb5   : > { %v455_v16 = vpop.permute.xlu0 %454  ;;  %v457_v17 = vpop.permute.xlu1 %456 }
  0xb6   : > { %v462_v18 = vsel %vm460_vm0, %v453_v14, %v455_v16  ;;  %v463_v24 = vsel %vm460_vm0, %v455_v16, %v457_v17 }
  0xb7   : > { %476 = vmatprep.subr.bf16.mxu0 %v462_v18  ;;  %2503 = vrot.lane.b32.xlu0 %v6317_v9, %s6138_s17 }
  0xb8   : > { %477 = vmatpush1.bf16.msra.mxu0 %v461_v19  ;;  %2505 = vrot.lane.b32.xlu1 %v6324_v11, %s6138_s17 }
  0xb9   : > { %v459_v21 = vpop.permute.xlu0 %458  ;;  %598 = vmatprep.subr.bf16.mxu0 %v6317_v9  ;;  %v722_v23 = vpop.permute.xlu1 %721 }
  0xba   : > { %v464_v22 = vsel %vm460_vm0, %v457_v17, %v459_v21  ;;  %v5990_v17 = vld [vmem:[%s7072_s16 + $0x48] sm:$0xff]   ;;  %v5991_v21 = vld [vmem:[%s7072_s16 + $0x50] sm:$0xff]   ;;  %vm3159_vm0 = vcmask 48128  }
  0xbb   : > { %5155 = vmatmul.mubr.msk.bf16.vlgmr.msra.gmra.mrb[0].mxu0 %vm469_vm1, %v5981_v20  ;;  %529 = vmatprep.subr.bf16.mxu1 %v464_v22 }
  0xbc   : > { %530 = vmatpush1.bf16.msra.mxu1 %v463_v24  ;;  %599 = vmatpush1.bf16.msra.mxu0 %v6320_v10 }
  0xbd   : > { %651 = vmatprep.subr.bf16.mxu1 %v6329_v12  ;;  %518 = vmatprep.mubr.bf16.mxu0 %v6125_v8  ;;  %v724_v25 = vpop.permute.xlu0 %723  ;;  %v720_v26 = vpop.permute.xlu1 %719 }
  0xbe   : > { %v731_v27 = vsel %vm729_vm2, %v722_v23, %v724_v25  ;;  %2501 = vrot.lane.b32.xlu0 %v6320_v10, %s6138_s17  ;;  %2507 = vrot.lane.b32.xlu1 %v6329_v12, %s6138_s17  ;;  %v730_v35 = vsel %vm729_vm2, %v720_v26, %v722_v23 }
  0xbf   : > { %5157 = vmatmul.mubr.msk.bf16.vlgmr.msra.gmra.mrb[0].mxu1 %vm469_vm1, %v5981_v20  ;;  %744 = vmatprep.subr.bf16.mxu0 %v731_v27 }
  0xc0   : > { %652 = vmatpush1.bf16.msra.mxu1 %v6324_v11  ;;  %571 = vmatprep.mubr.bf16.mxu1 %v6125_v8 }
  0xc1   : > { %v726_v29 = vpop.permute.xlu0 %725  ;;  %v728_v30 = vpop.permute.xlu1 %727 }
  0xc2   : > { %2509 = vrot.lane.b32.xlu0 %v6334_v13, %s6138_s17  ;;  %2665 = vrot.lane.b32.xlu1 %v6317_v9, %s6139_s15  ;;  %v733_v31 = vsel %vm729_vm2, %v726_v29, %v728_v30  ;;  %v732_v39 = vsel %vm729_vm2, %v724_v25, %v726_v29  ;;  %vm3331_vm2 = vcmask 457728  }
  0xc3   : > { %5156 = vmatmul.mubr.msk.bf16.gmra.mrb[4].mxu0 %vm469_vm1, %v5982_v28  ;;  %797 = vmatprep.subr.bf16.mxu1 %v733_v31 }
  0xc4   : > { %630 = vmatprep.mubr.bf16.mxu0 %v6125_v8 }
  0xc5   : > { %v884_v32 = vpop.permute.xlu0 %883  ;;  %v886_v33 = vpop.permute.xlu1 %885 }
  0xc6   : > { %2667 = vrot.lane.b32.xlu0 %v6324_v11, %s6139_s15  ;;  %2663 = vrot.lane.b32.xlu1 %v6320_v10, %s6139_s15  ;;  %v893_v37 = vsel %vm891_vm3, %v884_v32, %v886_v33 }
  0xc7   : > { %5158 = vmatmul.mubr.msk.bf16.gmra.mrb[4].mxu1 %vm469_vm1, %v5982_v28  ;;  %v5992_v28 = vld [vmem:[%s7072_s16 + $0x58] sm:$0xff]  }
  0xc8   : > { %683 = vmatprep.mubr.bf16.mxu1 %v6125_v8 }
  0xc9   : > { %v882_v36 = vpop.permute.xlu0 %881  ;;  %v888_v38 = vpop.permute.xlu1 %887 }
  0xca   : > { %2669 = vrot.lane.b32.xlu0 %v6329_v12, %s6139_s15  ;;  %2671 = vrot.lane.b32.xlu1 %v6334_v13, %s6139_s15  ;;  %v892_v47 = vsel %vm891_vm3, %v882_v36, %v884_v32  ;;  %v894_v51 = vsel %vm891_vm3, %v886_v33, %v888_v38  ;;  %v5993_v32 = vld [vmem:[%s7072_s16 + $0x60] sm:$0xff]  }
  0xcb   : > { %5161 = vmatmul.mubr.msk.bf16.vlgmr.msra.gmra.mrb[0].mxu0 %vm469_vm1, %v5983_v34 }
  0xcc   : > { %745 = vmatpush1.bf16.msra.mxu0 %v730_v35  ;;  %640 = vmatprep.mubr.bf16.mxu0 %v6125_v8 }
  0xcd   : > { %906 = vmatprep.subr.bf16.mxu0 %v893_v37  ;;  %v890_v40 = vpop.permute.xlu0 %889  ;;  %v1046_v43 = vpop.permute.xlu1 %1045 }
  0xce   : > { %v895_v41 = vsel %vm891_vm3, %v888_v38, %v890_v40  ;;  %2827 = vrot.lane.b32.xlu0 %v6317_v9, %s6140_s5  ;;  %2829 = vrot.lane.b32.xlu1 %v6324_v11, %s6140_s5  ;;  %vm3493_vm3 = vcmask 449536  }
  0xcf   : > { %5163 = vmatmul.mubr.msk.bf16.vlgmr.msra.gmra.mrb[0].mxu1 %vm469_vm1, %v5983_v34 }
  0xd0   : > { %798 = vmatpush1.bf16.msra.mxu1 %v732_v39  ;;  %693 = vmatprep.mubr.bf16.mxu1 %v6125_v8  ;;  %v5994_v39 = vld [vmem:[%s7072_s16 + $0x68] sm:$0xff]  }
  0xd1   : > { %959 = vmatprep.subr.bf16.mxu1 %v895_v41  ;;  %v1048_v44 = vpop.permute.xlu0 %1047  ;;  %v1044_v45 = vpop.permute.xlu1 %1043 }
  0xd2   : > { %2825 = vrot.lane.b32.xlu0 %v6320_v10, %s6140_s5  ;;  %2831 = vrot.lane.b32.xlu1 %v6329_v12, %s6140_s5  ;;  %v1055_v48 = vsel %vm1053_vm4, %v1046_v43, %v1048_v44  ;;  %v1054_v58 = vsel %vm1053_vm4, %v1044_v45, %v1046_v43  ;;  %v5995_v43 = vld [vmem:[%s7072_s16 + $0x70] sm:$0xff]  }
  0xd3   : > { %5162 = vmatmul.mubr.msk.bf16.gmra.mrb[4].mxu0 %vm469_vm1, %v5984_v42 }
  0xd4   : > { %776 = vmatprep.mubr.bf16.mxu0 %v6125_v8 }
  0xd5   : > { %v1050_v49 = vpop.permute.xlu0 %1049  ;;  %v1052_v50 = vpop.permute.xlu1 %1051 }
  0xd6   : > { %2833 = vrot.lane.b32.xlu0 %v6334_v13, %s6140_s5  ;;  %2989 = vrot.lane.b32.xlu1 %v6317_v9, %s6141_s8  ;;  %v1057_v52 = vsel %vm1053_vm4, %v1050_v49, %v1052_v50  ;;  %v1056_v62 = vsel %vm1053_vm4, %v1048_v44, %v1050_v49  ;;  %v5996_v50 = vld [vmem:[%s7072_s16 + $0x78] sm:$0xff]   ;;  %vm3655_vm4 = vcmask 441344   ;;  %s5138_s5 = sshll.u32 %s7073_s7, 2 }
  0xd7   : > { %5164 = vmatmul.mubr.msk.bf16.gmra.mrb[4].mxu1 %vm469_vm1, %v5984_v42  ;;  %p352_p4 = scmp.lt.s32.totalorder %s5138_s5, 7 }
  0xd8   : > { %829 = vmatprep.mubr.bf16.mxu1 %v6125_v8 }
  0xd9   : > { %v1208_v54 = vpop.permute.xlu0 %1207  ;;  %v1210_v56 = vpop.permute.xlu1 %1209  ;;  %s7097_s5 = smov (!%p352_p4, %s5138_s5), 7 }
  0xda   : > { %2991 = vrot.lane.b32.xlu0 %v6324_v11, %s6141_s8  ;;  %2987 = vrot.lane.b32.xlu1 %v6320_v10, %s6141_s8  ;;  %v1217_v59 = vsel %vm1215_vm5, %v1208_v54, %v1210_v56 }
  0xdb   : > { %5171 = vmatmul.mubr.msk.bf16.vlgmr.msra.gmra.mrb[0].mxu0 %vm469_vm1, %v5985_v46 }
  0xdc   : > { %907 = vmatpush1.bf16.msra.mxu0 %v892_v47  ;;  %786 = vmatprep.mubr.bf16.mxu0 %v6125_v8 }
  0xdd   : > { %1068 = vmatprep.subr.bf16.mxu0 %v1055_v48  ;;  %v1206_v55 = vpop.permute.xlu0 %1205  ;;  %v1212_v60 = vpop.permute.xlu1 %1211 }
  0xde   : > { %2993 = vrot.lane.b32.xlu0 %v6329_v12, %s6141_s8  ;;  %2995 = vrot.lane.b32.xlu1 %v6334_v13, %s6141_s8  ;;  %v1216_v6 = vsel %vm1215_vm5, %v1206_v55, %v1208_v54  ;;  %v1218_v15 = vsel %vm1215_vm5, %v1210_v56, %v1212_v60  ;;  %s6145_s8 = smov 54   ;;  %v5997_v54 = vld [vmem:[%s7072_s16 + $0x80] sm:$0xff]  }
  0xdf   : > { %5173 = vmatmul.mubr.msk.bf16.vlgmr.msra.gmra.mrb[0].mxu1 %vm469_vm1, %v5985_v46 }
  0xe0   : > { %960 = vmatpush1.bf16.msra.mxu1 %v894_v51  ;;  %839 = vmatprep.mubr.bf16.mxu1 %v6125_v8 }
  0xe1   : > { %1121 = vmatprep.subr.bf16.mxu1 %v1057_v52  ;;  %v1214_v61 = vpop.permute.xlu0 %1213  ;;  %v1370_v2 = vpop.permute.xlu1 %1369 }
  0xe2   : > { %3151 = vrot.lane.b32.xlu0 %v6317_v9, %s6142_s9  ;;  %3153 = vrot.lane.b32.xlu1 %v6324_v11, %s6142_s9  ;;  %v1219_v63 = vsel %vm1215_vm5, %v1212_v60, %v1214_v61  ;;  %v5998_v61 = vld [vmem:[%s7072_s16 + $0x88] sm:$0xff]   ;;  %vm3817_vm5 = vcmask 375808  }
  0xe3   : > { %5172 = vmatmul.mubr.msk.bf16.gmra.mrb[4].mxu0 %vm469_vm1, %v5986_v53 }
  0xe4   : > { %938 = vmatprep.mubr.bf16.mxu0 %v6125_v8 }
  0xe5   : > { %v1372_v3 = vpop.permute.xlu0 %1371  ;;  %v1368_v4 = vpop.permute.xlu1 %1367 }
  0xe6   : > { %3149 = vrot.lane.b32.xlu0 %v6320_v10, %s6142_s9  ;;  %3155 = vrot.lane.b32.xlu1 %v6329_v12, %s6142_s9  ;;  %v1379_v7 = vsel %vm1377_vm6, %v1370_v2, %v1372_v3  ;;  %v1378_v22 = vsel %vm1377_vm6, %v1368_v4, %v1370_v2  ;;  %v5999_v2 = vld [vmem:[%s7072_s16 + $0x90] sm:$0xff]  }
  0xe7   : > { %5174 = vmatmul.mubr.msk.bf16.gmra.mrb[4].mxu1 %vm469_vm1, %v5986_v53 }
  0xe8   : > { %991 = vmatprep.mubr.bf16.mxu1 %v6125_v8 }
  0xe9   : > { %v1374_v10 = vpop.permute.xlu0 %1373  ;;  %v1376_v14 = vpop.permute.xlu1 %1375 }
  0xea   : > { %3157 = vrot.lane.b32.xlu0 %v6334_v13, %s6142_s9  ;;  %3323 = vrot.lane.b32.xlu1 %v6324_v11, %s6143_s4  ;;  %v1381_v16 = vsel %vm1377_vm6, %v1374_v10, %v1376_v14  ;;  %s6146_s9 = smov 46   ;;  %v1380_v26 = vsel %vm1377_vm6, %v1372_v3, %v1374_v10  ;;  %v6000_v10 = vld [vmem:[%s7072_s16 + $0x98] sm:$0xff]   ;;  %vm3979_vm6 = vcmask 367616  }
  0xeb   : > { %5181 = vmatmul.mubr.msk.bf16.vlgmr.msra.gmra.mrb[0].mxu0 %vm469_vm1, %v5987_v57 }
  0xec   : > { %1069 = vmatpush1.bf16.msra.mxu0 %v1054_v58  ;;  %948 = vmatprep.mubr.bf16.mxu0 %v6125_v8 }
  0xed   : > { %1230 = vmatprep.subr.bf16.mxu0 %v1217_v59  ;;  %v1532_v18 = vpop.permute.xlu0 %1531  ;;  %v1534_v20 = vpop.permute.xlu1 %1533 }
  0xee   : > { %3325 = vrot.lane.b32.xlu0 %v6329_v12, %s6143_s4  ;;  %3321 = vrot.lane.b32.xlu1 %v6317_v9, %s6143_s4  ;;  %v1541_v23 = vsel %vm1539_vm7, %v1532_v18, %v1534_v20 }
  0xef   : > { %5183 = vmatmul.mubr.msk.bf16.vlgmr.msra.gmra.mrb[0].mxu1 %vm469_vm1, %v5987_v57 }
  0xf0   : > { %1122 = vmatpush1.bf16.msra.mxu1 %v1056_v62  ;;  %1001 = vmatprep.mubr.bf16.mxu1 %v6125_v8 }
  0xf1   : > { %1283 = vmatprep.subr.bf16.mxu1 %v1219_v63  ;;  %v1530_v19 = vpop.permute.xlu0 %1529  ;;  %v1536_v24 = vpop.permute.xlu1 %1535 }
  0xf2   : > { %3327 = vrot.lane.b32.xlu0 %v6334_v13, %s6143_s4  ;;  %3329 = vrot.lane.b32.xlu1 %v6499_v0, %s6143_s4  ;;  %s6147_s4 = smov 45   ;;  %v1540_v33 = vsel %vm1539_vm7, %v1530_v19, %v1532_v18  ;;  %v1542_v37 = vsel %vm1539_vm7, %v1534_v20, %v1536_v24 }
  0xf3   : > { %5182 = vmatmul.mubr.msk.bf16.gmra.mrb[4].mxu0 %vm469_vm1, %v5988_v1 }
  0xf4   : > { %1100 = vmatprep.mubr.bf16.mxu0 %v6125_v8 }
  0xf5   : > { %v1538_v25 = vpop.permute.xlu0 %1537  ;;  %v1694_v29 = vpop.permute.xlu1 %1693 }
  0xf6   : > { %3485 = vrot.lane.b32.xlu0 %v6324_v11, %s6144_s24  ;;  %3487 = vrot.lane.b32.xlu1 %v6329_v12, %s6144_s24  ;;  %v1543_v27 = vsel %vm1539_vm7, %v1536_v24, %v1538_v25  ;;  %v6004_v25 = vld [vmem:[%s7072_s16 + $0xb0] sm:$0xff]   ;;  %vm4141_vm7 = vcmask 359424  }
  0xf7   : > { %5184 = vmatmul.mubr.msk.bf16.gmra.mrb[4].mxu1 %vm469_vm1, %v5988_v1 }
  0xf8   : > { %1153 = vmatprep.mubr.bf16.mxu1 %v6125_v8 }
  0xf9   : > { %v1696_v30 = vpop.permute.xlu0 %1695  ;;  %v1692_v31 = vpop.permute.xlu1 %1691 }
  0xfa   : > { %3483 = vrot.lane.b32.xlu0 %v6317_v9, %s6144_s24  ;;  %3489 = vrot.lane.b32.xlu1 %v6334_v13, %s6144_s24  ;;  %v1703_v34 = vsel %vm1701_vm8, %v1694_v29, %v1696_v30  ;;  %v1702_v44 = vsel %vm1701_vm8, %v1692_v31, %v1694_v29 }
  0xfb   : > { %5191 = vmatmul.mubr.msk.bf16.vlgmr.msra.gmra.mrb[0].mxu0 %vm469_vm1, %v5989_v5 }
  0xfc   : > { %1231 = vmatpush1.bf16.msra.mxu0 %v1216_v6  ;;  %1110 = vmatprep.mubr.bf16.mxu0 %v6125_v8 }
  0xfd   : > { %1392 = vmatprep.subr.bf16.mxu0 %v1379_v7  ;;  %v1698_v35 = vpop.permute.xlu0 %1697  ;;  %v1700_v36 = vpop.permute.xlu1 %1699 }
  0xfe   : > { %3491 = vrot.lane.b32.xlu0 %v6499_v0, %s6144_s24  ;;  %3647 = vrot.lane.b32.xlu1 %v6324_v11, %s6145_s8  ;;  %v1705_v38 = vsel %vm1701_vm8, %v1698_v35, %v1700_v36  ;;  %s6148_s24 = smov 44   ;;  %v1704_v48 = vsel %vm1701_vm8, %v1696_v30, %v1698_v35  ;;  %v6006_v36 = vld [vmem:[%s7072_s16 + $0xc0] sm:$0xff]   ;;  %vm4303_vm8 = vcmask 293888  }
  0xff   : > { %5193 = vmatmul.mubr.msk.bf16.vlgmr.msra.gmra.mrb[0].mxu1 %vm469_vm1, %v5989_v5 }
 0x100   : > { %1284 = vmatpush1.bf16.msra.mxu1 %v1218_v15  ;;  %1163 = vmatprep.mubr.bf16.mxu1 %v6125_v8  ;;  %v6036_v15 = vld [vmem:[%s6314_s29 + $0x4] ss:$16 sps:$4 sm:$0xff]  }
 0x101   : > { %1445 = vmatprep.subr.bf16.mxu1 %v1381_v16  ;;  %v1856_v40 = vpop.permute.xlu0 %1855  ;;  %v1858_v42 = vpop.permute.xlu1 %1857  ;;  %v6002_v16 = vld [vmem:[%s7072_s16 + $0xa0] sm:$0xff]  }
 0x102   : > { %3649 = vrot.lane.b32.xlu0 %v6329_v12, %s6145_s8  ;;  %3645 = vrot.lane.b32.xlu1 %v6317_v9, %s6145_s8  ;;  %v1865_v45 = vsel %vm1863_vm9, %v1856_v40, %v1858_v42 }
 0x103   : > { %5192 = vmatmul.mubr.msk.bf16.gmra.mrb[4].mxu0 %vm469_vm1, %v5990_v17 }
 0x104   : > { %1262 = vmatprep.mubr.bf16.mxu0 %v6125_v8 }
 0x105   : > { %v1854_v41 = vpop.permute.xlu0 %1853  ;;  %v1860_v46 = vpop.permute.xlu1 %1859 }
 0x106   : > { %3651 = vrot.lane.b32.xlu0 %v6334_v13, %s6145_s8  ;;  %3653 = vrot.lane.b32.xlu1 %v6499_v0, %s6145_s8  ;;  %v1864_v55 = vsel %vm1863_vm9, %v1854_v41, %v1856_v40  ;;  %v1866_v59 = vsel %vm1863_vm9, %v1858_v42, %v1860_v46  ;;  %s334_s8 = sand.u32 1, %s6083_s18  }
 0x107   : > { %5194 = vmatmul.mubr.msk.bf16.gmra.mrb[4].mxu1 %vm469_vm1, %v5990_v17  ;;  %s5137_s10 = sshll.u32 %s334_s8, 6 }
 0x108   : > { %1315 = vmatprep.mubr.bf16.mxu1 %v6125_v8 }
 0x109   : > { %v1862_v47 = vpop.permute.xlu0 %1861  ;;  %v2018_v51 = vpop.permute.xlu1 %2017 }
 0x10a   : > { %3809 = vrot.lane.b32.xlu0 %v6324_v11, %s6146_s9  ;;  %3811 = vrot.lane.b32.xlu1 %v6329_v12, %s6146_s9  ;;  %v1867_v49 = vsel %vm1863_vm9, %v1860_v46, %v1862_v47  ;;  %v6008_v47 = vld [vmem:[%s7072_s16 + $0xd0] sm:$0xff]   ;;  %vm4465_vm9 = vcmask 285696  }
 0x10b   : > { %5201 = vmatmul.mubr.msk.bf16.vlgmr.msra.gmra.mrb[0].mxu0 %vm469_vm1, %v5991_v21 }
 0x10c   : > { %1393 = vmatpush1.bf16.msra.mxu0 %v1378_v22  ;;  %1272 = vmatprep.mubr.bf16.mxu0 %v6125_v8 }
 0x10d   : > { %1554 = vmatprep.subr.bf16.mxu0 %v1541_v23  ;;  %v2020_v52 = vpop.permute.xlu0 %2019  ;;  %v2016_v53 = vpop.permute.xlu1 %2015 }
 0x10e   : > { %3807 = vrot.lane.b32.xlu0 %v6317_v9, %s6146_s9  ;;  %3813 = vrot.lane.b32.xlu1 %v6334_v13, %s6146_s9  ;;  %v2027_v56 = vsel %vm2025_vm10, %v2018_v51, %v2020_v52 }
 0x10f   : > { %5203 = vmatmul.mubr.msk.bf16.vlgmr.msra.gmra.mrb[0].mxu1 %vm469_vm1, %v5991_v21  ;;  %v6003_v21 = vld [vmem:[%s7072_s16 + $0xa8] sm:$0xff]  }
 0x110   : > { %1446 = vmatpush1.bf16.msra.mxu1 %v1380_v26  ;;  %1325 = vmatprep.mubr.bf16.mxu1 %v6125_v8 }
 0x111   : > { %1607 = vmatprep.subr.bf16.mxu1 %v1543_v27  ;;  %v2022_v57 = vpop.permute.xlu0 %2021  ;;  %v2024_v58 = vpop.permute.xlu1 %2023 }
 0x112   : > { %3815 = vrot.lane.b32.xlu0 %v6499_v0, %s6146_s9  ;;  %3971 = vrot.lane.b32.xlu1 %v6324_v11, %s6147_s4  ;;  %v2029_v60 = vsel %vm2025_vm10, %v2022_v57, %v2024_v58  ;;  %v2028_v6 = vsel %vm2025_vm10, %v2020_v52, %v2022_v57  ;;  %v6010_v58 = vld [vmem:[%s7072_s16 + $0xe0] sm:$0xff]  }
 0x113   : > { %5202 = vmatmul.mubr.msk.bf16.gmra.mrb[4].mxu0 %vm469_vm1, %v5992_v28 }
 0x114   : > { %1424 = vmatprep.mubr.bf16.mxu0 %v6125_v8 }
 0x115   : > { %v2180_v62 = vpop.permute.xlu0 %2179  ;;  %v2182_v1 = vpop.permute.xlu1 %2181 }
 0x116   : > { %3973 = vrot.lane.b32.xlu0 %v6329_v12, %s6147_s4  ;;  %3969 = vrot.lane.b32.xlu1 %v6317_v9, %s6147_s4  ;;  %v2189_v3 = vsel %vm2187_vm11, %v2180_v62, %v2182_v1 }
 0x117   : > { %5204 = vmatmul.mubr.msk.bf16.gmra.mrb[4].mxu1 %vm469_vm1, %v5992_v28 }
 0x118   : > { %1477 = vmatprep.mubr.bf16.mxu1 %v6125_v8 }
 0x119   : > { %v2178_v63 = vpop.permute.xlu0 %2177  ;;  %v2184_v4 = vpop.permute.xlu1 %2183 }
 0x11a   : > { %3975 = vrot.lane.b32.xlu0 %v6334_v13, %s6147_s4  ;;  %3977 = vrot.lane.b32.xlu1 %v6499_v0, %s6147_s4  ;;  %v2188_v17 = vsel %vm2187_vm11, %v2178_v63, %v2180_v62 }
 0x11b   : > { %5211 = vmatmul.mubr.msk.bf16.vlgmr.msra.gmra.mrb[0].mxu0 %vm469_vm1, %v5993_v32 }
 0x11c   : > { %1555 = vmatpush1.bf16.msra.mxu0 %v1540_v33  ;;  %1434 = vmatprep.mubr.bf16.mxu0 %v6125_v8 }
 0x11d   : > { %1716 = vmatprep.subr.bf16.mxu0 %v1703_v34  ;;  %v2186_v5 = vpop.permute.xlu0 %2185  ;;  %v2342_v14 = vpop.permute.xlu1 %2341 }
 0x11e   : > { %4133 = vrot.lane.b32.xlu0 %v6324_v11, %s6148_s24  ;;  %4135 = vrot.lane.b32.xlu1 %v6329_v12, %s6148_s24  ;;  %v2191_v7 = vsel %vm2187_vm11, %v2184_v4, %v2186_v5  ;;  %v6012_v5 = vld [vmem:[%s7072_s16 + $0xf0] sm:$0xff]  }
 0x11f   : > { %5213 = vmatmul.mubr.msk.bf16.vlgmr.msra.gmra.mrb[0].mxu1 %vm469_vm1, %v5993_v32  ;;  %v6005_v32 = vld [vmem:[%s7072_s16 + $0xb8] sm:$0xff]  }
 0x120   : > { %1608 = vmatpush1.bf16.msra.mxu1 %v1542_v37  ;;  %1487 = vmatprep.mubr.bf16.mxu1 %v6125_v8 }
 0x121   : > { %1769 = vmatprep.subr.bf16.mxu1 %v1705_v38 }
 0x122   : > { %4131 = vrot.lane.b32.xlu0 %v6317_v9, %s6148_s24  ;;  %4137 = vrot.lane.b32.xlu1 %v6334_v13, %s6148_s24 }
 0x123   : > { %5212 = vmatmul.mubr.msk.bf16.gmra.mrb[4].mxu0 %vm469_vm1, %v5994_v39 }
 0x124   : > { %1586 = vmatprep.mubr.bf16.mxu0 %v6125_v8 }
 0x126   : > { %4139 = vrot.lane.b32.xlu0 %v6499_v0, %s6148_s24  ;;  %4295 = vrot.lane.b32.xlu1 %v6324_v11, %s6149_s11 }
 0x127   : > { %5214 = vmatmul.mubr.msk.bf16.gmra.mrb[4].mxu1 %vm469_vm1, %v5994_v39 }
 0x128   : > { %1639 = vmatprep.mubr.bf16.mxu1 %v6125_v8 }
 0x12a   : > { %4297 = vrot.lane.b32.xlu0 %v6329_v12, %s6149_s11  ;;  %4293 = vrot.lane.b32.xlu1 %v6317_v9, %s6149_s11 }
 0x12b   : > { %5221 = vmatmul.mubr.msk.bf16.vlgmr.msra.gmra.mrb[0].mxu0 %vm469_vm1, %v5995_v43 }
 0x12c   : > { %1717 = vmatpush1.bf16.msra.mxu0 %v1702_v44  ;;  %1596 = vmatprep.mubr.bf16.mxu0 %v6125_v8 }
 0x12d   : > { %1878 = vmatprep.subr.bf16.mxu0 %v1865_v45 }
 0x12e   : > { %4299 = vrot.lane.b32.xlu0 %v6334_v13, %s6149_s11  ;;  %4301 = vrot.lane.b32.xlu1 %v6499_v0, %s6149_s11  ;;  %s6967_s11 = scalar_lea.vmem [#allocation5], %s5137_s10 }
 0x12f   : > { %5223 = vmatmul.mubr.msk.bf16.vlgmr.msra.gmra.mrb[0].mxu1 %vm469_vm1, %v5995_v43  ;;  %v6007_v43 = vld [vmem:[%s7072_s16 + $0xc8] sm:$0xff]  }
 0x130   : > { %1770 = vmatpush1.bf16.msra.mxu1 %v1704_v48  ;;  %1649 = vmatprep.mubr.bf16.mxu1 %v6125_v8 }
 0x131   : > { %1931 = vmatprep.subr.bf16.mxu1 %v1867_v49 }
 0x132   : > { %4457 = vrot.lane.b32.xlu0 %v6324_v11, %s6150_s3  ;;  %4459 = vrot.lane.b32.xlu1 %v6329_v12, %s6150_s3 }
 0x133   : > { %5222 = vmatmul.mubr.msk.bf16.gmra.mrb[4].mxu0 %vm469_vm1, %v5996_v50 }
 0x134   : > { %1748 = vmatprep.mubr.bf16.mxu0 %v6125_v8 }
 0x136   : > { %4455 = vrot.lane.b32.xlu0 %v6317_v9, %s6150_s3  ;;  %4461 = vrot.lane.b32.xlu1 %v6334_v13, %s6150_s3  ;;  %v2026_v9 = vsel %vm2025_vm10, %v2016_v53, %v2018_v51  ;;  %vm4627_vm10 = vcmask 277504  }
 0x137   : > { %5224 = vmatmul.mubr.msk.bf16.gmra.mrb[4].mxu1 %vm469_vm1, %v5996_v50 }
 0x138   : > { %1801 = vmatprep.mubr.bf16.mxu1 %v6125_v8 }
 0x13a   : > { %4463 = vrot.lane.b32.xlu0 %v6499_v0, %s6150_s3  ;;  %4619 = vrot.lane.b32.xlu1 %v6324_v11, %s6151_s20  ;;  %v2344_v11 = vpop.permute.xlu0 %2343 }
 0x13b   : > { %5231 = vmatmul.mubr.msk.bf16.vlgmr.msra.gmra.mrb[0].mxu0 %vm469_vm1, %v5997_v54 }
 0x13c   : > { %1879 = vmatpush1.bf16.msra.mxu0 %v1864_v55  ;;  %1758 = vmatprep.mubr.bf16.mxu0 %v6125_v8 }
 0x13d   : > { %2040 = vmatprep.subr.bf16.mxu0 %v2027_v56 }
 0x13e   : > { %4621 = vrot.lane.b32.xlu0 %v6329_v12, %s6151_s20  ;;  %4617 = vrot.lane.b32.xlu1 %v6036_v15, %s6151_s20  ;;  %v2340_v12 = vpop.permute.xlu1 %2339  ;;  %v2346_v18 = vpop.permute.xlu0 %2345 }
 0x13f   : > { %5233 = vmatmul.mubr.msk.bf16.vlgmr.msra.gmra.mrb[0].mxu1 %vm469_vm1, %v5997_v54  ;;  %v2350_v26 = vsel %vm2349_vm12, %v2340_v12, %v2342_v14  ;;  %v2352_v30 = vsel %vm2349_vm12, %v2344_v11, %v2346_v18  ;;  %v6009_v54 = vld [vmem:[%s7072_s16 + $0xd8] sm:$0xff]  }
 0x140   : > { %1932 = vmatpush1.bf16.msra.mxu1 %v1866_v59  ;;  %1811 = vmatprep.mubr.bf16.mxu1 %v6125_v8  ;;  %v6013_v12 = vld [vmem:[%s7072_s16 + $0xf8] sm:$0xff]  }
 0x141   : > { %2093 = vmatprep.subr.bf16.mxu1 %v2029_v60 }
 0x142   : > { %4623 = vrot.lane.b32.xlu0 %v6334_v13, %s6151_s20  ;;  %4625 = vrot.lane.b32.xlu1 %v6499_v0, %s6151_s20  ;;  %v2351_v13 = vsel %vm2349_vm12, %v2342_v14, %v2344_v11  ;;  %v2348_v19 = vpop.permute.xlu1 %2347  ;;  %v2190_v0 = vsel %vm2187_vm11, %v2182_v1, %v2184_v4  ;;  %v2504_v22 = vpop.permute.xlu0 %2503  ;;  %s7074_s20 = sld [smem:[#allocation11_spill]]  ;;  %vm4923_vm11 = vcmask (!%p5423_p5), 15360  }
 0x143   : > { %5232 = vmatmul.mubr.msk.bf16.gmra.mrb[4].mxu0 %vm469_vm1, %v5998_v61  ;;  %v2353_v20 = vsel %vm2349_vm12, %v2346_v18, %v2348_v19  ;;  %v6014_v18 = vld [vmem:[%s7072_s16 + $0x100] sm:$0xff]  }
 0x144   : > { %1910 = vmatprep.mubr.bf16.mxu0 %v6125_v8 }
 0x146   : > { %v2502_v23 = vpop.permute.xlu0 %2501  ;;  %v2506_v24 = vpop.permute.xlu1 %2505 }
 0x147   : > { %5234 = vmatmul.mubr.msk.bf16.gmra.mrb[4].mxu1 %vm469_vm1, %v5998_v61  ;;  %v2513_v27 = vsel %vm2511_vm13, %v2504_v22, %v2506_v24  ;;  %v2512_v37 = vsel %vm2511_vm13, %v2502_v23, %v2504_v22 }
 0x148   : > { %1963 = vmatprep.mubr.bf16.mxu1 %v6125_v8  ;;  %s354_s25 = scalar_lea.vmem %s7074_s20, %s7097_s5 }
 0x14a   : > { %v2508_v28 = vpop.permute.xlu1 %2507  ;;  %v2510_v29 = vpop.permute.xlu0 %2509 }
 0x14b   : > { %5241 = vmatmul.mubr.msk.bf16.vlgmr.msra.gmra.mrb[0].mxu0 %vm469_vm1, %v5999_v2  ;;  %v2515_v31 = vsel %vm2511_vm13, %v2508_v28, %v2510_v29  ;;  %v2514_v41 = vsel %vm2511_vm13, %v2506_v24, %v2508_v28  ;;  %v6015_v24 = vld [vmem:[%s7072_s16 + $0x108] sm:$0xff]   ;;  %v6016_v28 = vld [vmem:[%s7072_s16 + $0x110] sm:$0xff]  }
 0x14c   : > { %2041 = vmatpush1.bf16.msra.mxu0 %v2026_v9  ;;  %1920 = vmatprep.mubr.bf16.mxu0 %v6125_v8 }
 0x14d   : > { %2202 = vmatprep.subr.bf16.mxu0 %v2189_v3 }
 0x14e   : > { %v2666_v33 = vpop.permute.xlu1 %2665  ;;  %v2668_v34 = vpop.permute.xlu0 %2667 }
 0x14f   : > { %5243 = vmatmul.mubr.msk.bf16.vlgmr.msra.gmra.mrb[0].mxu1 %vm469_vm1, %v5999_v2  ;;  %v2675_v38 = vsel %vm469_vm1, %v2666_v33, %v2668_v34  ;;  %v6011_v2 = vld [vmem:[%s7072_s16 + $0xe8] sm:$0xff]  }
 0x150   : > { %2094 = vmatpush1.bf16.msra.mxu1 %v2028_v6  ;;  %1973 = vmatprep.mubr.bf16.mxu1 %v6125_v8 }
 0x151   : > { %2255 = vmatprep.subr.bf16.mxu1 %v2191_v7 }
 0x152   : > { %v2664_v35 = vpop.permute.xlu1 %2663  ;;  %v2670_v39 = vpop.permute.xlu0 %2669 }
 0x153   : > { %5242 = vmatmul.mubr.msk.bf16.gmra.mrb[4].mxu0 %vm469_vm1, %v6000_v10  ;;  %v2674_v48 = vsel %vm469_vm1, %v2664_v35, %v2666_v33  ;;  %v2676_v52 = vsel %vm469_vm1, %v2668_v34, %v2670_v39  ;;  %v6017_v35 = vld [vmem:[%s7072_s16 + $0x118] sm:$0xff]  }
 0x154   : > { %2072 = vmatprep.mubr.bf16.mxu0 %v6125_v8 }
 0x156   : > { %v2672_v40 = vpop.permute.xlu1 %2671  ;;  %v2828_v44 = vpop.permute.xlu0 %2827 }
 0x157   : > { %5244 = vmatmul.mubr.msk.bf16.gmra.mrb[4].mxu1 %vm469_vm1, %v6000_v10  ;;  %v2677_v42 = vsel %vm469_vm1, %v2670_v39, %v2672_v40  ;;  %v6018_v39 = vld [vmem:[%s7072_s16 + $0x120] sm:$0xff]  }
 0x158   : > { %2125 = vmatprep.mubr.bf16.mxu1 %v6125_v8 }
 0x15a   : > { %v2826_v45 = vpop.permute.xlu0 %2825  ;;  %v2830_v46 = vpop.permute.xlu1 %2829 }
 0x15b   : > { %5251 = vmatmul.mubr.msk.bf16.vlgmr.msra.gmra.mrb[0].mxu0 %vm469_vm1, %v6002_v16  ;;  %v2837_v49 = vsel %vm2835_vm14, %v2828_v44, %v2830_v46  ;;  %v2836_v59 = vsel %vm2835_vm14, %v2826_v45, %v2828_v44 }
 0x15c   : > { %2203 = vmatpush1.bf16.msra.mxu0 %v2188_v17  ;;  %2082 = vmatprep.mubr.bf16.mxu0 %v6125_v8 }
 0x15d   : > { %2364 = vmatprep.subr.bf16.mxu0 %v2351_v13 }
 0x15e   : > { %v2832_v50 = vpop.permute.xlu1 %2831  ;;  %v2834_v51 = vpop.permute.xlu0 %2833 }
 0x15f   : > { %5253 = vmatmul.mubr.msk.bf16.vlgmr.msra.gmra.mrb[0].mxu1 %vm469_vm1, %v6002_v16  ;;  %v2839_v53 = vsel %vm2835_vm14, %v2832_v50, %v2834_v51  ;;  %v2838_v63 = vsel %vm2835_vm14, %v2830_v46, %v2832_v50  ;;  %v6019_v46 = vld [vmem:[%s7072_s16 + $0x128] sm:$0xff]   ;;  %v6020_v50 = vld [vmem:[%s7072_s16 + $0x130] sm:$0xff]  }
 0x160   : > { %2256 = vmatpush1.bf16.msra.mxu1 %v2190_v0  ;;  %2135 = vmatprep.mubr.bf16.mxu1 %v6125_v8 }
 0x161   : > { %2417 = vmatprep.subr.bf16.mxu1 %v2353_v20 }
 0x162   : > { %v2990_v55 = vpop.permute.xlu1 %2989  ;;  %v2992_v56 = vpop.permute.xlu0 %2991 }
 0x163   : > { %5252 = vmatmul.mubr.msk.bf16.gmra.mrb[4].mxu0 %vm469_vm1, %v6003_v21  ;;  %v2999_v60 = vsel %vm2997_vm15, %v2990_v55, %v2992_v56 }
 0x164   : > { %2234 = vmatprep.mubr.bf16.mxu0 %v6125_v8 }
 0x166   : > { %v2988_v57 = vpop.permute.xlu1 %2987  ;;  %v2994_v61 = vpop.permute.xlu0 %2993 }
 0x167   : > { %5254 = vmatmul.mubr.msk.bf16.gmra.mrb[4].mxu1 %vm469_vm1, %v6003_v21  ;;  %v2998_v6 = vsel %vm2997_vm15, %v2988_v57, %v2990_v55  ;;  %v3000_v15 = vsel %vm2997_vm15, %v2992_v56, %v2994_v61  ;;  %v6021_v57 = vld [vmem:[%s7072_s16 + $0x138] sm:$0xff]  }
 0x168   : > { %2287 = vmatprep.mubr.bf16.mxu1 %v6125_v8 }
 0x16a   : > { %v2996_v62 = vpop.permute.xlu1 %2995  ;;  %v3152_v9 = vpop.permute.xlu0 %3151 }
 0x16b   : > { %5261 = vmatmul.mubr.msk.bf16.vlgmr.msra.gmra.mrb[0].mxu0 %vm469_vm1, %v6004_v25  ;;  %v3001_v1 = vsel %vm2997_vm15, %v2994_v61, %v2996_v62  ;;  %v6022_v61 = vld [vmem:[%s7072_s16 + $0x140] sm:$0xff]  }
 0x16c   : > { %2365 = vmatpush1.bf16.msra.mxu0 %v2350_v26  ;;  %2244 = vmatprep.mubr.bf16.mxu0 %v6125_v8 }
 0x16d   : > { %2526 = vmatprep.subr.bf16.mxu0 %v2513_v27 }
 0x16e   : > { %v3150_v3 = vpop.permute.xlu0 %3149  ;;  %v3154_v4 = vpop.permute.xlu1 %3153 }
 0x16f   : > { %5263 = vmatmul.mubr.msk.bf16.vlgmr.msra.gmra.mrb[0].mxu1 %vm469_vm1, %v6004_v25  ;;  %v3161_v7 = vsel %vm3159_vm0, %v3152_v9, %v3154_v4  ;;  %v3160_v19 = vsel %vm3159_vm0, %v3150_v3, %v3152_v9 }
 0x170   : > { %2418 = vmatpush1.bf16.msra.mxu1 %v2352_v30  ;;  %2297 = vmatprep.mubr.bf16.mxu1 %v6125_v8 }
 0x171   : > { %2579 = vmatprep.subr.bf16.mxu1 %v2515_v31 }
 0x172   : > { %v3156_v10 = vpop.permute.xlu1 %3155  ;;  %v3158_v14 = vpop.permute.xlu0 %3157 }
 0x173   : > { %5262 = vmatmul.mubr.msk.bf16.gmra.mrb[4].mxu0 %vm469_vm1, %v6005_v32  ;;  %v3163_v11 = vsel %vm3159_vm0, %v3156_v10, %v3158_v14  ;;  %v3162_v22 = vsel %vm3159_vm0, %v3154_v4, %v3156_v10  ;;  %v6023_v4 = vld [vmem:[%s7072_s16 + $0x148] sm:$0xff]   ;;  %v6024_v10 = vld [vmem:[%s7072_s16 + $0x150] sm:$0xff]  }
 0x174   : > { %2396 = vmatprep.mubr.bf16.mxu0 %v6125_v8 }
 0x176   : > { %v3324_v16 = vpop.permute.xlu1 %3323  ;;  %v3326_v17 = vpop.permute.xlu0 %3325 }
 0x177   : > { %5264 = vmatmul.mubr.msk.bf16.gmra.mrb[4].mxu1 %vm469_vm1, %v6005_v32  ;;  %v3333_v0 = vsel %vm3331_vm2, %v3324_v16, %v3326_v17 }
 0x178   : > { %2449 = vmatprep.mubr.bf16.mxu1 %v6125_v8 }
 0x17a   : > { %v3322_v13 = vpop.permute.xlu1 %3321  ;;  %v3328_v20 = vpop.permute.xlu0 %3327 }
 0x17b   : > { %5271 = vmatmul.mubr.msk.bf16.vlgmr.msra.gmra.mrb[0].mxu0 %vm469_vm1, %v6006_v36  ;;  %v3332_v29 = vsel %vm3331_vm2, %v3322_v13, %v3324_v16  ;;  %v3334_v33 = vsel %vm3331_vm2, %v3326_v17, %v3328_v20  ;;  %v6025_v13 = vld [vmem:[%s7072_s16 + $0x158] sm:$0xff]  }
 0x17c   : > { %2527 = vmatpush1.bf16.msra.mxu0 %v2512_v37  ;;  %2406 = vmatprep.mubr.bf16.mxu0 %v6125_v8 }
 0x17d   : > { %2688 = vmatprep.subr.bf16.mxu0 %v2675_v38 }
 0x17e   : > { %v3330_v21 = vpop.permute.xlu1 %3329  ;;  %v3486_v25 = vpop.permute.xlu0 %3485 }
 0x17f   : > { %5273 = vmatmul.mubr.msk.bf16.vlgmr.msra.gmra.mrb[0].mxu1 %vm469_vm1, %v6006_v36  ;;  %v3335_v23 = vsel %vm3331_vm2, %v3328_v20, %v3330_v21  ;;  %v6026_v20 = vld [vmem:[%s7072_s16 + $0x160] sm:$0xff]  }
 0x180   : > { %2580 = vmatpush1.bf16.msra.mxu1 %v2514_v41  ;;  %2459 = vmatprep.mubr.bf16.mxu1 %v6125_v8 }
 0x181   : > { %2741 = vmatprep.subr.bf16.mxu1 %v2677_v42 }
 0x182   : > { %v3484_v26 = vpop.permute.xlu0 %3483  ;;  %v3488_v27 = vpop.permute.xlu1 %3487 }
 0x183   : > { %5272 = vmatmul.mubr.msk.bf16.gmra.mrb[4].mxu0 %vm469_vm1, %v6007_v43  ;;  %v3495_v30 = vsel %vm3493_vm3, %v3486_v25, %v3488_v27  ;;  %v3494_v40 = vsel %vm3493_vm3, %v3484_v26, %v3486_v25 }
 0x184   : > { %2558 = vmatprep.mubr.bf16.mxu0 %v6125_v8 }
 0x186   : > { %v3490_v31 = vpop.permute.xlu1 %3489  ;;  %v3492_v32 = vpop.permute.xlu0 %3491 }
 0x187   : > { %5274 = vmatmul.mubr.msk.bf16.gmra.mrb[4].mxu1 %vm469_vm1, %v6007_v43  ;;  %v3497_v34 = vsel %vm3493_vm3, %v3490_v31, %v3492_v32  ;;  %v3496_v44 = vsel %vm3493_vm3, %v3488_v27, %v3490_v31  ;;  %v6027_v27 = vld [vmem:[%s7072_s16 + $0x168] sm:$0xff]   ;;  %v6028_v31 = vld [vmem:[%s7072_s16 + $0x170] sm:$0xff]  }
 0x188   : > { %2611 = vmatprep.mubr.bf16.mxu1 %v6125_v8 }
 0x18a   : > { %v3648_v36 = vpop.permute.xlu1 %3647  ;;  %v3650_v37 = vpop.permute.xlu0 %3649 }
 0x18b   : > { %5281 = vmatmul.mubr.msk.bf16.vlgmr.msra.gmra.mrb[0].mxu0 %vm469_vm1, %v6008_v47  ;;  %v3657_v41 = vsel %vm3655_vm4, %v3648_v36, %v3650_v37 }
 0x18c   : > { %2689 = vmatpush1.bf16.msra.mxu0 %v2674_v48  ;;  %2568 = vmatprep.mubr.bf16.mxu0 %v6125_v8 }
 0x18d   : > { %2850 = vmatprep.subr.bf16.mxu0 %v2837_v49 }
 0x18e   : > { %v3646_v38 = vpop.permute.xlu1 %3645  ;;  %v3652_v42 = vpop.permute.xlu0 %3651 }
 0x18f   : > { %5283 = vmatmul.mubr.msk.bf16.vlgmr.msra.gmra.mrb[0].mxu1 %vm469_vm1, %v6008_v47  ;;  %v3656_v51 = vsel %vm3655_vm4, %v3646_v38, %v3648_v36  ;;  %v3658_v55 = vsel %vm3655_vm4, %v3650_v37, %v3652_v42  ;;  %v6029_v38 = vld [vmem:[%s7072_s16 + $0x178] sm:$0xff]  }
 0x190   : > { %2742 = vmatpush1.bf16.msra.mxu1 %v2676_v52  ;;  %2621 = vmatprep.mubr.bf16.mxu1 %v6125_v8 }
 0x191   : > { %2903 = vmatprep.subr.bf16.mxu1 %v2839_v53 }
 0x192   : > { %v3654_v43 = vpop.permute.xlu1 %3653  ;;  %v3810_v47 = vpop.permute.xlu0 %3809 }
 0x193   : > { %5282 = vmatmul.mubr.msk.bf16.gmra.mrb[4].mxu0 %vm469_vm1, %v6009_v54  ;;  %v3659_v45 = vsel %vm3655_vm4, %v3652_v42, %v3654_v43  ;;  %v6030_v42 = vld [vmem:[%s7072_s16 + $0x180] sm:$0xff]  }
 0x194   : > { %2720 = vmatprep.mubr.bf16.mxu0 %v6125_v8 }
 0x196   : > { %v3808_v48 = vpop.permute.xlu0 %3807  ;;  %v3812_v49 = vpop.permute.xlu1 %3811 }
 0x197   : > { %5284 = vmatmul.mubr.msk.bf16.gmra.mrb[4].mxu1 %vm469_vm1, %v6009_v54  ;;  %v3819_v52 = vsel %vm3817_vm5, %v3810_v47, %v3812_v49  ;;  %v3818_v62 = vsel %vm3817_vm5, %v3808_v48, %v3810_v47 }
 0x198   : > { %2773 = vmatprep.mubr.bf16.mxu1 %v6125_v8 }
 0x19a   : > { %v3814_v53 = vpop.permute.xlu1 %3813  ;;  %v3816_v54 = vpop.permute.xlu0 %3815 }
 0x19b   : > { %5291 = vmatmul.mubr.msk.bf16.vlgmr.msra.gmra.mrb[0].mxu0 %vm469_vm1, %v6010_v58  ;;  %v3821_v56 = vsel %vm3817_vm5, %v3814_v53, %v3816_v54  ;;  %v3820_v9 = vsel %vm3817_vm5, %v3812_v49, %v3814_v53  ;;  %v6031_v49 = vld [vmem:[%s7072_s16 + $0x188] sm:$0xff]   ;;  %v6033_v53 = vld [vmem:[%s7072_s16 + $0x198] sm:$0xff]   ;;  %v6034_v54 = vld [vmem:[%s7072_s16 + $0x1a0] sm:$0xff]  }
 0x19c   : > { %2851 = vmatpush1.bf16.msra.mxu0 %v2836_v59  ;;  %2730 = vmatprep.mubr.bf16.mxu0 %v6125_v8 }
 0x19d   : > { %3012 = vmatprep.subr.bf16.mxu0 %v2999_v60 }
 0x19e   : > { %v3974_v59 = vpop.permute.xlu0 %3973 }
 0x19f   : > { %5293 = vmatmul.mubr.msk.bf16.vlgmr.msra.gmra.mrb[0].mxu1 %vm469_vm1, %v6010_v58  ;;  %v3972_v58 = vpop.permute.xlu1 %3971 }
 0x1a0   : > { %2904 = vmatpush1.bf16.msra.mxu1 %v2838_v63  ;;  %2783 = vmatprep.mubr.bf16.mxu1 %v6125_v8  ;;  %v3981_v63 = vsel %vm3979_vm6, %v3972_v58, %v3974_v59 }
 0x1a1   : > { %3065 = vmatprep.subr.bf16.mxu1 %v3001_v1 }
 0x1a2   : > { %v3976_v1 = vpop.permute.xlu0 %3975 }
 0x1a3   : > { %5292 = vmatmul.mubr.msk.bf16.gmra.mrb[4].mxu0 %vm469_vm1, %v6011_v2  ;;  %v3970_v60 = vpop.permute.xlu1 %3969  ;;  %v3982_v16 = vsel %vm3979_vm6, %v3974_v59, %v3976_v1  ;;  %v4820_v59 = vld [vmem:[%s354_s25] sm:$0xf] }
 0x1a4   : > { %2882 = vmatprep.mubr.bf16.mxu0 %v6125_v8  ;;  %v3980_v14 = vsel %vm3979_vm6, %v3970_v60, %v3972_v58 }
 0x1a7   : > { %5294 = vmatmul.mubr.msk.bf16.gmra.mrb[4].mxu1 %vm469_vm1, %v6011_v2  ;;  %v3978_v2 = vpop.permute.xlu1 %3977 }
 0x1a8   : > { %2935 = vmatprep.mubr.bf16.mxu1 %v6125_v8  ;;  %v3983_v3 = vsel %vm3979_vm6, %v3976_v1, %v3978_v2 }
 0x1ab   : > { %5301 = vmatmul.mubr.msk.bf16.vlgmr.msra.gmra.mrb[0].mxu0 %vm469_vm1, %v6012_v5 }
 0x1ac   : > { %3013 = vmatpush1.bf16.msra.mxu0 %v2998_v6  ;;  %2892 = vmatprep.mubr.bf16.mxu0 %v6125_v8 }
 0x1ad   : > { %3174 = vmatprep.subr.bf16.mxu0 %v3161_v7  ;;  %v4136_v7 = vpop.permute.xlu1 %4135 }
 0x1af   : > { %5303 = vmatmul.mubr.msk.bf16.vlgmr.msra.gmra.mrb[0].mxu1 %vm469_vm1, %v6012_v5  ;;  %v4134_v5 = vpop.permute.xlu0 %4133 }
 0x1b0   : > { %3066 = vmatpush1.bf16.msra.mxu1 %v3000_v15  ;;  %2945 = vmatprep.mubr.bf16.mxu1 %v6125_v8  ;;  %v4143_v15 = vsel %vm4141_vm7, %v4134_v5, %v4136_v7 }
 0x1b1   : > { %3227 = vmatprep.subr.bf16.mxu1 %v3163_v11  ;;  %v4138_v11 = vpop.permute.xlu1 %4137 }
 0x1b2   : > { %v4144_v25 = vsel %vm4141_vm7, %v4136_v7, %v4138_v11 }
 0x1b3   : > { %5302 = vmatmul.mubr.msk.bf16.gmra.mrb[4].mxu0 %vm469_vm1, %v6013_v12  ;;  %v4132_v6 = vpop.permute.xlu0 %4131 }
 0x1b4   : > { %3044 = vmatprep.mubr.bf16.mxu0 %v6125_v8  ;;  %v4142_v21 = vsel %vm4141_vm7, %v4132_v6, %v4134_v5 }
 0x1b7   : > { %5304 = vmatmul.mubr.msk.bf16.gmra.mrb[4].mxu1 %vm469_vm1, %v6013_v12  ;;  %v4140_v12 = vpop.permute.xlu0 %4139 }
 0x1b8   : > { %3097 = vmatprep.mubr.bf16.mxu1 %v6125_v8  ;;  %v4145_v17 = vsel %vm4141_vm7, %v4138_v11, %v4140_v12 }
 0x1bb   : > { %5311 = vmatmul.mubr.msk.bf16.vlgmr.msra.gmra.mrb[0].mxu0 %vm469_vm1, %v6014_v18 }
 0x1bc   : > { %3175 = vmatpush1.bf16.msra.mxu0 %v3160_v19  ;;  %3054 = vmatprep.mubr.bf16.mxu0 %v6125_v8  ;;  %v4298_v19 = vpop.permute.xlu0 %4297 }
 0x1bd   : > { %3346 = vmatprep.subr.bf16.mxu0 %v3333_v0 }
 0x1bf   : > { %5313 = vmatmul.mubr.msk.bf16.vlgmr.msra.gmra.mrb[0].mxu1 %vm469_vm1, %v6014_v18  ;;  %v4296_v18 = vpop.permute.xlu1 %4295 }
 0x1c0   : > { %3228 = vmatpush1.bf16.msra.mxu1 %v3162_v22  ;;  %3107 = vmatprep.mubr.bf16.mxu1 %v6125_v8  ;;  %v4305_v22 = vsel %vm4303_vm8, %v4296_v18, %v4298_v19 }
 0x1c1   : > { %3399 = vmatprep.subr.bf16.mxu1 %v3335_v23  ;;  %v4300_v23 = vpop.permute.xlu0 %4299 }
 0x1c2   : > { %v4306_v36 = vsel %vm4303_vm8, %v4298_v19, %v4300_v23 }
 0x1c3   : > { %5312 = vmatmul.mubr.msk.bf16.gmra.mrb[4].mxu0 %vm469_vm1, %v6015_v24  ;;  %v4294_v0 = vpop.permute.xlu1 %4293 }
 0x1c4   : > { %3206 = vmatprep.mubr.bf16.mxu0 %v6125_v8  ;;  %v4304_v32 = vsel %vm4303_vm8, %v4294_v0, %v4296_v18 }
 0x1c7   : > { %5314 = vmatmul.mubr.msk.bf16.gmra.mrb[4].mxu1 %vm469_vm1, %v6015_v24  ;;  %v4302_v24 = vpop.permute.xlu1 %4301 }
 0x1c8   : > { %3259 = vmatprep.mubr.bf16.mxu1 %v6125_v8  ;;  %v4307_v26 = vsel %vm4303_vm8, %v4300_v23, %v4302_v24 }
 0x1cb   : > { %5321 = vmatmul.mubr.msk.bf16.vlgmr.msra.gmra.mrb[0].mxu0 %vm469_vm1, %v6016_v28 }
 0x1cc   : > { %3347 = vmatpush1.bf16.msra.mxu0 %v3332_v29  ;;  %3216 = vmatprep.mubr.bf16.mxu0 %v6125_v8 }
 0x1cd   : > { %3508 = vmatprep.subr.bf16.mxu0 %v3495_v30  ;;  %v4460_v30 = vpop.permute.xlu1 %4459 }
 0x1cf   : > { %5323 = vmatmul.mubr.msk.bf16.vlgmr.msra.gmra.mrb[0].mxu1 %vm469_vm1, %v6016_v28  ;;  %v4458_v28 = vpop.permute.xlu0 %4457 }
 0x1d0   : > { %3400 = vmatpush1.bf16.msra.mxu1 %v3334_v33  ;;  %3269 = vmatprep.mubr.bf16.mxu1 %v6125_v8  ;;  %v4467_v33 = vsel %vm4465_vm9, %v4458_v28, %v4460_v30 }
 0x1d1   : > { %3561 = vmatprep.subr.bf16.mxu1 %v3497_v34  ;;  %v4462_v34 = vpop.permute.xlu1 %4461 }
 0x1d2   : > { %v4468_v47 = vsel %vm4465_vm9, %v4460_v30, %v4462_v34 }
 0x1d3   : > { %5322 = vmatmul.mubr.msk.bf16.gmra.mrb[4].mxu0 %vm469_vm1, %v6017_v35  ;;  %v4456_v29 = vpop.permute.xlu0 %4455 }
 0x1d4   : > { %3378 = vmatprep.mubr.bf16.mxu0 %v6125_v8  ;;  %v4466_v43 = vsel %vm4465_vm9, %v4456_v29, %v4458_v28 }
 0x1d7   : > { %5324 = vmatmul.mubr.msk.bf16.gmra.mrb[4].mxu1 %vm469_vm1, %v6017_v35  ;;  %v4464_v35 = vpop.permute.xlu0 %4463 }
 0x1d8   : > { %3431 = vmatprep.mubr.bf16.mxu1 %v6125_v8  ;;  %v4469_v37 = vsel %vm4465_vm9, %v4462_v34, %v4464_v35 }
 0x1db   : > { %5331 = vmatmul.mubr.msk.bf16.vlgmr.msra.gmra.mrb[0].mxu0 %vm469_vm1, %v6018_v39 }
 0x1dc   : > { %3509 = vmatpush1.bf16.msra.mxu0 %v3494_v40  ;;  %3388 = vmatprep.mubr.bf16.mxu0 %v6125_v8  ;;  %v4622_v40 = vpop.permute.xlu0 %4621 }
 0x1dd   : > { %3670 = vmatprep.subr.bf16.mxu0 %v3657_v41 }
 0x1df   : > { %5333 = vmatmul.mubr.msk.bf16.vlgmr.msra.gmra.mrb[0].mxu1 %vm469_vm1, %v6018_v39  ;;  %v4620_v39 = vpop.permute.xlu1 %4619 }
 0x1e0   : > { %3562 = vmatpush1.bf16.msra.mxu1 %v3496_v44  ;;  %3441 = vmatprep.mubr.bf16.mxu1 %v6125_v8  ;;  %v4629_v44 = vsel %vm4627_vm10, %v4620_v39, %v4622_v40 }
 0x1e1   : > { %3723 = vmatprep.subr.bf16.mxu1 %v3659_v45  ;;  %v4624_v45 = vpop.permute.xlu0 %4623 }
 0x1e3   : > { %5332 = vmatmul.mubr.msk.bf16.gmra.mrb[4].mxu0 %vm469_vm1, %v6019_v46  ;;  %v4618_v41 = vpop.permute.xlu1 %4617 }
 0x1e4   : > { %3540 = vmatprep.mubr.bf16.mxu0 %v6125_v8 }
 0x1e7   : > { %5334 = vmatmul.mubr.msk.bf16.gmra.mrb[4].mxu1 %vm469_vm1, %v6019_v46  ;;  %v4626_v46 = vpop.permute.xlu1 %4625 }
 0x1e8   : > { %3593 = vmatprep.mubr.bf16.mxu1 %v6125_v8  ;;  %v4631_v48 = vsel %vm4627_vm10, %v4624_v45, %v4626_v46 }
 0x1eb   : > { %5341 = vmatmul.mubr.msk.bf16.vlgmr.msra.gmra.mrb[0].mxu0 %vm469_vm1, %v6020_v50 }
 0x1ec   : > { %3671 = vmatpush1.bf16.msra.mxu0 %v3656_v51  ;;  %3550 = vmatprep.mubr.bf16.mxu0 %v6125_v8  ;;  %v4628_v51 = vsel %vm4627_vm10, %v4618_v41, %v4620_v39 }
 0x1ed   : > { %3832 = vmatprep.subr.bf16.mxu0 %v3819_v52  ;;  %v4630_v52 = vsel %vm4627_vm10, %v4622_v40, %v4624_v45 }
 0x1ef   : > { %5343 = vmatmul.mubr.msk.bf16.vlgmr.msra.gmra.mrb[0].mxu1 %vm469_vm1, %v6020_v50  ;;  %v6032_v50 = vld [vmem:[%s7072_s16 + $0x190] sm:$0xff]  }
 0x1f0   : > { %3724 = vmatpush1.bf16.msra.mxu1 %v3658_v55  ;;  %3603 = vmatprep.mubr.bf16.mxu1 %v6125_v8  ;;  %v6035_v55 = vld [vmem:[%s7072_s16 + $0x1a8] sm:$0xff]  }
 0x1f1   : > { %3885 = vmatprep.subr.bf16.mxu1 %v3821_v56  ;;  %v4822_v56 = vlaneseq }
 0x1f3   : > { %5342 = vmatmul.mubr.msk.bf16.gmra.mrb[4].mxu0 %vm469_vm1, %v6021_v57 }
 0x1f4   : > { %3702 = vmatprep.mubr.bf16.mxu0 %v6125_v8 }
 0x1f7   : > { %5344 = vmatmul.mubr.msk.bf16.gmra.mrb[4].mxu1 %vm469_vm1, %v6021_v57  ;;  %v4823_v57 = vshrl.u32 %v4822_v56, 7 }
 0x1f8   : > { %3755 = vmatprep.mubr.bf16.mxu1 %v6125_v8 }
 0x1f9   : > { %v4824_v58 = vsub.s32 0, %v4823_v57  ;;  %v4828_v60 = vsub.s32 1, %v4823_v57 }
 0x1fb   : > { %5351 = vmatmul.mubr.msk.bf16.vlgmr.msra.gmra.mrb[0].mxu0 %vm469_vm1, %v6022_v61 }
 0x1fc   : > { %3833 = vmatpush1.bf16.msra.mxu0 %v3818_v62  ;;  %3712 = vmatprep.mubr.bf16.mxu0 %v6125_v8  ;;  %v4832_v62 = vsub.s32 2, %v4823_v57 }
 0x1fd   : > { %3994 = vmatprep.subr.bf16.mxu0 %v3981_v63  ;;  %v4836_v63 = vsub.s32 3, %v4823_v57 }
 0x1ff   : > { %5353 = vmatmul.mubr.msk.bf16.vlgmr.msra.gmra.mrb[0].mxu1 %vm469_vm1, %v6022_v61  ;;  %v4825_v61 = vrot.slane %v4820_v59, %v4824_v58 }
 0x200   : > { %3886 = vmatpush1.bf16.msra.mxu1 %v3820_v9  ;;  %3765 = vmatprep.mubr.bf16.mxu1 %v6125_v8 }
 0x201   : > { %4047 = vmatprep.subr.bf16.mxu1 %v3983_v3  ;;  %v6963_v3 = vrot.slane %v4820_v59, %v4832_v62 }
 0x203   : > { %5352 = vmatmul.mubr.msk.bf16.gmra.mrb[4].mxu0 %vm469_vm1, %v6023_v4 }
 0x204   : > { %3864 = vmatprep.mubr.bf16.mxu0 %v6125_v8 }
 0x207   : > { %5354 = vmatmul.mubr.msk.bf16.gmra.mrb[4].mxu1 %vm469_vm1, %v6023_v4 }
 0x208   : > { %3917 = vmatprep.mubr.bf16.mxu1 %v6125_v8 }
 0x20b   : > { %5361 = vmatmul.mubr.msk.bf16.vlgmr.msra.gmra.mrb[0].mxu0 %vm469_vm1, %v6024_v10 }
 0x20c   : > { %3995 = vmatpush1.bf16.msra.mxu0 %v3980_v14  ;;  %3874 = vmatprep.mubr.bf16.mxu0 %v6125_v8 }
 0x20d   : > { %4156 = vmatprep.subr.bf16.mxu0 %v4143_v15  ;;  %v6965_v15 = vrot.slane %v4820_v59, %v4836_v63 }
 0x20f   : > { %5363 = vmatmul.mubr.msk.bf16.vlgmr.msra.gmra.mrb[0].mxu1 %vm469_vm1, %v6024_v10 }
 0x210   : > { %4048 = vmatpush1.bf16.msra.mxu1 %v3982_v16  ;;  %3927 = vmatprep.mubr.bf16.mxu1 %v6125_v8 }
 0x211   : > { %4209 = vmatprep.subr.bf16.mxu1 %v4145_v17 }
 0x213   : > { %5362 = vmatmul.mubr.msk.bf16.gmra.mrb[4].mxu0 %vm469_vm1, %v6025_v13 }
 0x214   : > { %4026 = vmatprep.mubr.bf16.mxu0 %v6125_v8 }
 0x217   : > { %5364 = vmatmul.mubr.msk.bf16.gmra.mrb[4].mxu1 %vm469_vm1, %v6025_v13 }
 0x218   : > { %4079 = vmatprep.mubr.bf16.mxu1 %v6125_v8 }
 0x21b   : > { %5371 = vmatmul.mubr.msk.bf16.vlgmr.msra.gmra.mrb[0].mxu0 %vm469_vm1, %v6026_v20 }
 0x21c   : > { %4157 = vmatpush1.bf16.msra.mxu0 %v4142_v21  ;;  %4036 = vmatprep.mubr.bf16.mxu0 %v6125_v8 }
 0x21d   : > { %4318 = vmatprep.subr.bf16.mxu0 %v4305_v22 }
 0x21f   : > { %5373 = vmatmul.mubr.msk.bf16.vlgmr.msra.gmra.mrb[0].mxu1 %vm469_vm1, %v6026_v20 }
 0x220   : > { %4210 = vmatpush1.bf16.msra.mxu1 %v4144_v25  ;;  %4089 = vmatprep.mubr.bf16.mxu1 %v6125_v8 }
 0x221   : > { %4371 = vmatprep.subr.bf16.mxu1 %v4307_v26 }
 0x223   : > { %5372 = vmatmul.mubr.msk.bf16.gmra.mrb[4].mxu0 %vm469_vm1, %v6027_v27 }
 0x224   : > { %4188 = vmatprep.mubr.bf16.mxu0 %v6125_v8 }
 0x227   : > { %5374 = vmatmul.mubr.msk.bf16.gmra.mrb[4].mxu1 %vm469_vm1, %v6027_v27 }
 0x228   : > { %4241 = vmatprep.mubr.bf16.mxu1 %v6125_v8 }
 0x22b   : > { %5381 = vmatmul.mubr.msk.bf16.vlgmr.msra.gmra.mrb[0].mxu0 %vm469_vm1, %v6028_v31 }
 0x22c   : > { %4319 = vmatpush1.bf16.msra.mxu0 %v4304_v32  ;;  %4198 = vmatprep.mubr.bf16.mxu0 %v6125_v8 }
 0x22d   : > { %4480 = vmatprep.subr.bf16.mxu0 %v4467_v33 }
 0x22f   : > { %5383 = vmatmul.mubr.msk.bf16.vlgmr.msra.gmra.mrb[0].mxu1 %vm469_vm1, %v6028_v31 }
 0x230   : > { %4372 = vmatpush1.bf16.msra.mxu1 %v4306_v36  ;;  %4251 = vmatprep.mubr.bf16.mxu1 %v6125_v8 }
 0x231   : > { %4533 = vmatprep.subr.bf16.mxu1 %v4469_v37 }
 0x233   : > { %5382 = vmatmul.mubr.msk.bf16.gmra.mrb[4].mxu0 %vm469_vm1, %v6029_v38 }
 0x234   : > { %4350 = vmatprep.mubr.bf16.mxu0 %v6125_v8 }
 0x237   : > { %5384 = vmatmul.mubr.msk.bf16.gmra.mrb[4].mxu1 %vm469_vm1, %v6029_v38 }
 0x238   : > { %4403 = vmatprep.mubr.bf16.mxu1 %v6125_v8 }
 0x23b   : > { %5391 = vmatmul.mubr.msk.bf16.vlgmr.msra.gmra.mrb[0].mxu0 %vm469_vm1, %v6030_v42 }
 0x23c   : > { %4481 = vmatpush1.bf16.msra.mxu0 %v4466_v43  ;;  %4360 = vmatprep.mubr.bf16.mxu0 %v6125_v8 }
 0x23d   : > { %4642 = vmatprep.subr.bf16.mxu0 %v4629_v44 }
 0x23f   : > { %5393 = vmatmul.mubr.msk.bf16.vlgmr.msra.gmra.mrb[0].mxu1 %vm469_vm1, %v6030_v42 }
 0x240   : > { %4534 = vmatpush1.bf16.msra.mxu1 %v4468_v47  ;;  %4413 = vmatprep.mubr.bf16.mxu1 %v6125_v8 }
 0x241   : > { %4695 = vmatprep.subr.bf16.mxu1 %v4631_v48 }
 0x243   : > { %5392 = vmatmul.mubr.msk.bf16.gmra.mrb[4].mxu0 %vm469_vm1, %v6031_v49 }
 0x244   : > { %4512 = vmatprep.mubr.bf16.mxu0 %v6125_v8 }
 0x247   : > { %5394 = vmatmul.mubr.msk.bf16.gmra.mrb[4].mxu1 %vm469_vm1, %v6031_v49 }
 0x248   : > { %4565 = vmatprep.mubr.bf16.mxu1 %v6125_v8 }
 0x24b   : > { %5401 = vmatmul.mubr.msk.bf16.vlgmr.msra.gmra.mrb[0].mxu0 %vm469_vm1, %v6032_v50 }
 0x24c   : > { %4643 = vmatpush1.bf16.msra.mxu0 %v4628_v51  ;;  %4522 = vmatprep.mubr.bf16.mxu0 %v6125_v8 }
 0x24f   : > { %5403 = vmatmul.mubr.msk.bf16.vlgmr.msra.gmra.mrb[0].mxu1 %vm469_vm1, %v6032_v50 }
 0x250   : > { %4696 = vmatpush1.bf16.msra.mxu1 %v4630_v52  ;;  %4575 = vmatprep.mubr.bf16.mxu1 %v6125_v8 }
 0x253   : > { %5402 = vmatmul.mubr.msk.bf16.gmra.mrb[4].mxu0 %vm469_vm1, %v6033_v53 }
 0x254   : > { %4674 = vmatprep.mubr.bf16.mxu0 %v6125_v8 }
 0x257   : > { %5404 = vmatmul.mubr.msk.bf16.gmra.mrb[4].mxu1 %vm469_vm1, %v6033_v53 }
 0x258   : > { %4727 = vmatprep.mubr.bf16.mxu1 %v6125_v8 }
 0x25b   : > { %5411 = vmatmul.mubr.msk.bf16.vlgmr.msra.gmra.mrb[0].mxu0 %vm469_vm1, %v6034_v54 }
 0x25c   : > { %4684 = vmatprep.mubr.bf16.mxu0 %v6125_v8 }
 0x25f   : > { %5413 = vmatmul.mubr.msk.bf16.vlgmr.msra.gmra.mrb[0].mxu1 %vm469_vm1, %v6034_v54 }
 0x260   : > { %4737 = vmatprep.mubr.bf16.mxu1 %v6125_v8  ;;  %v4829_v8 = vrot.slane %v4820_v59, %v4828_v60 }
 0x263   : > { %5412 = vmatmul.mubr.msk.bf16.gmra.mrb[4].mxu0 %vm469_vm1, %v6035_v55 }
 0x267   : > { %5414 = vmatmul.mubr.msk.bf16.gmra.mrb[4].mxu1 %vm469_vm1, %v6035_v55  ;;  %vm4914_vm1 = vcmask 7168  }
 0x32e   : > { %v4676_v1 = vpop.f32.mrb[0].mxu0 }
 0x32f   : > { %v4842_v2 = vmul.f32 %v4825_v61, %v4676_v1  ;;  %v4678_v9 = vpop.f32.mrb[1].mxu0 }
 0x330   : > { %v5432_v4 = vpack.c.bf16 %v4678_v9, %v4676_v1  ;;  %v4843_v5 = vmul.f32 %v4829_v8, %v4678_v9  ;;  %v4680_v6 = vpop.f32.mrb[2].mxu0 }
 0x331   : > { %v4878_v7 = vmul.f32 %v4842_v2, %v4676_v1  ;;  %v4846_v10 = vmul.f32 %v4825_v61, %v4680_v6  ;;  %v4682_v14 = vpop.f32.mrb[3].mxu0 }
 0x332   : > { %4812 = vst [vmem:[%s6967_s11] sm:$0xff] %v5432_v4  ;;  %v4858_v11 = vadd.f32 %v4843_v5, %v4842_v2  ;;  %v4879_v12 = vmul.f32 %v4843_v5, %v4678_v9  ;;  %v5434_v16 = vpack.c.bf16 %v4682_v14, %v4680_v6  ;;  %v4847_v17 = vmul.f32 %v4829_v8, %v4682_v14  ;;  %v4729_v13 = vpop.f32.mrb[0].mxu1 }
 0x333   : > { %v4882_v18 = vmul.f32 %v4846_v10, %v4680_v6  ;;  %v4844_v19 = vmul.f32 %v6963_v3, %v4729_v13  ;;  %v4731_v0 = vpop.f32.mrb[1].mxu1 }
 0x334   : > { %v4894_v20 = vadd.f32 %v4879_v12, %v4878_v7  ;;  %4814 = vst [vmem:[%s6967_s11 + $0x10] sm:$0xff] %v5434_v16  ;;  %v4863_v21 = vadd.f32 %v4847_v17, %v4846_v10  ;;  %v4883_v22 = vmul.f32 %v4847_v17, %v4682_v14  ;;  %v5433_v23 = vpack.c.bf16 %v4731_v0, %v4729_v13  ;;  %v4733_v24 = vpop.f32.mrb[2].mxu1 }
 0x335   : > { %v4859_v25 = vadd.f32 %v4858_v11, %v4844_v19  ;;  %v4880_v26 = vmul.f32 %v4844_v19, %v4729_v13  ;;  %v4845_v27 = vmul.f32 %v6965_v15, %v4731_v0  ;;  %v4848_v28 = vmul.f32 %v6963_v3, %v4733_v24  ;;  %v4735_v29 = vpop.f32.mrb[3].mxu1 }
 0x336   : > { %v4899_v30 = vadd.f32 %v4883_v22, %v4882_v18  ;;  %4813 = vst [vmem:[%s6967_s11 + $0x8] sm:$0xff] %v5433_v23  ;;  %v5435_v31 = vpack.c.bf16 %v4735_v29, %v4733_v24  ;;  %v4849_v32 = vmul.f32 %v6965_v15, %v4735_v29  ;;  %v4686_v33 = vpop.f32.mrb[4].mxu0 }
 0x337   : > { %v4895_v34 = vadd.f32 %v4894_v20, %v4880_v26  ;;  %v4881_v35 = vmul.f32 %v4845_v27, %v4731_v0  ;;  %v4864_v36 = vadd.f32 %v4863_v21, %v4848_v28  ;;  %v4884_v37 = vmul.f32 %v4848_v28, %v4733_v24  ;;  %v4688_v38 = vpop.f32.mrb[5].mxu0 }
 0x338   : > { %4815 = vst [vmem:[%s6967_s11 + $0x18] sm:$0xff] %v5435_v31  ;;  %v4885_v39 = vmul.f32 %v4849_v32, %v4735_v29  ;;  %v4850_v40 = vmul.f32 %v4825_v61, %v4686_v33  ;;  %v5436_v41 = vpack.c.bf16 %v4688_v38, %v4686_v33  ;;  %v4851_v42 = vmul.f32 %v4829_v8, %v4688_v38  ;;  %v4690_v43 = vpop.f32.mrb[6].mxu0 }
 0x339   : > { %v4900_v44 = vadd.f32 %v4899_v30, %v4884_v37  ;;  %v4854_v45 = vmul.f32 %v4825_v61, %v4690_v43  ;;  %v4692_v46 = vpop.f32.mrb[7].mxu0  ;;  %v4860_v47 = vadd.f32 %v4859_v25, %v4845_v27  ;;  %v4865_v48 = vadd.f32 %v4864_v36, %v4849_v32 }
 0x33a   : > { %v4886_v49 = vmul.f32 %v4850_v40, %v4686_v33  ;;  %4816 = vst [vmem:[%s6967_s11 + $0x20] sm:$0xff] %v5436_v41  ;;  %v4868_v50 = vadd.f32 %v4851_v42, %v4850_v40  ;;  %v4887_v51 = vmul.f32 %v4851_v42, %v4688_v38  ;;  %v5438_v52 = vpack.c.bf16 %v4692_v46, %v4690_v43  ;;  %v4739_v53 = vpop.f32.mrb[4].mxu1 }
 0x33b   : > { %v4890_v54 = vmul.f32 %v4854_v45, %v4690_v43  ;;  %v4855_v55 = vmul.f32 %v4829_v8, %v4692_v46  ;;  %4861 = vadd.xlane.f32.xlu0 %v4860_v47  ;;  %v4852_v56 = vmul.f32 %v6963_v3, %v4739_v53  ;;  %4866 = vadd.xlane.f32.xlu1 %v4865_v48  ;;  %v4741_v57 = vpop.f32.mrb[5].mxu1  ;;  %v6152_v31 = vmov (!%p5423_p5), 0.0  }
 0x33c   : > { %v4904_v58 = vadd.f32 %v4887_v51, %v4886_v49  ;;  %4818 = vst [vmem:[%s6967_s11 + $0x30] sm:$0xff] %v5438_v52  ;;  %v5437_v59 = vpack.c.bf16 %v4741_v57, %v4739_v53  ;;  %v4853_v60 = vmul.f32 %v6965_v15, %v4741_v57  ;;  %v4743_v61 = vpop.f32.mrb[6].mxu1  ;;  %v4901_v62 = vadd.f32 %v4900_v44, %v4885_v39 }
 0x33d   : > { %v4873_v63 = vadd.f32 %v4855_v55, %v4854_v45  ;;  %v4891_v1 = vmul.f32 %v4855_v55, %v4692_v46  ;;  %v4869_v2 = vadd.f32 %v4868_v50, %v4852_v56  ;;  %v4888_v9 = vmul.f32 %v4852_v56, %v4739_v53  ;;  %v4745_v4 = vpop.f32.mrb[7].mxu1  ;;  %4924 = vst.msk [vmem:[%s6342_s12] sm:$0xff] (!%p5423_p5), %vm4923_vm11, %v6152_v31 }
 0x33e   : > { %4817 = vst [vmem:[%s6967_s11 + $0x28] sm:$0xff] %v5437_v59  ;;  %v4889_v8 = vmul.f32 %v4853_v60, %v4741_v57  ;;  %v4856_v5 = vmul.f32 %v6963_v3, %v4743_v61  ;;  %v5439_v6 = vpack.c.bf16 %v4745_v4, %v4743_v61  ;;  %v4857_v7 = vmul.f32 %v6965_v15, %v4745_v4 }
 0x33f   : > { %v4909_v10 = vadd.f32 %v4891_v1, %v4890_v54  ;;  %v4905_v14 = vadd.f32 %v4904_v58, %v4888_v9  ;;  %4902 = vadd.xlane.f32.xlu0 %v4901_v62  ;;  %v4896_v11 = vadd.f32 %v4895_v34, %v4881_v35  ;;  %v4870_v12 = vadd.f32 %v4869_v2, %v4853_v60 }
 0x340   : > { %v4874_v16 = vadd.f32 %v4873_v63, %v4856_v5  ;;  %v4892_v17 = vmul.f32 %v4856_v5, %v4743_v61  ;;  %4819 = vst [vmem:[%s6967_s11 + $0x38] sm:$0xff] %v5439_v6  ;;  %v4893_v13 = vmul.f32 %v4857_v7, %v4745_v4  ;;  %4925 = vst.msk [vmem:[%s6342_s12 + $0x8] sm:$0xff] (!%p5423_p5), %vm4923_vm11, %v6152_v31 }
 0x341   : > { %4897 = vadd.xlane.f32.xlu1 %v4896_v11  ;;  %v4906_v18 = vadd.f32 %v4905_v14, %v4889_v8  ;;  %4926 = vst.msk [vmem:[%s6342_s12 + $0x10] sm:$0xff] (!%p5423_p5), %vm4923_vm11, %v6152_v31  ;;  %4927 = vst.msk [vmem:[%s6342_s12 + $0x18] sm:$0xff] (!%p5423_p5), %vm4923_vm11, %v6152_v31 }
 0x342   : > { %v4910_v19 = vadd.f32 %v4909_v10, %v4892_v17  ;;  %v4875_v0 = vadd.f32 %v4874_v16, %v4857_v7 }
 0x343   : > { %4871 = vadd.xlane.f32.xlu0 %v4870_v12 }
 0x344   : > { %v4911_v20 = vadd.f32 %v4910_v19, %v4893_v13 }
 0x345   : > { %4907 = vadd.xlane.f32.xlu1 %v4906_v18 }
 0x347   : > { %4876 = vadd.xlane.f32.xlu0 %v4875_v0 }
 0x34b   : > { %4912 = vadd.xlane.f32.xlu0 %v4911_v20 }
 0x3c8   : > { %v4862_v3 = vpop.xlane.xlu0 %4861  ;;  %v4867_v15 = vpop.xlane.xlu1 %4866 }
 0x3cc   : > { %v4903_v21 = vpop.xlane.xlu0 %4902 }
 0x3cd   : > { %v4916_v22 = vsel %vm4914_vm1, %v4867_v15, %v4903_v21 }
 0x3ce   : > { %v4898_v23 = vpop.xlane.xlu1 %4897 }
 0x3cf   : > { %v4915_v24 = vsel %vm4914_vm1, %v4862_v3, %v4898_v23 }
 0x3d0   : > { %v4872_v25 = vpop.xlane.xlu0 %4871 }
 0x3d2   : > { %v4908_v26 = vpop.xlane.xlu1 %4907 }
 0x3d3   : > { %v4917_v27 = vsel %vm4914_vm1, %v4872_v25, %v4908_v26  ;;  %4922 = sbr.rel (%p5423_p5) target bundleno = 986 (0x3da), region = 86 }
 0x3d4   : > { %v4877_v28 = vpop.xlane.xlu0 %4876 }
 0x3d8   : > { %v4913_v29 = vpop.xlane.xlu0 %4912 }
 0x3d9   : > { %v4918_v30 = vsel %vm4914_vm1, %v4877_v28, %v4913_v29 }
 0x3da PF: > { %v4928_v32 = vld [vmem:[%s6342_s12] sm:$0xff]  ;;  %vm4936_vm12 = vcmask 15360   ;;  %v4929_v33 = vld [vmem:[%s6342_s12 + $0x8] sm:$0xff]  ;;  %v4930_v34 = vld [vmem:[%s6342_s12 + $0x10] sm:$0xff]  ;;  %4952 = sbr.rel (!%p6287_p12) target bundleno = 1000 (0x3e8), region = 90  ;;  %s7075_s18 = sld [smem:[#allocation8_spill]] (%p6287_p12) }
 0x3db   : > { %v4932_v35 = vadd.f32 %v4928_v32, %v4915_v24  ;;  %v4933_v36 = vadd.f32 %v4929_v33, %v4916_v22  ;;  %v4934_v37 = vadd.f32 %v4930_v34, %v4917_v27  ;;  %v4931_v38 = vld [vmem:[%s6342_s12 + $0x18] sm:$0xff]  ;;  %s7076_s29 = sld [smem:[#allocation7_spill]] (%p6287_p12)  ;;  %v4970_v40 = vld [vmem:[%s6967_s11] sm:$0xff] (%p6287_p12)  ;;  %v4972_v41 = vld [vmem:[%s6967_s11 + $0x8] sm:$0xff] (%p6287_p12)  ;;  %s7077_s15 = sld [smem:[#allocation12_spill]] (%p6287_p12) }
 0x3dc   : > { %v4935_v39 = vadd.f32 %v4931_v38, %v4918_v30  ;;  %v4974_v42 = vld [vmem:[%s6967_s11 + $0x10] sm:$0xff] (%p6287_p12)  ;;  %v4976_v43 = vld [vmem:[%s6967_s11 + $0x18] sm:$0xff] (%p6287_p12)  ;;  %v4978_v44 = vld [vmem:[%s6967_s11 + $0x20] sm:$0xff] (%p6287_p12) }
 0x3dd   : > { %4937 = vst.msk [vmem:[%s6342_s12] sm:$0xff] %vm4936_vm12, %v4932_v35  ;;  %4938 = vst.msk [vmem:[%s6342_s12 + $0x8] sm:$0xff] %vm4936_vm12, %v4933_v36  ;;  %v4980_v45 = vld [vmem:[%s6967_s11 + $0x28] sm:$0xff] (%p6287_p12)  ;;  %v4982_v46 = vld [vmem:[%s6967_s11 + $0x30] sm:$0xff] (%p6287_p12) }
 0x3de   : > { %4939 = vst.msk [vmem:[%s6342_s12 + $0x10] sm:$0xff] %vm4936_vm12, %v4934_v37  ;;  %4940 = vst.msk [vmem:[%s6342_s12 + $0x18] sm:$0xff] %vm4936_vm12, %v4935_v39  ;;  %v4984_v47 = vld [vmem:[%s6967_s11 + $0x38] sm:$0xff] (%p6287_p12) }
 0x3e0   : > { %s5425_s17 = sshll.u32 (%p6287_p12), %s7075_s18, 1 }
 0x3e1   : > { %s4954_s7 = sadd.s32 %s7076_s29, %s5425_s17 }
 0x3e2   : > { %s5440_s13 = sshll.u32 %s4954_s7, 4 }
 0x3e3   : > { %s4957_s3 = scalar_lea.vmem %s7077_s15, %s5440_s13 }
 0x3e4   : > { %4971 = vst [vmem:[%s4957_s3] sm:$0xff] %v4970_v40  ;;  %4973 = vst [vmem:[%s4957_s3 + $0x8] sm:$0xff] %v4972_v41 }
 0x3e5   : > { %4975 = vst [vmem:[%s4957_s3 + $0x40] sm:$0xff] %v4974_v42  ;;  %4977 = vst [vmem:[%s4957_s3 + $0x48] sm:$0xff] %v4976_v43 }
 0x3e6   : > { %4979 = vst [vmem:[%s4957_s3 + $0x80] sm:$0xff] %v4978_v44  ;;  %4981 = vst [vmem:[%s4957_s3 + $0x88] sm:$0xff] %v4980_v45 }
 0x3e7   : > { %4983 = vst [vmem:[%s4957_s3 + $0xc0] sm:$0xff] %v4982_v46  ;;  %4985 = vst [vmem:[%s4957_s3 + $0xc8] sm:$0xff] %v4984_v47 }
 0x3e8 PF: > { %s16_s28 = sadd.s32 1, %s6123_s28   ;;  %s7078_s25 = sld [smem:[#allocation9_spill]] }
 0x3e9   : > { %p13_p6 = scmp.ge.s32.totalorder %s16_s28, 6   ;;  %s7079_s18 = smov %s6087_s19 }
 0x3ea   : > { %s7080_s19 = smov %s6285_s14  ;;  %s7081_s20 = smov %s6095_s21 }
 0x3eb   : > { %s7082_s21 = smov %s6277_s27  ;;  %s7083_s22 = smov %s6103_s23 }
 0x3ec   : > { %s7084_s23 = smov %s6274_s0  ;;  %s7085_s24 = smov %s6115_s26 }
 0x3ed   : > { %s7086_s26 = smov %s7089_s30  ;;  %s7087_s27 = smov %s7093_s6 }
 0x3ee   :  { %15 = sbr.rel (!%p13_p6) target bundleno = 11 (0xb), region = 193 }

</bundles_post_ra>
